<compile_context>
chip_gen: v7x
topology: tpu7x:2x2x1
jax: 0.10.0
libtpu: 0.0.40
codegen_flags: <defaults>
</compile_context>

<pallas_src>
import math
import functools

import jax
import jax.numpy as jnp
from jax import lax
from jax.experimental import pallas as pl
from jax.experimental.pallas import tpu as pltpu


# ------------------------------- config --------------------------------------
INPUT_DIM = 51
EMBED_DIM = 36
N_HEADS = 2
FF_DIM = 128
NUM_LAYERS = 4
REG_HIDDEN = 46
MAX_SEQ_LEN = 30
LN_EPS = 1e-5


# --------------------------- parameter creation -------------------------------
def create_positional_encoding(embed_dim: int, max_seq_len: int) -> jnp.ndarray:
    position = jnp.arange(max_seq_len, dtype=jnp.float32)[:, None]
    div_term = jnp.exp(
        jnp.arange(0, embed_dim, 2, dtype=jnp.float32)
        * -(math.log(10000.0) / embed_dim)
    )
    ang = position * div_term                      # (max_seq_len, embed_dim // 2)
    pe = jnp.zeros((max_seq_len, embed_dim), jnp.float32)
    pe = pe.at[:, 0::2].set(jnp.sin(ang))
    pe = pe.at[:, 1::2].set(jnp.cos(ang))
    return pe


def init_params(key):
    """Deterministic synthetic weights (shapes follow the PyTorch module)."""
    scale = 0.05
    keys = iter(jax.random.split(key, 32))

    def w(shape):
        return scale * jax.random.normal(next(keys), shape, jnp.float32)

    L, E, F, D, R = NUM_LAYERS, EMBED_DIM, FF_DIM, INPUT_DIM, REG_HIDDEN
    params = {
        # input projection (stored transposed: x @ w_in)
        "w_in": w((D, E)),
        "b_in": w((1, E)),
        "pe": create_positional_encoding(E, MAX_SEQ_LEN),
        # self-attention (per layer, stored transposed for right-matmul)
        "wq": w((L, E, E)), "wk": w((L, E, E)), "wv": w((L, E, E)),
        "bq": w((L, E)), "bk": w((L, E)), "bv": w((L, E)),
        "wo": w((L, E, E)), "bo": w((L, E)),
        # layer norms
        "g1": jnp.ones((L, E), jnp.float32), "be1": jnp.zeros((L, E), jnp.float32),
        "g2": jnp.ones((L, E), jnp.float32), "be2": jnp.zeros((L, E), jnp.float32),
        # feed-forward
        "w1": w((L, E, F)), "b1": w((L, F)),
        "w2": w((L, F, E)), "b2": w((L, E)),
        # regressor
        "wr1": w((E, R)), "br1": w((1, R)),
        "wr2": w((R, D)), "br2": w((1, D)),
    }
    return params


def pack_params(params, seq_len):
    """Pack per-layer weights into a few stacked arrays (done ONCE, outside jit)."""
    L, E, H = NUM_LAYERS, EMBED_DIM, N_HEADS
    hd = E // H
    return {
        # positional encoding already sliced to seq_len and fused with the
        # input-projection bias (both are additive constants on h).
        "pe_b": (params["pe"] + params["b_in"])[:seq_len],                           # (S, E)
        "w_in": params["w_in"],                                                      # (D, E)
        # fused q/k/v projection
        "wqkv": jnp.concatenate([params["wq"], params["wk"], params["wv"]], axis=-1),  # (L, E, 3E)
        "bqkv": jnp.concatenate([params["bq"], params["bk"], params["bv"]], axis=-1),  # (L, 3E)
        # per-head output projection (summing per head replaces the lane concat)
        "wo_h": params["wo"].reshape(L, H, hd, E).reshape(L * H, hd, E),             # (L*H, hd, E)
        # small per-layer E-wide vectors packed together
        "vec6": jnp.stack([params["bo"], params["g1"], params["be1"],
                           params["b2"], params["g2"], params["be2"]], axis=1),      # (L, 6, E)
        "w1": params["w1"], "b1": params["b1"],                                      # (L, E, F), (L, F)
        "w2": params["w2"],                                                          # (L, F, E)
        "wr1": params["wr1"], "br1": params["br1"],                                  # (E, R), (1, R)
        # final projection stored transposed so the kernel can emit (D, S) directly
        "wr2_t": params["wr2"].T,                                                    # (D, R)
        "br2_t": params["br2"].T,                                                    # (D, 1)
    }


# ------------------------------ Pallas kernel ---------------------------------
def _layernorm(v, gamma, beta):
    mu = jnp.mean(v, axis=-1, keepdims=True)
    var = jnp.mean((v - mu) ** 2, axis=-1, keepdims=True)
    return (v - mu) * lax.rsqrt(var + LN_EPS) * gamma + beta


def _dot_rhs_t(a, b):
    """a @ b.T via the transposed-RHS dot_general form (no explicit transpose op)."""
    return lax.dot_general(a, b, (((1,), (1,)), ((), ())),
                           preferred_element_type=jnp.float32)


def _encoder_kernel(bblk, seq, n_layers, n_heads,
                    x_ref, pe_ref, w_in_ref, wqkv_ref, bqkv_ref, wo_h_ref,
                    vec6_ref, w1_ref, b1_ref, w2_ref,
                    wr1_ref, br1_ref, wr2t_ref, br2t_ref,
                    out_ref):
    E = w_in_ref.shape[1]
    hd = E // n_heads
    inv_sqrt_d = 1.0 / math.sqrt(hd)

    # (S, S) identity: lets the MXU do the (D, S) -> (S, D) input transpose,
    # keeping the layout change off the XLU and out of the XLA wrapper.
    rows = lax.broadcasted_iota(jnp.int32, (seq, seq), 0)
    cols = lax.broadcasted_iota(jnp.int32, (seq, seq), 1)
    ident_s = (rows == cols).astype(jnp.float32)

    pe = pe_ref[...]                                # (S, E)  (pos-enc + input bias)
    w_in = w_in_ref[...]                            # (D, E)

    # ---- input projection for every sequence in the batch block ----
    parts = []
    for b in range(bblk):
        x_t = _dot_rhs_t(ident_s, x_ref[b])         # (S, D)  == x[b].T
        parts.append(jnp.dot(x_t, w_in, preferred_element_type=jnp.float32) + pe)
    h = jnp.concatenate(parts, axis=0) if bblk > 1 else parts[0]   # (N, E), N = bblk*seq

    # ---- transformer encoder layers (post-LN, eval-mode dropout == identity) ----
    for l in range(n_layers):
        vecs = vec6_ref[l]                          # (6, E)
        bo, g1, be1 = vecs[0:1], vecs[1:2], vecs[2:3]
        b2, g2, be2 = vecs[3:4], vecs[4:5], vecs[5:6]

        # fused q/k/v projection: one (N, E) @ (E, 3E) matmul
        qkv = (jnp.dot(h, wqkv_ref[l], preferred_element_type=jnp.float32)
               + bqkv_ref[l:l + 1, :])              # (N, 3E)

        attn = bo                                    # (1, E), broadcasts up
        for hh in range(n_heads):
            q_h = qkv[:, hh * hd:(hh + 1) * hd]
            k_h = qkv[:, E + hh * hd:E + (hh + 1) * hd]
            v_h = qkv[:, 2 * E + hh * hd:2 * E + (hh + 1) * hd]
            o_parts = []
            for b in range(bblk):
                rs = slice(b * seq, (b + 1) * seq)           # sublane-aligned slice
                s = _dot_rhs_t(q_h[rs], k_h[rs]) * inv_sqrt_d        # (S, S)
                s = s - jnp.max(s, axis=-1, keepdims=True)
                p = jnp.exp(s)
                p = p * pl.reciprocal(jnp.sum(p, axis=-1, keepdims=True), approx=True)
                o_parts.append(jnp.dot(p, v_h[rs], preferred_element_type=jnp.float32))
            o_h = jnp.concatenate(o_parts, axis=0) if bblk > 1 else o_parts[0]  # (N, hd)
            # per-head output projection summed -> no lane-direction concat
            attn = attn + jnp.dot(o_h, wo_h_ref[l * n_heads + hh],
                                  preferred_element_type=jnp.float32)

        h = _layernorm(h + attn, g1, be1)

        ff = jnp.maximum(
            jnp.dot(h, w1_ref[l], preferred_element_type=jnp.float32)
            + b1_ref[l:l + 1, :], 0.0)
        ff = jnp.dot(ff, w2_ref[l], preferred_element_type=jnp.float32) + b2

        h = _layernorm(h + ff, g2, be2)

    # ---- regressor: Linear -> ReLU -> Linear, emitted directly in (D, S) ----
    r = jnp.maximum(
        jnp.dot(h, wr1_ref[...], preferred_element_type=jnp.float32) + br1_ref[...],
        0.0)                                         # (N, R)
    wr2_t = wr2t_ref[...]                            # (D, R)
    br2_t = br2t_ref[...]                            # (D, 1)
    for b in range(bblk):
        rb = r[b * seq:(b + 1) * seq, :]             # (S, R)
        out_ref[b] = _dot_rhs_t(wr2_t, rb) + br2_t   # (D, S) == (rb @ wr2 + br2).T


# ------------------------------ wrapper ---------------------------------------
def _full_spec(shape):
    nd = len(shape)
    return pl.BlockSpec(shape, lambda i, _nd=nd: (0,) * _nd)


@functools.partial(jax.jit, static_argnames=("bblk",))
def transformer_encoder_forward(x_bcs, packed, *, bblk=None):
    """x_bcs: (B, input_dim, S) -> (B, input_dim, S), matching the torch module."""
    B, D, S = x_bcs.shape
    assert D == INPUT_DIM and S <= MAX_SEQ_LEN
    if bblk is None:
        bblk = B        # fold the whole batch into one grid step (amortise overhead)
        # NOTE: on v7x, passing bblk=B//2 keeps a 2-wide "parallel" grid so both
        # TensorCores get work; for the tiny B used here we prioritise folding.
    assert B % bblk == 0

    ordered = [
        x_bcs,
        packed["pe_b"], packed["w_in"], packed["wqkv"], packed["bqkv"],
        packed["wo_h"], packed["vec6"], packed["w1"], packed["b1"], packed["w2"],
        packed["wr1"], packed["br1"], packed["wr2_t"], packed["br2_t"],
    ]
    in_specs = [pl.BlockSpec((bblk, D, S), lambda i: (i, 0, 0))]
    in_specs += [_full_spec(a.shape) for a in ordered[1:]]

    kernel = functools.partial(_encoder_kernel, bblk, S, NUM_LAYERS, N_HEADS)

    return pl.pallas_call(
        kernel,
        out_shape=jax.ShapeDtypeStruct((B, D, S), jnp.float32),
        grid_spec=pltpu.PrefetchScalarGridSpec(
            num_scalar_prefetch=0,
            grid=(B // bblk,),
            in_specs=in_specs,
            out_specs=pl.BlockSpec((bblk, D, S), lambda i: (i, 0, 0)),
        ),
        compiler_params=pltpu.CompilerParams(
            dimension_semantics=("parallel",),
        ),
    )(*ordered)


# --------------------------- pure-JAX reference --------------------------------
def reference_forward(x_bcs, params):
    x = jnp.transpose(x_bcs, (0, 2, 1)).astype(jnp.float32)     # (B, S, Din)
    Bsz, S, _ = x.shape
    h = x @ params["w_in"] + params["b_in"] + params["pe"][:S][None]
    E = h.shape[-1]
    hd = E // N_HEADS
    inv_sqrt_d = 1.0 / math.sqrt(hd)
    for l in range(NUM_LAYERS):
        q = h @ params["wq"][l] + params["bq"][l]
        k = h @ params["wk"][l] + params["bk"][l]
        v = h @ params["wv"][l] + params["bv"][l]
        qh = q.reshape(Bsz, S, N_HEADS, hd)
        kh = k.reshape(Bsz, S, N_HEADS, hd)
        vh = v.reshape(Bsz, S, N_HEADS, hd)
        s = jnp.einsum("bqhd,bkhd->bhqk", qh, kh) * inv_sqrt_d
        p = jax.nn.softmax(s, axis=-1)
        o = jnp.einsum("bhqk,bkhd->bqhd", p, vh).reshape(Bsz, S, E)
        attn = o @ params["wo"][l] + params["bo"][l]
        h = _layernorm(h + attn, params["g1"][l], params["be1"][l])
        ff = jax.nn.relu(h @ params["w1"][l] + params["b1"][l]) @ params["w2"][l] + params["b2"][l]
        h = _layernorm(h + ff, params["g2"][l], params["be2"][l])
    out = jax.nn.relu(h @ params["wr1"] + params["br1"]) @ params["wr2"] + params["br2"]
    return jnp.transpose(out, (0, 2, 1))


# --------------------------------- main ----------------------------------------
if __name__ == "__main__":
    key = jax.random.PRNGKey(0)
    pkey, xkey = jax.random.split(key)

    params = init_params(pkey)

    B, S = 2, 16                                    # small shapes, S <= max_seq_len
    x = jax.random.normal(xkey, (B, INPUT_DIM, S), jnp.float32)

    packed = pack_params(params, S)                 # one-time packing, outside jit
    packed = jax.block_until_ready(packed)

    out = jax.block_until_ready(transformer_encoder_forward(x, packed))
    ref = jax.block_until_ready(reference_forward(x, params))

    assert out.shape == (B, INPUT_DIM, S), out.shape
    assert bool(jnp.all(jnp.isfinite(out)))
    max_err = float(jnp.max(jnp.abs(out - ref)))
    assert bool(jnp.allclose(out, ref, atol=5e-2, rtol=5e-2)), max_err

    print("KERNEL_OK")
</pallas_src>

<mosaic_0001>
module attributes {stable_mosaic.version = 11 : i64} {
  func.func @_encoder_kernel(%arg0: i32, %arg1: memref<2x51x16xf32, #tpu.memory_space<vmem>>, %arg2: memref<16x36xf32, #tpu.memory_space<vmem>>, %arg3: memref<51x36xf32, #tpu.memory_space<vmem>>, %arg4: memref<4x36x108xf32, #tpu.memory_space<vmem>>, %arg5: memref<4x108xf32, #tpu.memory_space<vmem>>, %arg6: memref<8x18x36xf32, #tpu.memory_space<vmem>>, %arg7: memref<4x6x36xf32, #tpu.memory_space<vmem>>, %arg8: memref<4x36x128xf32, #tpu.memory_space<vmem>>, %arg9: memref<4x128xf32, #tpu.memory_space<vmem>>, %arg10: memref<4x128x36xf32, #tpu.memory_space<vmem>>, %arg11: memref<36x46xf32, #tpu.memory_space<vmem>>, %arg12: memref<1x46xf32, #tpu.memory_space<vmem>>, %arg13: memref<51x46xf32, #tpu.memory_space<vmem>>, %arg14: memref<51x1xf32, #tpu.memory_space<vmem>>, %arg15: memref<2x51x16xf32, #tpu.memory_space<vmem>>) attributes {dimension_semantics = [#tpu.dimension_semantics<parallel>], iteration_bounds = array<i64: 1>, scalar_prefetch = 0 : i64, scratch_operands = 0 : i64, tpu.core_type = #tpu.core_type<tc>, window_params = [{transform_indices = @transform_0, window_bounds = array<i64: 2, 51, 16>}, {pipeline_mode = #tpu.pipeline_mode<synchronous>, transform_indices = @transform_1, window_bounds = array<i64: 16, 36>}, {pipeline_mode = #tpu.pipeline_mode<synchronous>, transform_indices = @transform_2, window_bounds = array<i64: 51, 36>}, {pipeline_mode = #tpu.pipeline_mode<synchronous>, transform_indices = @transform_3, window_bounds = array<i64: 4, 36, 108>}, {pipeline_mode = #tpu.pipeline_mode<synchronous>, transform_indices = @transform_4, window_bounds = array<i64: 4, 108>}, {pipeline_mode = #tpu.pipeline_mode<synchronous>, transform_indices = @transform_5, window_bounds = array<i64: 8, 18, 36>}, {pipeline_mode = #tpu.pipeline_mode<synchronous>, transform_indices = @transform_6, window_bounds = array<i64: 4, 6, 36>}, {pipeline_mode = #tpu.pipeline_mode<synchronous>, transform_indices = @transform_7, window_bounds = array<i64: 4, 36, 128>}, {pipeline_mode = #tpu.pipeline_mode<synchronous>, transform_indices = @transform_8, window_bounds = array<i64: 4, 128>}, {pipeline_mode = #tpu.pipeline_mode<synchronous>, transform_indices = @transform_9, window_bounds = array<i64: 4, 128, 36>}, {pipeline_mode = #tpu.pipeline_mode<synchronous>, transform_indices = @transform_10, window_bounds = array<i64: 36, 46>}, {pipeline_mode = #tpu.pipeline_mode<synchronous>, transform_indices = @transform_11, window_bounds = array<i64: 1, 46>}, {pipeline_mode = #tpu.pipeline_mode<synchronous>, transform_indices = @transform_12, window_bounds = array<i64: 51, 46>}, {pipeline_mode = #tpu.pipeline_mode<synchronous>, transform_indices = @transform_13, window_bounds = array<i64: 51, 1>}, {transform_indices = @transform_14, window_bounds = array<i64: 2, 51, 16>}]} {
    %0 = tpu.iota {dimensions = array<i32: 0>} : vector<16x16xi32>
    %1 = tpu.iota {dimensions = array<i32: 1>} : vector<16x16xi32>
    %2 = arith.cmpi eq, %0, %1 : vector<16x16xi32>
    %3 = arith.extui %2 : vector<16x16xi1> to vector<16x16xi32>
    %4 = arith.sitofp %3 : vector<16x16xi32> to vector<16x16xf32>
    %c0 = arith.constant 0 : index
    %c0_0 = arith.constant 0 : index
    %5 = vector.load %arg2[%c0, %c0_0] : memref<16x36xf32, #tpu.memory_space<vmem>>, vector<16x36xf32>
    %c0_1 = arith.constant 0 : index
    %c0_2 = arith.constant 0 : index
    %6 = vector.load %arg3[%c0_1, %c0_2] : memref<51x36xf32, #tpu.memory_space<vmem>>, vector<51x36xf32>
    %c0_3 = arith.constant 0 : index
    %c0_4 = arith.constant 0 : index
    %c0_5 = arith.constant 0 : index
    %7 = vector.load %arg1[%c0_3, %c0_4, %c0_5] : memref<2x51x16xf32, #tpu.memory_space<vmem>>, vector<1x51x16xf32>
    %8 = vector.shape_cast %7 : vector<1x51x16xf32> to vector<51x16xf32>
    %cst = arith.constant dense<0.000000e+00> : vector<16x51xf32>
    %9 = tpu.matmul %4, %8, %cst {dimension_numbers = #tpu.dot_dimension_numbers<[1], [1], [0], [0], [0, 0, 1, 0], [], []>} : vector<16x16xf32>, vector<51x16xf32>, vector<16x51xf32> -> vector<16x51xf32>
    %cst_6 = arith.constant dense<0.000000e+00> : vector<16x36xf32>
    %10 = tpu.matmul %9, %6, %cst_6 {dimension_numbers = #tpu.dot_dimension_numbers<[1], [0], [0], [1], [0, 0, 1, 1], [], []>} : vector<16x51xf32>, vector<51x36xf32>, vector<16x36xf32> -> vector<16x36xf32>
    %11 = arith.addf %10, %5 : vector<16x36xf32>
    %c1 = arith.constant 1 : index
    %c0_7 = arith.constant 0 : index
    %c0_8 = arith.constant 0 : index
    %12 = vector.load %arg1[%c1, %c0_7, %c0_8] : memref<2x51x16xf32, #tpu.memory_space<vmem>>, vector<1x51x16xf32>
    %13 = vector.shape_cast %12 : vector<1x51x16xf32> to vector<51x16xf32>
    %cst_9 = arith.constant dense<0.000000e+00> : vector<16x51xf32>
    %14 = tpu.matmul %4, %13, %cst_9 {dimension_numbers = #tpu.dot_dimension_numbers<[1], [1], [0], [0], [0, 0, 1, 0], [], []>} : vector<16x16xf32>, vector<51x16xf32>, vector<16x51xf32> -> vector<16x51xf32>
    %cst_10 = arith.constant dense<0.000000e+00> : vector<16x36xf32>
    %15 = tpu.matmul %14, %6, %cst_10 {dimension_numbers = #tpu.dot_dimension_numbers<[1], [0], [0], [1], [0, 0, 1, 1], [], []>} : vector<16x51xf32>, vector<51x36xf32>, vector<16x36xf32> -> vector<16x36xf32>
    %16 = arith.addf %15, %5 : vector<16x36xf32>
    %17 = tpu.concatenate %11, %16 in 0 : vector<16x36xf32>, vector<16x36xf32> -> vector<32x36xf32>
    %c0_11 = arith.constant 0 : index
    %c0_12 = arith.constant 0 : index
    %c0_13 = arith.constant 0 : index
    %18 = vector.load %arg7[%c0_11, %c0_12, %c0_13] : memref<4x6x36xf32, #tpu.memory_space<vmem>>, vector<1x6x36xf32>
    %19 = vector.shape_cast %18 : vector<1x6x36xf32> to vector<6x36xf32>
    %20 = vector.extract_strided_slice %19 {offsets = [0, 0], sizes = [1, 36], strides = [1, 1]} : vector<6x36xf32> to vector<1x36xf32>
    %21 = vector.extract_strided_slice %19 {offsets = [1, 0], sizes = [1, 36], strides = [1, 1]} : vector<6x36xf32> to vector<1x36xf32>
    %22 = vector.extract_strided_slice %19 {offsets = [2, 0], sizes = [1, 36], strides = [1, 1]} : vector<6x36xf32> to vector<1x36xf32>
    %23 = vector.extract_strided_slice %19 {offsets = [3, 0], sizes = [1, 36], strides = [1, 1]} : vector<6x36xf32> to vector<1x36xf32>
    %24 = vector.extract_strided_slice %19 {offsets = [4, 0], sizes = [1, 36], strides = [1, 1]} : vector<6x36xf32> to vector<1x36xf32>
    %25 = vector.extract_strided_slice %19 {offsets = [5, 0], sizes = [1, 36], strides = [1, 1]} : vector<6x36xf32> to vector<1x36xf32>
    %c0_14 = arith.constant 0 : index
    %c0_15 = arith.constant 0 : index
    %c0_16 = arith.constant 0 : index
    %26 = vector.load %arg4[%c0_14, %c0_15, %c0_16] : memref<4x36x108xf32, #tpu.memory_space<vmem>>, vector<1x36x108xf32>
    %27 = vector.shape_cast %26 : vector<1x36x108xf32> to vector<36x108xf32>
    %cst_17 = arith.constant dense<0.000000e+00> : vector<32x108xf32>
    %28 = tpu.matmul %17, %27, %cst_17 {dimension_numbers = #tpu.dot_dimension_numbers<[1], [0], [0], [1], [0, 0, 1, 1], [], []>} : vector<32x36xf32>, vector<36x108xf32>, vector<32x108xf32> -> vector<32x108xf32>
    %c0_18 = arith.constant 0 : index
    %c0_19 = arith.constant 0 : index
    %29 = vector.load %arg5[%c0_18, %c0_19] : memref<4x108xf32, #tpu.memory_space<vmem>>, vector<1x108xf32>
    %30 = vector.broadcast %29 : vector<1x108xf32> to vector<32x108xf32>
    %31 = arith.addf %28, %30 : vector<32x108xf32>
    %32 = vector.extract_strided_slice %31 {offsets = [0, 0], sizes = [32, 18], strides = [1, 1]} : vector<32x108xf32> to vector<32x18xf32>
    %33 = vector.extract_strided_slice %31 {offsets = [0, 36], sizes = [32, 18], strides = [1, 1]} : vector<32x108xf32> to vector<32x18xf32>
    %34 = vector.extract_strided_slice %31 {offsets = [0, 72], sizes = [32, 18], strides = [1, 1]} : vector<32x108xf32> to vector<32x18xf32>
    %35 = vector.extract_strided_slice %32 {offsets = [0, 0], sizes = [16, 18], strides = [1, 1]} : vector<32x18xf32> to vector<16x18xf32>
    %36 = vector.extract_strided_slice %33 {offsets = [0, 0], sizes = [16, 18], strides = [1, 1]} : vector<32x18xf32> to vector<16x18xf32>
    %cst_20 = arith.constant dense<0.000000e+00> : vector<16x16xf32>
    %37 = tpu.matmul %35, %36, %cst_20 {dimension_numbers = #tpu.dot_dimension_numbers<[1], [1], [0], [0], [0, 0, 1, 0], [], []>} : vector<16x18xf32>, vector<16x18xf32>, vector<16x16xf32> -> vector<16x16xf32>
    %cst_21 = arith.constant 0.235702261 : f32
    %38 = vector.broadcast %cst_21 : f32 to vector<16x16xf32>
    %39 = arith.mulf %37, %38 : vector<16x16xf32>
    %cst_22 = arith.constant dense<0xFF800000> : vector<16xf32>
    %40 = vector.multi_reduction <maximumf>, %39, %cst_22 [1] : vector<16x16xf32> to vector<16xf32>
    %41 = vector.shape_cast %40 : vector<16xf32> to vector<16x1xf32>
    %42 = vector.broadcast %41 : vector<16x1xf32> to vector<16x16xf32>
    %43 = arith.subf %39, %42 : vector<16x16xf32>
    %44 = math.exp %43 : vector<16x16xf32>
    %cst_23 = arith.constant dense<0.000000e+00> : vector<16xf32>
    %45 = vector.multi_reduction <add>, %44, %cst_23 [1] : vector<16x16xf32> to vector<16xf32>
    %46 = vector.shape_cast %45 : vector<16xf32> to vector<16x1xf32>
    %47 = tpu.reciprocal %46 {approx = true} : vector<16x1xf32> -> vector<16x1xf32>
    %48 = vector.broadcast %47 : vector<16x1xf32> to vector<16x16xf32>
    %49 = arith.mulf %44, %48 : vector<16x16xf32>
    %50 = vector.extract_strided_slice %34 {offsets = [0, 0], sizes = [16, 18], strides = [1, 1]} : vector<32x18xf32> to vector<16x18xf32>
    %cst_24 = arith.constant dense<0.000000e+00> : vector<16x18xf32>
    %51 = tpu.matmul %49, %50, %cst_24 {dimension_numbers = #tpu.dot_dimension_numbers<[1], [0], [0], [1], [0, 0, 1, 1], [], []>} : vector<16x16xf32>, vector<16x18xf32>, vector<16x18xf32> -> vector<16x18xf32>
    %52 = vector.extract_strided_slice %32 {offsets = [16, 0], sizes = [16, 18], strides = [1, 1]} : vector<32x18xf32> to vector<16x18xf32>
    %53 = vector.extract_strided_slice %33 {offsets = [16, 0], sizes = [16, 18], strides = [1, 1]} : vector<32x18xf32> to vector<16x18xf32>
    %cst_25 = arith.constant dense<0.000000e+00> : vector<16x16xf32>
    %54 = tpu.matmul %52, %53, %cst_25 {dimension_numbers = #tpu.dot_dimension_numbers<[1], [1], [0], [0], [0, 0, 1, 0], [], []>} : vector<16x18xf32>, vector<16x18xf32>, vector<16x16xf32> -> vector<16x16xf32>
    %cst_26 = arith.constant 0.235702261 : f32
    %55 = vector.broadcast %cst_26 : f32 to vector<16x16xf32>
    %56 = arith.mulf %54, %55 : vector<16x16xf32>
    %cst_27 = arith.constant dense<0xFF800000> : vector<16xf32>
    %57 = vector.multi_reduction <maximumf>, %56, %cst_27 [1] : vector<16x16xf32> to vector<16xf32>
    %58 = vector.shape_cast %57 : vector<16xf32> to vector<16x1xf32>
    %59 = vector.broadcast %58 : vector<16x1xf32> to vector<16x16xf32>
    %60 = arith.subf %56, %59 : vector<16x16xf32>
    %61 = math.exp %60 : vector<16x16xf32>
    %cst_28 = arith.constant dense<0.000000e+00> : vector<16xf32>
    %62 = vector.multi_reduction <add>, %61, %cst_28 [1] : vector<16x16xf32> to vector<16xf32>
    %63 = vector.shape_cast %62 : vector<16xf32> to vector<16x1xf32>
    %64 = tpu.reciprocal %63 {approx = true} : vector<16x1xf32> -> vector<16x1xf32>
    %65 = vector.broadcast %64 : vector<16x1xf32> to vector<16x16xf32>
    %66 = arith.mulf %61, %65 : vector<16x16xf32>
    %67 = vector.extract_strided_slice %34 {offsets = [16, 0], sizes = [16, 18], strides = [1, 1]} : vector<32x18xf32> to vector<16x18xf32>
    %cst_29 = arith.constant dense<0.000000e+00> : vector<16x18xf32>
    %68 = tpu.matmul %66, %67, %cst_29 {dimension_numbers = #tpu.dot_dimension_numbers<[1], [0], [0], [1], [0, 0, 1, 1], [], []>} : vector<16x16xf32>, vector<16x18xf32>, vector<16x18xf32> -> vector<16x18xf32>
    %69 = tpu.concatenate %51, %68 in 0 : vector<16x18xf32>, vector<16x18xf32> -> vector<32x18xf32>
    %c0_30 = arith.constant 0 : index
    %c0_31 = arith.constant 0 : index
    %c0_32 = arith.constant 0 : index
    %70 = vector.load %arg6[%c0_30, %c0_31, %c0_32] : memref<8x18x36xf32, #tpu.memory_space<vmem>>, vector<1x18x36xf32>
    %71 = vector.shape_cast %70 : vector<1x18x36xf32> to vector<18x36xf32>
    %cst_33 = arith.constant dense<0.000000e+00> : vector<32x36xf32>
    %72 = tpu.matmul %69, %71, %cst_33 {dimension_numbers = #tpu.dot_dimension_numbers<[1], [0], [0], [1], [0, 0, 1, 1], [], []>} : vector<32x18xf32>, vector<18x36xf32>, vector<32x36xf32> -> vector<32x36xf32>
    %73 = vector.broadcast %20 : vector<1x36xf32> to vector<32x36xf32>
    %74 = arith.addf %73, %72 : vector<32x36xf32>
    %75 = vector.extract_strided_slice %31 {offsets = [0, 18], sizes = [32, 18], strides = [1, 1]} : vector<32x108xf32> to vector<32x18xf32>
    %76 = vector.extract_strided_slice %31 {offsets = [0, 54], sizes = [32, 18], strides = [1, 1]} : vector<32x108xf32> to vector<32x18xf32>
    %77 = vector.extract_strided_slice %31 {offsets = [0, 90], sizes = [32, 18], strides = [1, 1]} : vector<32x108xf32> to vector<32x18xf32>
    %78 = vector.extract_strided_slice %75 {offsets = [0, 0], sizes = [16, 18], strides = [1, 1]} : vector<32x18xf32> to vector<16x18xf32>
    %79 = vector.extract_strided_slice %76 {offsets = [0, 0], sizes = [16, 18], strides = [1, 1]} : vector<32x18xf32> to vector<16x18xf32>
    %cst_34 = arith.constant dense<0.000000e+00> : vector<16x16xf32>
    %80 = tpu.matmul %78, %79, %cst_34 {dimension_numbers = #tpu.dot_dimension_numbers<[1], [1], [0], [0], [0, 0, 1, 0], [], []>} : vector<16x18xf32>, vector<16x18xf32>, vector<16x16xf32> -> vector<16x16xf32>
    %cst_35 = arith.constant 0.235702261 : f32
    %81 = vector.broadcast %cst_35 : f32 to vector<16x16xf32>
    %82 = arith.mulf %80, %81 : vector<16x16xf32>
    %cst_36 = arith.constant dense<0xFF800000> : vector<16xf32>
    %83 = vector.multi_reduction <maximumf>, %82, %cst_36 [1] : vector<16x16xf32> to vector<16xf32>
    %84 = vector.shape_cast %83 : vector<16xf32> to vector<16x1xf32>
    %85 = vector.broadcast %84 : vector<16x1xf32> to vector<16x16xf32>
    %86 = arith.subf %82, %85 : vector<16x16xf32>
    %87 = math.exp %86 : vector<16x16xf32>
    %cst_37 = arith.constant dense<0.000000e+00> : vector<16xf32>
    %88 = vector.multi_reduction <add>, %87, %cst_37 [1] : vector<16x16xf32> to vector<16xf32>
    %89 = vector.shape_cast %88 : vector<16xf32> to vector<16x1xf32>
    %90 = tpu.reciprocal %89 {approx = true} : vector<16x1xf32> -> vector<16x1xf32>
    %91 = vector.broadcast %90 : vector<16x1xf32> to vector<16x16xf32>
    %92 = arith.mulf %87, %91 : vector<16x16xf32>
    %93 = vector.extract_strided_slice %77 {offsets = [0, 0], sizes = [16, 18], strides = [1, 1]} : vector<32x18xf32> to vector<16x18xf32>
    %cst_38 = arith.constant dense<0.000000e+00> : vector<16x18xf32>
    %94 = tpu.matmul %92, %93, %cst_38 {dimension_numbers = #tpu.dot_dimension_numbers<[1], [0], [0], [1], [0, 0, 1, 1], [], []>} : vector<16x16xf32>, vector<16x18xf32>, vector<16x18xf32> -> vector<16x18xf32>
    %95 = vector.extract_strided_slice %75 {offsets = [16, 0], sizes = [16, 18], strides = [1, 1]} : vector<32x18xf32> to vector<16x18xf32>
    %96 = vector.extract_strided_slice %76 {offsets = [16, 0], sizes = [16, 18], strides = [1, 1]} : vector<32x18xf32> to vector<16x18xf32>
    %cst_39 = arith.constant dense<0.000000e+00> : vector<16x16xf32>
    %97 = tpu.matmul %95, %96, %cst_39 {dimension_numbers = #tpu.dot_dimension_numbers<[1], [1], [0], [0], [0, 0, 1, 0], [], []>} : vector<16x18xf32>, vector<16x18xf32>, vector<16x16xf32> -> vector<16x16xf32>
    %cst_40 = arith.constant 0.235702261 : f32
    %98 = vector.broadcast %cst_40 : f32 to vector<16x16xf32>
    %99 = arith.mulf %97, %98 : vector<16x16xf32>
    %cst_41 = arith.constant dense<0xFF800000> : vector<16xf32>
    %100 = vector.multi_reduction <maximumf>, %99, %cst_41 [1] : vector<16x16xf32> to vector<16xf32>
    %101 = vector.shape_cast %100 : vector<16xf32> to vector<16x1xf32>
    %102 = vector.broadcast %101 : vector<16x1xf32> to vector<16x16xf32>
    %103 = arith.subf %99, %102 : vector<16x16xf32>
    %104 = math.exp %103 : vector<16x16xf32>
    %cst_42 = arith.constant dense<0.000000e+00> : vector<16xf32>
    %105 = vector.multi_reduction <add>, %104, %cst_42 [1] : vector<16x16xf32> to vector<16xf32>
    %106 = vector.shape_cast %105 : vector<16xf32> to vector<16x1xf32>
    %107 = tpu.reciprocal %106 {approx = true} : vector<16x1xf32> -> vector<16x1xf32>
    %108 = vector.broadcast %107 : vector<16x1xf32> to vector<16x16xf32>
    %109 = arith.mulf %104, %108 : vector<16x16xf32>
    %110 = vector.extract_strided_slice %77 {offsets = [16, 0], sizes = [16, 18], strides = [1, 1]} : vector<32x18xf32> to vector<16x18xf32>
    %cst_43 = arith.constant dense<0.000000e+00> : vector<16x18xf32>
    %111 = tpu.matmul %109, %110, %cst_43 {dimension_numbers = #tpu.dot_dimension_numbers<[1], [0], [0], [1], [0, 0, 1, 1], [], []>} : vector<16x16xf32>, vector<16x18xf32>, vector<16x18xf32> -> vector<16x18xf32>
    %112 = tpu.concatenate %94, %111 in 0 : vector<16x18xf32>, vector<16x18xf32> -> vector<32x18xf32>
    %c1_44 = arith.constant 1 : index
    %c0_45 = arith.constant 0 : index
    %c0_46 = arith.constant 0 : index
    %113 = vector.load %arg6[%c1_44, %c0_45, %c0_46] : memref<8x18x36xf32, #tpu.memory_space<vmem>>, vector<1x18x36xf32>
    %114 = vector.shape_cast %113 : vector<1x18x36xf32> to vector<18x36xf32>
    %cst_47 = arith.constant dense<0.000000e+00> : vector<32x36xf32>
    %115 = tpu.matmul %112, %114, %cst_47 {dimension_numbers = #tpu.dot_dimension_numbers<[1], [0], [0], [1], [0, 0, 1, 1], [], []>} : vector<32x18xf32>, vector<18x36xf32>, vector<32x36xf32> -> vector<32x36xf32>
    %116 = arith.addf %74, %115 : vector<32x36xf32>
    %117 = arith.addf %17, %116 : vector<32x36xf32>
    %cst_48 = arith.constant dense<0.000000e+00> : vector<32xf32>
    %118 = vector.multi_reduction <add>, %117, %cst_48 [1] : vector<32x36xf32> to vector<32xf32>
    %119 = vector.shape_cast %118 : vector<32xf32> to vector<32x1xf32>
    %cst_49 = arith.constant 3.600000e+01 : f32
    %120 = vector.broadcast %cst_49 : f32 to vector<32x1xf32>
    %121 = arith.divf %119, %120 : vector<32x1xf32>
    %122 = vector.broadcast %121 : vector<32x1xf32> to vector<32x36xf32>
    %123 = arith.subf %117, %122 : vector<32x36xf32>
    %124 = arith.mulf %123, %123 : vector<32x36xf32>
    %cst_50 = arith.constant dense<0.000000e+00> : vector<32xf32>
    %125 = vector.multi_reduction <add>, %124, %cst_50 [1] : vector<32x36xf32> to vector<32xf32>
    %126 = vector.shape_cast %125 : vector<32xf32> to vector<32x1xf32>
    %cst_51 = arith.constant 3.600000e+01 : f32
    %127 = vector.broadcast %cst_51 : f32 to vector<32x1xf32>
    %128 = arith.divf %126, %127 : vector<32x1xf32>
    %129 = vector.broadcast %121 : vector<32x1xf32> to vector<32x36xf32>
    %130 = arith.subf %117, %129 : vector<32x36xf32>
    %cst_52 = arith.constant 9.99999974E-6 : f32
    %131 = vector.broadcast %cst_52 : f32 to vector<32x1xf32>
    %132 = arith.addf %128, %131 : vector<32x1xf32>
    %133 = math.rsqrt %132 : vector<32x1xf32>
    %134 = vector.broadcast %133 : vector<32x1xf32> to vector<32x36xf32>
    %135 = arith.mulf %130, %134 : vector<32x36xf32>
    %136 = vector.broadcast %21 : vector<1x36xf32> to vector<32x36xf32>
    %137 = arith.mulf %135, %136 : vector<32x36xf32>
    %138 = vector.broadcast %22 : vector<1x36xf32> to vector<32x36xf32>
    %139 = arith.addf %137, %138 : vector<32x36xf32>
    %c0_53 = arith.constant 0 : index
    %c0_54 = arith.constant 0 : index
    %c0_55 = arith.constant 0 : index
    %140 = vector.load %arg8[%c0_53, %c0_54, %c0_55] : memref<4x36x128xf32, #tpu.memory_space<vmem>>, vector<1x36x128xf32>
    %141 = vector.shape_cast %140 : vector<1x36x128xf32> to vector<36x128xf32>
    %cst_56 = arith.constant dense<0.000000e+00> : vector<32x128xf32>
    %142 = tpu.matmul %139, %141, %cst_56 {dimension_numbers = #tpu.dot_dimension_numbers<[1], [0], [0], [1], [0, 0, 1, 1], [], []>} : vector<32x36xf32>, vector<36x128xf32>, vector<32x128xf32> -> vector<32x128xf32>
    %c0_57 = arith.constant 0 : index
    %c0_58 = arith.constant 0 : index
    %143 = vector.load %arg9[%c0_57, %c0_58] : memref<4x128xf32, #tpu.memory_space<vmem>>, vector<1x128xf32>
    %144 = vector.broadcast %143 : vector<1x128xf32> to vector<32x128xf32>
    %145 = arith.addf %142, %144 : vector<32x128xf32>
    %cst_59 = arith.constant 0.000000e+00 : f32
    %146 = vector.broadcast %cst_59 : f32 to vector<32x128xf32>
    %147 = arith.maximumf %145, %146 : vector<32x128xf32>
    %c0_60 = arith.constant 0 : index
    %c0_61 = arith.constant 0 : index
    %c0_62 = arith.constant 0 : index
    %148 = vector.load %arg10[%c0_60, %c0_61, %c0_62] : memref<4x128x36xf32, #tpu.memory_space<vmem>>, vector<1x128x36xf32>
    %149 = vector.shape_cast %148 : vector<1x128x36xf32> to vector<128x36xf32>
    %cst_63 = arith.constant dense<0.000000e+00> : vector<32x36xf32>
    %150 = tpu.matmul %147, %149, %cst_63 {dimension_numbers = #tpu.dot_dimension_numbers<[1], [0], [0], [1], [0, 0, 1, 1], [], []>} : vector<32x128xf32>, vector<128x36xf32>, vector<32x36xf32> -> vector<32x36xf32>
    %151 = vector.broadcast %23 : vector<1x36xf32> to vector<32x36xf32>
    %152 = arith.addf %150, %151 : vector<32x36xf32>
    %153 = arith.addf %139, %152 : vector<32x36xf32>
    %cst_64 = arith.constant dense<0.000000e+00> : vector<32xf32>
    %154 = vector.multi_reduction <add>, %153, %cst_64 [1] : vector<32x36xf32> to vector<32xf32>
    %155 = vector.shape_cast %154 : vector<32xf32> to vector<32x1xf32>
    %cst_65 = arith.constant 3.600000e+01 : f32
    %156 = vector.broadcast %cst_65 : f32 to vector<32x1xf32>
    %157 = arith.divf %155, %156 : vector<32x1xf32>
    %158 = vector.broadcast %157 : vector<32x1xf32> to vector<32x36xf32>
    %159 = arith.subf %153, %158 : vector<32x36xf32>
    %160 = arith.mulf %159, %159 : vector<32x36xf32>
    %cst_66 = arith.constant dense<0.000000e+00> : vector<32xf32>
    %161 = vector.multi_reduction <add>, %160, %cst_66 [1] : vector<32x36xf32> to vector<32xf32>
    %162 = vector.shape_cast %161 : vector<32xf32> to vector<32x1xf32>
    %cst_67 = arith.constant 3.600000e+01 : f32
    %163 = vector.broadcast %cst_67 : f32 to vector<32x1xf32>
    %164 = arith.divf %162, %163 : vector<32x1xf32>
    %165 = vector.broadcast %157 : vector<32x1xf32> to vector<32x36xf32>
    %166 = arith.subf %153, %165 : vector<32x36xf32>
    %cst_68 = arith.constant 9.99999974E-6 : f32
    %167 = vector.broadcast %cst_68 : f32 to vector<32x1xf32>
    %168 = arith.addf %164, %167 : vector<32x1xf32>
    %169 = math.rsqrt %168 : vector<32x1xf32>
    %170 = vector.broadcast %169 : vector<32x1xf32> to vector<32x36xf32>
    %171 = arith.mulf %166, %170 : vector<32x36xf32>
    %172 = vector.broadcast %24 : vector<1x36xf32> to vector<32x36xf32>
    %173 = arith.mulf %171, %172 : vector<32x36xf32>
    %174 = vector.broadcast %25 : vector<1x36xf32> to vector<32x36xf32>
    %175 = arith.addf %173, %174 : vector<32x36xf32>
    %c1_69 = arith.constant 1 : index
    %c0_70 = arith.constant 0 : index
    %c0_71 = arith.constant 0 : index
    %176 = vector.load %arg7[%c1_69, %c0_70, %c0_71] : memref<4x6x36xf32, #tpu.memory_space<vmem>>, vector<1x6x36xf32>
    %177 = vector.shape_cast %176 : vector<1x6x36xf32> to vector<6x36xf32>
    %178 = vector.extract_strided_slice %177 {offsets = [0, 0], sizes = [1, 36], strides = [1, 1]} : vector<6x36xf32> to vector<1x36xf32>
    %179 = vector.extract_strided_slice %177 {offsets = [1, 0], sizes = [1, 36], strides = [1, 1]} : vector<6x36xf32> to vector<1x36xf32>
    %180 = vector.extract_strided_slice %177 {offsets = [2, 0], sizes = [1, 36], strides = [1, 1]} : vector<6x36xf32> to vector<1x36xf32>
    %181 = vector.extract_strided_slice %177 {offsets = [3, 0], sizes = [1, 36], strides = [1, 1]} : vector<6x36xf32> to vector<1x36xf32>
    %182 = vector.extract_strided_slice %177 {offsets = [4, 0], sizes = [1, 36], strides = [1, 1]} : vector<6x36xf32> to vector<1x36xf32>
    %183 = vector.extract_strided_slice %177 {offsets = [5, 0], sizes = [1, 36], strides = [1, 1]} : vector<6x36xf32> to vector<1x36xf32>
    %c1_72 = arith.constant 1 : index
    %c0_73 = arith.constant 0 : index
    %c0_74 = arith.constant 0 : index
    %184 = vector.load %arg4[%c1_72, %c0_73, %c0_74] : memref<4x36x108xf32, #tpu.memory_space<vmem>>, vector<1x36x108xf32>
    %185 = vector.shape_cast %184 : vector<1x36x108xf32> to vector<36x108xf32>
    %cst_75 = arith.constant dense<0.000000e+00> : vector<32x108xf32>
    %186 = tpu.matmul %175, %185, %cst_75 {dimension_numbers = #tpu.dot_dimension_numbers<[1], [0], [0], [1], [0, 0, 1, 1], [], []>} : vector<32x36xf32>, vector<36x108xf32>, vector<32x108xf32> -> vector<32x108xf32>
    %c1_76 = arith.constant 1 : index
    %c0_77 = arith.constant 0 : index
    %187 = vector.load %arg5[%c1_76, %c0_77] : memref<4x108xf32, #tpu.memory_space<vmem>>, vector<1x108xf32>
    %188 = vector.broadcast %187 : vector<1x108xf32> to vector<32x108xf32>
    %189 = arith.addf %186, %188 : vector<32x108xf32>
    %190 = vector.extract_strided_slice %189 {offsets = [0, 0], sizes = [32, 18], strides = [1, 1]} : vector<32x108xf32> to vector<32x18xf32>
    %191 = vector.extract_strided_slice %189 {offsets = [0, 36], sizes = [32, 18], strides = [1, 1]} : vector<32x108xf32> to vector<32x18xf32>
    %192 = vector.extract_strided_slice %189 {offsets = [0, 72], sizes = [32, 18], strides = [1, 1]} : vector<32x108xf32> to vector<32x18xf32>
    %193 = vector.extract_strided_slice %190 {offsets = [0, 0], sizes = [16, 18], strides = [1, 1]} : vector<32x18xf32> to vector<16x18xf32>
    %194 = vector.extract_strided_slice %191 {offsets = [0, 0], sizes = [16, 18], strides = [1, 1]} : vector<32x18xf32> to vector<16x18xf32>
    %cst_78 = arith.constant dense<0.000000e+00> : vector<16x16xf32>
    %195 = tpu.matmul %193, %194, %cst_78 {dimension_numbers = #tpu.dot_dimension_numbers<[1], [1], [0], [0], [0, 0, 1, 0], [], []>} : vector<16x18xf32>, vector<16x18xf32>, vector<16x16xf32> -> vector<16x16xf32>
    %cst_79 = arith.constant 0.235702261 : f32
    %196 = vector.broadcast %cst_79 : f32 to vector<16x16xf32>
    %197 = arith.mulf %195, %196 : vector<16x16xf32>
    %cst_80 = arith.constant dense<0xFF800000> : vector<16xf32>
    %198 = vector.multi_reduction <maximumf>, %197, %cst_80 [1] : vector<16x16xf32> to vector<16xf32>
    %199 = vector.shape_cast %198 : vector<16xf32> to vector<16x1xf32>
    %200 = vector.broadcast %199 : vector<16x1xf32> to vector<16x16xf32>
    %201 = arith.subf %197, %200 : vector<16x16xf32>
    %202 = math.exp %201 : vector<16x16xf32>
    %cst_81 = arith.constant dense<0.000000e+00> : vector<16xf32>
    %203 = vector.multi_reduction <add>, %202, %cst_81 [1] : vector<16x16xf32> to vector<16xf32>
    %204 = vector.shape_cast %203 : vector<16xf32> to vector<16x1xf32>
    %205 = tpu.reciprocal %204 {approx = true} : vector<16x1xf32> -> vector<16x1xf32>
    %206 = vector.broadcast %205 : vector<16x1xf32> to vector<16x16xf32>
    %207 = arith.mulf %202, %206 : vector<16x16xf32>
    %208 = vector.extract_strided_slice %192 {offsets = [0, 0], sizes = [16, 18], strides = [1, 1]} : vector<32x18xf32> to vector<16x18xf32>
    %cst_82 = arith.constant dense<0.000000e+00> : vector<16x18xf32>
    %209 = tpu.matmul %207, %208, %cst_82 {dimension_numbers = #tpu.dot_dimension_numbers<[1], [0], [0], [1], [0, 0, 1, 1], [], []>} : vector<16x16xf32>, vector<16x18xf32>, vector<16x18xf32> -> vector<16x18xf32>
    %210 = vector.extract_strided_slice %190 {offsets = [16, 0], sizes = [16, 18], strides = [1, 1]} : vector<32x18xf32> to vector<16x18xf32>
    %211 = vector.extract_strided_slice %191 {offsets = [16, 0], sizes = [16, 18], strides = [1, 1]} : vector<32x18xf32> to vector<16x18xf32>
    %cst_83 = arith.constant dense<0.000000e+00> : vector<16x16xf32>
    %212 = tpu.matmul %210, %211, %cst_83 {dimension_numbers = #tpu.dot_dimension_numbers<[1], [1], [0], [0], [0, 0, 1, 0], [], []>} : vector<16x18xf32>, vector<16x18xf32>, vector<16x16xf32> -> vector<16x16xf32>
    %cst_84 = arith.constant 0.235702261 : f32
    %213 = vector.broadcast %cst_84 : f32 to vector<16x16xf32>
    %214 = arith.mulf %212, %213 : vector<16x16xf32>
    %cst_85 = arith.constant dense<0xFF800000> : vector<16xf32>
    %215 = vector.multi_reduction <maximumf>, %214, %cst_85 [1] : vector<16x16xf32> to vector<16xf32>
    %216 = vector.shape_cast %215 : vector<16xf32> to vector<16x1xf32>
    %217 = vector.broadcast %216 : vector<16x1xf32> to vector<16x16xf32>
    %218 = arith.subf %214, %217 : vector<16x16xf32>
    %219 = math.exp %218 : vector<16x16xf32>
    %cst_86 = arith.constant dense<0.000000e+00> : vector<16xf32>
    %220 = vector.multi_reduction <add>, %219, %cst_86 [1] : vector<16x16xf32> to vector<16xf32>
    %221 = vector.shape_cast %220 : vector<16xf32> to vector<16x1xf32>
    %222 = tpu.reciprocal %221 {approx = true} : vector<16x1xf32> -> vector<16x1xf32>
    %223 = vector.broadcast %222 : vector<16x1xf32> to vector<16x16xf32>
    %224 = arith.mulf %219, %223 : vector<16x16xf32>
    %225 = vector.extract_strided_slice %192 {offsets = [16, 0], sizes = [16, 18], strides = [1, 1]} : vector<32x18xf32> to vector<16x18xf32>
    %cst_87 = arith.constant dense<0.000000e+00> : vector<16x18xf32>
    %226 = tpu.matmul %224, %225, %cst_87 {dimension_numbers = #tpu.dot_dimension_numbers<[1], [0], [0], [1], [0, 0, 1, 1], [], []>} : vector<16x16xf32>, vector<16x18xf32>, vector<16x18xf32> -> vector<16x18xf32>
    %227 = tpu.concatenate %209, %226 in 0 : vector<16x18xf32>, vector<16x18xf32> -> vector<32x18xf32>
    %c2 = arith.constant 2 : index
    %c0_88 = arith.constant 0 : index
    %c0_89 = arith.constant 0 : index
    %228 = vector.load %arg6[%c2, %c0_88, %c0_89] : memref<8x18x36xf32, #tpu.memory_space<vmem>>, vector<1x18x36xf32>
    %229 = vector.shape_cast %228 : vector<1x18x36xf32> to vector<18x36xf32>
    %cst_90 = arith.constant dense<0.000000e+00> : vector<32x36xf32>
    %230 = tpu.matmul %227, %229, %cst_90 {dimension_numbers = #tpu.dot_dimension_numbers<[1], [0], [0], [1], [0, 0, 1, 1], [], []>} : vector<32x18xf32>, vector<18x36xf32>, vector<32x36xf32> -> vector<32x36xf32>
    %231 = vector.broadcast %178 : vector<1x36xf32> to vector<32x36xf32>
    %232 = arith.addf %231, %230 : vector<32x36xf32>
    %233 = vector.extract_strided_slice %189 {offsets = [0, 18], sizes = [32, 18], strides = [1, 1]} : vector<32x108xf32> to vector<32x18xf32>
    %234 = vector.extract_strided_slice %189 {offsets = [0, 54], sizes = [32, 18], strides = [1, 1]} : vector<32x108xf32> to vector<32x18xf32>
    %235 = vector.extract_strided_slice %189 {offsets = [0, 90], sizes = [32, 18], strides = [1, 1]} : vector<32x108xf32> to vector<32x18xf32>
    %236 = vector.extract_strided_slice %233 {offsets = [0, 0], sizes = [16, 18], strides = [1, 1]} : vector<32x18xf32> to vector<16x18xf32>
    %237 = vector.extract_strided_slice %234 {offsets = [0, 0], sizes = [16, 18], strides = [1, 1]} : vector<32x18xf32> to vector<16x18xf32>
    %cst_91 = arith.constant dense<0.000000e+00> : vector<16x16xf32>
    %238 = tpu.matmul %236, %237, %cst_91 {dimension_numbers = #tpu.dot_dimension_numbers<[1], [1], [0], [0], [0, 0, 1, 0], [], []>} : vector<16x18xf32>, vector<16x18xf32>, vector<16x16xf32> -> vector<16x16xf32>
    %cst_92 = arith.constant 0.235702261 : f32
    %239 = vector.broadcast %cst_92 : f32 to vector<16x16xf32>
    %240 = arith.mulf %238, %239 : vector<16x16xf32>
    %cst_93 = arith.constant dense<0xFF800000> : vector<16xf32>
    %241 = vector.multi_reduction <maximumf>, %240, %cst_93 [1] : vector<16x16xf32> to vector<16xf32>
    %242 = vector.shape_cast %241 : vector<16xf32> to vector<16x1xf32>
    %243 = vector.broadcast %242 : vector<16x1xf32> to vector<16x16xf32>
    %244 = arith.subf %240, %243 : vector<16x16xf32>
    %245 = math.exp %244 : vector<16x16xf32>
    %cst_94 = arith.constant dense<0.000000e+00> : vector<16xf32>
    %246 = vector.multi_reduction <add>, %245, %cst_94 [1] : vector<16x16xf32> to vector<16xf32>
    %247 = vector.shape_cast %246 : vector<16xf32> to vector<16x1xf32>
    %248 = tpu.reciprocal %247 {approx = true} : vector<16x1xf32> -> vector<16x1xf32>
    %249 = vector.broadcast %248 : vector<16x1xf32> to vector<16x16xf32>
    %250 = arith.mulf %245, %249 : vector<16x16xf32>
    %251 = vector.extract_strided_slice %235 {offsets = [0, 0], sizes = [16, 18], strides = [1, 1]} : vector<32x18xf32> to vector<16x18xf32>
    %cst_95 = arith.constant dense<0.000000e+00> : vector<16x18xf32>
    %252 = tpu.matmul %250, %251, %cst_95 {dimension_numbers = #tpu.dot_dimension_numbers<[1], [0], [0], [1], [0, 0, 1, 1], [], []>} : vector<16x16xf32>, vector<16x18xf32>, vector<16x18xf32> -> vector<16x18xf32>
    %253 = vector.extract_strided_slice %233 {offsets = [16, 0], sizes = [16, 18], strides = [1, 1]} : vector<32x18xf32> to vector<16x18xf32>
    %254 = vector.extract_strided_slice %234 {offsets = [16, 0], sizes = [16, 18], strides = [1, 1]} : vector<32x18xf32> to vector<16x18xf32>
    %cst_96 = arith.constant dense<0.000000e+00> : vector<16x16xf32>
    %255 = tpu.matmul %253, %254, %cst_96 {dimension_numbers = #tpu.dot_dimension_numbers<[1], [1], [0], [0], [0, 0, 1, 0], [], []>} : vector<16x18xf32>, vector<16x18xf32>, vector<16x16xf32> -> vector<16x16xf32>
    %cst_97 = arith.constant 0.235702261 : f32
    %256 = vector.broadcast %cst_97 : f32 to vector<16x16xf32>
    %257 = arith.mulf %255, %256 : vector<16x16xf32>
    %cst_98 = arith.constant dense<0xFF800000> : vector<16xf32>
    %258 = vector.multi_reduction <maximumf>, %257, %cst_98 [1] : vector<16x16xf32> to vector<16xf32>
    %259 = vector.shape_cast %258 : vector<16xf32> to vector<16x1xf32>
    %260 = vector.broadcast %259 : vector<16x1xf32> to vector<16x16xf32>
    %261 = arith.subf %257, %260 : vector<16x16xf32>
    %262 = math.exp %261 : vector<16x16xf32>
    %cst_99 = arith.constant dense<0.000000e+00> : vector<16xf32>
    %263 = vector.multi_reduction <add>, %262, %cst_99 [1] : vector<16x16xf32> to vector<16xf32>
    %264 = vector.shape_cast %263 : vector<16xf32> to vector<16x1xf32>
    %265 = tpu.reciprocal %264 {approx = true} : vector<16x1xf32> -> vector<16x1xf32>
    %266 = vector.broadcast %265 : vector<16x1xf32> to vector<16x16xf32>
    %267 = arith.mulf %262, %266 : vector<16x16xf32>
    %268 = vector.extract_strided_slice %235 {offsets = [16, 0], sizes = [16, 18], strides = [1, 1]} : vector<32x18xf32> to vector<16x18xf32>
    %cst_100 = arith.constant dense<0.000000e+00> : vector<16x18xf32>
    %269 = tpu.matmul %267, %268, %cst_100 {dimension_numbers = #tpu.dot_dimension_numbers<[1], [0], [0], [1], [0, 0, 1, 1], [], []>} : vector<16x16xf32>, vector<16x18xf32>, vector<16x18xf32> -> vector<16x18xf32>
    %270 = tpu.concatenate %252, %269 in 0 : vector<16x18xf32>, vector<16x18xf32> -> vector<32x18xf32>
    %c3 = arith.constant 3 : index
    %c0_101 = arith.constant 0 : index
    %c0_102 = arith.constant 0 : index
    %271 = vector.load %arg6[%c3, %c0_101, %c0_102] : memref<8x18x36xf32, #tpu.memory_space<vmem>>, vector<1x18x36xf32>
    %272 = vector.shape_cast %271 : vector<1x18x36xf32> to vector<18x36xf32>
    %cst_103 = arith.constant dense<0.000000e+00> : vector<32x36xf32>
    %273 = tpu.matmul %270, %272, %cst_103 {dimension_numbers = #tpu.dot_dimension_numbers<[1], [0], [0], [1], [0, 0, 1, 1], [], []>} : vector<32x18xf32>, vector<18x36xf32>, vector<32x36xf32> -> vector<32x36xf32>
    %274 = arith.addf %232, %273 : vector<32x36xf32>
    %275 = arith.addf %175, %274 : vector<32x36xf32>
    %cst_104 = arith.constant dense<0.000000e+00> : vector<32xf32>
    %276 = vector.multi_reduction <add>, %275, %cst_104 [1] : vector<32x36xf32> to vector<32xf32>
    %277 = vector.shape_cast %276 : vector<32xf32> to vector<32x1xf32>
    %cst_105 = arith.constant 3.600000e+01 : f32
    %278 = vector.broadcast %cst_105 : f32 to vector<32x1xf32>
    %279 = arith.divf %277, %278 : vector<32x1xf32>
    %280 = vector.broadcast %279 : vector<32x1xf32> to vector<32x36xf32>
    %281 = arith.subf %275, %280 : vector<32x36xf32>
    %282 = arith.mulf %281, %281 : vector<32x36xf32>
    %cst_106 = arith.constant dense<0.000000e+00> : vector<32xf32>
    %283 = vector.multi_reduction <add>, %282, %cst_106 [1] : vector<32x36xf32> to vector<32xf32>
    %284 = vector.shape_cast %283 : vector<32xf32> to vector<32x1xf32>
    %cst_107 = arith.constant 3.600000e+01 : f32
    %285 = vector.broadcast %cst_107 : f32 to vector<32x1xf32>
    %286 = arith.divf %284, %285 : vector<32x1xf32>
    %287 = vector.broadcast %279 : vector<32x1xf32> to vector<32x36xf32>
    %288 = arith.subf %275, %287 : vector<32x36xf32>
    %cst_108 = arith.constant 9.99999974E-6 : f32
    %289 = vector.broadcast %cst_108 : f32 to vector<32x1xf32>
    %290 = arith.addf %286, %289 : vector<32x1xf32>
    %291 = math.rsqrt %290 : vector<32x1xf32>
    %292 = vector.broadcast %291 : vector<32x1xf32> to vector<32x36xf32>
    %293 = arith.mulf %288, %292 : vector<32x36xf32>
    %294 = vector.broadcast %179 : vector<1x36xf32> to vector<32x36xf32>
    %295 = arith.mulf %293, %294 : vector<32x36xf32>
    %296 = vector.broadcast %180 : vector<1x36xf32> to vector<32x36xf32>
    %297 = arith.addf %295, %296 : vector<32x36xf32>
    %c1_109 = arith.constant 1 : index
    %c0_110 = arith.constant 0 : index
    %c0_111 = arith.constant 0 : index
    %298 = vector.load %arg8[%c1_109, %c0_110, %c0_111] : memref<4x36x128xf32, #tpu.memory_space<vmem>>, vector<1x36x128xf32>
    %299 = vector.shape_cast %298 : vector<1x36x128xf32> to vector<36x128xf32>
    %cst_112 = arith.constant dense<0.000000e+00> : vector<32x128xf32>
    %300 = tpu.matmul %297, %299, %cst_112 {dimension_numbers = #tpu.dot_dimension_numbers<[1], [0], [0], [1], [0, 0, 1, 1], [], []>} : vector<32x36xf32>, vector<36x128xf32>, vector<32x128xf32> -> vector<32x128xf32>
    %c1_113 = arith.constant 1 : index
    %c0_114 = arith.constant 0 : index
    %301 = vector.load %arg9[%c1_113, %c0_114] : memref<4x128xf32, #tpu.memory_space<vmem>>, vector<1x128xf32>
    %302 = vector.broadcast %301 : vector<1x128xf32> to vector<32x128xf32>
    %303 = arith.addf %300, %302 : vector<32x128xf32>
    %cst_115 = arith.constant 0.000000e+00 : f32
    %304 = vector.broadcast %cst_115 : f32 to vector<32x128xf32>
    %305 = arith.maximumf %303, %304 : vector<32x128xf32>
    %c1_116 = arith.constant 1 : index
    %c0_117 = arith.constant 0 : index
    %c0_118 = arith.constant 0 : index
    %306 = vector.load %arg10[%c1_116, %c0_117, %c0_118] : memref<4x128x36xf32, #tpu.memory_space<vmem>>, vector<1x128x36xf32>
    %307 = vector.shape_cast %306 : vector<1x128x36xf32> to vector<128x36xf32>
    %cst_119 = arith.constant dense<0.000000e+00> : vector<32x36xf32>
    %308 = tpu.matmul %305, %307, %cst_119 {dimension_numbers = #tpu.dot_dimension_numbers<[1], [0], [0], [1], [0, 0, 1, 1], [], []>} : vector<32x128xf32>, vector<128x36xf32>, vector<32x36xf32> -> vector<32x36xf32>
    %309 = vector.broadcast %181 : vector<1x36xf32> to vector<32x36xf32>
    %310 = arith.addf %308, %309 : vector<32x36xf32>
    %311 = arith.addf %297, %310 : vector<32x36xf32>
    %cst_120 = arith.constant dense<0.000000e+00> : vector<32xf32>
    %312 = vector.multi_reduction <add>, %311, %cst_120 [1] : vector<32x36xf32> to vector<32xf32>
    %313 = vector.shape_cast %312 : vector<32xf32> to vector<32x1xf32>
    %cst_121 = arith.constant 3.600000e+01 : f32
    %314 = vector.broadcast %cst_121 : f32 to vector<32x1xf32>
    %315 = arith.divf %313, %314 : vector<32x1xf32>
    %316 = vector.broadcast %315 : vector<32x1xf32> to vector<32x36xf32>
    %317 = arith.subf %311, %316 : vector<32x36xf32>
    %318 = arith.mulf %317, %317 : vector<32x36xf32>
    %cst_122 = arith.constant dense<0.000000e+00> : vector<32xf32>
    %319 = vector.multi_reduction <add>, %318, %cst_122 [1] : vector<32x36xf32> to vector<32xf32>
    %320 = vector.shape_cast %319 : vector<32xf32> to vector<32x1xf32>
    %cst_123 = arith.constant 3.600000e+01 : f32
    %321 = vector.broadcast %cst_123 : f32 to vector<32x1xf32>
    %322 = arith.divf %320, %321 : vector<32x1xf32>
    %323 = vector.broadcast %315 : vector<32x1xf32> to vector<32x36xf32>
    %324 = arith.subf %311, %323 : vector<32x36xf32>
    %cst_124 = arith.constant 9.99999974E-6 : f32
    %325 = vector.broadcast %cst_124 : f32 to vector<32x1xf32>
    %326 = arith.addf %322, %325 : vector<32x1xf32>
    %327 = math.rsqrt %326 : vector<32x1xf32>
    %328 = vector.broadcast %327 : vector<32x1xf32> to vector<32x36xf32>
    %329 = arith.mulf %324, %328 : vector<32x36xf32>
    %330 = vector.broadcast %182 : vector<1x36xf32> to vector<32x36xf32>
    %331 = arith.mulf %329, %330 : vector<32x36xf32>
    %332 = vector.broadcast %183 : vector<1x36xf32> to vector<32x36xf32>
    %333 = arith.addf %331, %332 : vector<32x36xf32>
    %c2_125 = arith.constant 2 : index
    %c0_126 = arith.constant 0 : index
    %c0_127 = arith.constant 0 : index
    %334 = vector.load %arg7[%c2_125, %c0_126, %c0_127] : memref<4x6x36xf32, #tpu.memory_space<vmem>>, vector<1x6x36xf32>
    %335 = vector.shape_cast %334 : vector<1x6x36xf32> to vector<6x36xf32>
    %336 = vector.extract_strided_slice %335 {offsets = [0, 0], sizes = [1, 36], strides = [1, 1]} : vector<6x36xf32> to vector<1x36xf32>
    %337 = vector.extract_strided_slice %335 {offsets = [1, 0], sizes = [1, 36], strides = [1, 1]} : vector<6x36xf32> to vector<1x36xf32>
    %338 = vector.extract_strided_slice %335 {offsets = [2, 0], sizes = [1, 36], strides = [1, 1]} : vector<6x36xf32> to vector<1x36xf32>
    %339 = vector.extract_strided_slice %335 {offsets = [3, 0], sizes = [1, 36], strides = [1, 1]} : vector<6x36xf32> to vector<1x36xf32>
    %340 = vector.extract_strided_slice %335 {offsets = [4, 0], sizes = [1, 36], strides = [1, 1]} : vector<6x36xf32> to vector<1x36xf32>
    %341 = vector.extract_strided_slice %335 {offsets = [5, 0], sizes = [1, 36], strides = [1, 1]} : vector<6x36xf32> to vector<1x36xf32>
    %c2_128 = arith.constant 2 : index
    %c0_129 = arith.constant 0 : index
    %c0_130 = arith.constant 0 : index
    %342 = vector.load %arg4[%c2_128, %c0_129, %c0_130] : memref<4x36x108xf32, #tpu.memory_space<vmem>>, vector<1x36x108xf32>
    %343 = vector.shape_cast %342 : vector<1x36x108xf32> to vector<36x108xf32>
    %cst_131 = arith.constant dense<0.000000e+00> : vector<32x108xf32>
    %344 = tpu.matmul %333, %343, %cst_131 {dimension_numbers = #tpu.dot_dimension_numbers<[1], [0], [0], [1], [0, 0, 1, 1], [], []>} : vector<32x36xf32>, vector<36x108xf32>, vector<32x108xf32> -> vector<32x108xf32>
    %c2_132 = arith.constant 2 : index
    %c0_133 = arith.constant 0 : index
    %345 = vector.load %arg5[%c2_132, %c0_133] : memref<4x108xf32, #tpu.memory_space<vmem>>, vector<1x108xf32>
    %346 = vector.broadcast %345 : vector<1x108xf32> to vector<32x108xf32>
    %347 = arith.addf %344, %346 : vector<32x108xf32>
    %348 = vector.extract_strided_slice %347 {offsets = [0, 0], sizes = [32, 18], strides = [1, 1]} : vector<32x108xf32> to vector<32x18xf32>
    %349 = vector.extract_strided_slice %347 {offsets = [0, 36], sizes = [32, 18], strides = [1, 1]} : vector<32x108xf32> to vector<32x18xf32>
    %350 = vector.extract_strided_slice %347 {offsets = [0, 72], sizes = [32, 18], strides = [1, 1]} : vector<32x108xf32> to vector<32x18xf32>
    %351 = vector.extract_strided_slice %348 {offsets = [0, 0], sizes = [16, 18], strides = [1, 1]} : vector<32x18xf32> to vector<16x18xf32>
    %352 = vector.extract_strided_slice %349 {offsets = [0, 0], sizes = [16, 18], strides = [1, 1]} : vector<32x18xf32> to vector<16x18xf32>
    %cst_134 = arith.constant dense<0.000000e+00> : vector<16x16xf32>
    %353 = tpu.matmul %351, %352, %cst_134 {dimension_numbers = #tpu.dot_dimension_numbers<[1], [1], [0], [0], [0, 0, 1, 0], [], []>} : vector<16x18xf32>, vector<16x18xf32>, vector<16x16xf32> -> vector<16x16xf32>
    %cst_135 = arith.constant 0.235702261 : f32
    %354 = vector.broadcast %cst_135 : f32 to vector<16x16xf32>
    %355 = arith.mulf %353, %354 : vector<16x16xf32>
    %cst_136 = arith.constant dense<0xFF800000> : vector<16xf32>
    %356 = vector.multi_reduction <maximumf>, %355, %cst_136 [1] : vector<16x16xf32> to vector<16xf32>
    %357 = vector.shape_cast %356 : vector<16xf32> to vector<16x1xf32>
    %358 = vector.broadcast %357 : vector<16x1xf32> to vector<16x16xf32>
    %359 = arith.subf %355, %358 : vector<16x16xf32>
    %360 = math.exp %359 : vector<16x16xf32>
    %cst_137 = arith.constant dense<0.000000e+00> : vector<16xf32>
    %361 = vector.multi_reduction <add>, %360, %cst_137 [1] : vector<16x16xf32> to vector<16xf32>
    %362 = vector.shape_cast %361 : vector<16xf32> to vector<16x1xf32>
    %363 = tpu.reciprocal %362 {approx = true} : vector<16x1xf32> -> vector<16x1xf32>
    %364 = vector.broadcast %363 : vector<16x1xf32> to vector<16x16xf32>
    %365 = arith.mulf %360, %364 : vector<16x16xf32>
    %366 = vector.extract_strided_slice %350 {offsets = [0, 0], sizes = [16, 18], strides = [1, 1]} : vector<32x18xf32> to vector<16x18xf32>
    %cst_138 = arith.constant dense<0.000000e+00> : vector<16x18xf32>
    %367 = tpu.matmul %365, %366, %cst_138 {dimension_numbers = #tpu.dot_dimension_numbers<[1], [0], [0], [1], [0, 0, 1, 1], [], []>} : vector<16x16xf32>, vector<16x18xf32>, vector<16x18xf32> -> vector<16x18xf32>
    %368 = vector.extract_strided_slice %348 {offsets = [16, 0], sizes = [16, 18], strides = [1, 1]} : vector<32x18xf32> to vector<16x18xf32>
    %369 = vector.extract_strided_slice %349 {offsets = [16, 0], sizes = [16, 18], strides = [1, 1]} : vector<32x18xf32> to vector<16x18xf32>
    %cst_139 = arith.constant dense<0.000000e+00> : vector<16x16xf32>
    %370 = tpu.matmul %368, %369, %cst_139 {dimension_numbers = #tpu.dot_dimension_numbers<[1], [1], [0], [0], [0, 0, 1, 0], [], []>} : vector<16x18xf32>, vector<16x18xf32>, vector<16x16xf32> -> vector<16x16xf32>
    %cst_140 = arith.constant 0.235702261 : f32
    %371 = vector.broadcast %cst_140 : f32 to vector<16x16xf32>
    %372 = arith.mulf %370, %371 : vector<16x16xf32>
    %cst_141 = arith.constant dense<0xFF800000> : vector<16xf32>
    %373 = vector.multi_reduction <maximumf>, %372, %cst_141 [1] : vector<16x16xf32> to vector<16xf32>
    %374 = vector.shape_cast %373 : vector<16xf32> to vector<16x1xf32>
    %375 = vector.broadcast %374 : vector<16x1xf32> to vector<16x16xf32>
    %376 = arith.subf %372, %375 : vector<16x16xf32>
    %377 = math.exp %376 : vector<16x16xf32>
    %cst_142 = arith.constant dense<0.000000e+00> : vector<16xf32>
    %378 = vector.multi_reduction <add>, %377, %cst_142 [1] : vector<16x16xf32> to vector<16xf32>
    %379 = vector.shape_cast %378 : vector<16xf32> to vector<16x1xf32>
    %380 = tpu.reciprocal %379 {approx = true} : vector<16x1xf32> -> vector<16x1xf32>
    %381 = vector.broadcast %380 : vector<16x1xf32> to vector<16x16xf32>
    %382 = arith.mulf %377, %381 : vector<16x16xf32>
    %383 = vector.extract_strided_slice %350 {offsets = [16, 0], sizes = [16, 18], strides = [1, 1]} : vector<32x18xf32> to vector<16x18xf32>
    %cst_143 = arith.constant dense<0.000000e+00> : vector<16x18xf32>
    %384 = tpu.matmul %382, %383, %cst_143 {dimension_numbers = #tpu.dot_dimension_numbers<[1], [0], [0], [1], [0, 0, 1, 1], [], []>} : vector<16x16xf32>, vector<16x18xf32>, vector<16x18xf32> -> vector<16x18xf32>
    %385 = tpu.concatenate %367, %384 in 0 : vector<16x18xf32>, vector<16x18xf32> -> vector<32x18xf32>
    %c4 = arith.constant 4 : index
    %c0_144 = arith.constant 0 : index
    %c0_145 = arith.constant 0 : index
    %386 = vector.load %arg6[%c4, %c0_144, %c0_145] : memref<8x18x36xf32, #tpu.memory_space<vmem>>, vector<1x18x36xf32>
    %387 = vector.shape_cast %386 : vector<1x18x36xf32> to vector<18x36xf32>
    %cst_146 = arith.constant dense<0.000000e+00> : vector<32x36xf32>
    %388 = tpu.matmul %385, %387, %cst_146 {dimension_numbers = #tpu.dot_dimension_numbers<[1], [0], [0], [1], [0, 0, 1, 1], [], []>} : vector<32x18xf32>, vector<18x36xf32>, vector<32x36xf32> -> vector<32x36xf32>
    %389 = vector.broadcast %336 : vector<1x36xf32> to vector<32x36xf32>
    %390 = arith.addf %389, %388 : vector<32x36xf32>
    %391 = vector.extract_strided_slice %347 {offsets = [0, 18], sizes = [32, 18], strides = [1, 1]} : vector<32x108xf32> to vector<32x18xf32>
    %392 = vector.extract_strided_slice %347 {offsets = [0, 54], sizes = [32, 18], strides = [1, 1]} : vector<32x108xf32> to vector<32x18xf32>
    %393 = vector.extract_strided_slice %347 {offsets = [0, 90], sizes = [32, 18], strides = [1, 1]} : vector<32x108xf32> to vector<32x18xf32>
    %394 = vector.extract_strided_slice %391 {offsets = [0, 0], sizes = [16, 18], strides = [1, 1]} : vector<32x18xf32> to vector<16x18xf32>
    %395 = vector.extract_strided_slice %392 {offsets = [0, 0], sizes = [16, 18], strides = [1, 1]} : vector<32x18xf32> to vector<16x18xf32>
    %cst_147 = arith.constant dense<0.000000e+00> : vector<16x16xf32>
    %396 = tpu.matmul %394, %395, %cst_147 {dimension_numbers = #tpu.dot_dimension_numbers<[1], [1], [0], [0], [0, 0, 1, 0], [], []>} : vector<16x18xf32>, vector<16x18xf32>, vector<16x16xf32> -> vector<16x16xf32>
    %cst_148 = arith.constant 0.235702261 : f32
    %397 = vector.broadcast %cst_148 : f32 to vector<16x16xf32>
    %398 = arith.mulf %396, %397 : vector<16x16xf32>
    %cst_149 = arith.constant dense<0xFF800000> : vector<16xf32>
    %399 = vector.multi_reduction <maximumf>, %398, %cst_149 [1] : vector<16x16xf32> to vector<16xf32>
    %400 = vector.shape_cast %399 : vector<16xf32> to vector<16x1xf32>
    %401 = vector.broadcast %400 : vector<16x1xf32> to vector<16x16xf32>
    %402 = arith.subf %398, %401 : vector<16x16xf32>
    %403 = math.exp %402 : vector<16x16xf32>
    %cst_150 = arith.constant dense<0.000000e+00> : vector<16xf32>
    %404 = vector.multi_reduction <add>, %403, %cst_150 [1] : vector<16x16xf32> to vector<16xf32>
    %405 = vector.shape_cast %404 : vector<16xf32> to vector<16x1xf32>
    %406 = tpu.reciprocal %405 {approx = true} : vector<16x1xf32> -> vector<16x1xf32>
    %407 = vector.broadcast %406 : vector<16x1xf32> to vector<16x16xf32>
    %408 = arith.mulf %403, %407 : vector<16x16xf32>
    %409 = vector.extract_strided_slice %393 {offsets = [0, 0], sizes = [16, 18], strides = [1, 1]} : vector<32x18xf32> to vector<16x18xf32>
    %cst_151 = arith.constant dense<0.000000e+00> : vector<16x18xf32>
    %410 = tpu.matmul %408, %409, %cst_151 {dimension_numbers = #tpu.dot_dimension_numbers<[1], [0], [0], [1], [0, 0, 1, 1], [], []>} : vector<16x16xf32>, vector<16x18xf32>, vector<16x18xf32> -> vector<16x18xf32>
    %411 = vector.extract_strided_slice %391 {offsets = [16, 0], sizes = [16, 18], strides = [1, 1]} : vector<32x18xf32> to vector<16x18xf32>
    %412 = vector.extract_strided_slice %392 {offsets = [16, 0], sizes = [16, 18], strides = [1, 1]} : vector<32x18xf32> to vector<16x18xf32>
    %cst_152 = arith.constant dense<0.000000e+00> : vector<16x16xf32>
    %413 = tpu.matmul %411, %412, %cst_152 {dimension_numbers = #tpu.dot_dimension_numbers<[1], [1], [0], [0], [0, 0, 1, 0], [], []>} : vector<16x18xf32>, vector<16x18xf32>, vector<16x16xf32> -> vector<16x16xf32>
    %cst_153 = arith.constant 0.235702261 : f32
    %414 = vector.broadcast %cst_153 : f32 to vector<16x16xf32>
    %415 = arith.mulf %413, %414 : vector<16x16xf32>
    %cst_154 = arith.constant dense<0xFF800000> : vector<16xf32>
    %416 = vector.multi_reduction <maximumf>, %415, %cst_154 [1] : vector<16x16xf32> to vector<16xf32>
    %417 = vector.shape_cast %416 : vector<16xf32> to vector<16x1xf32>
    %418 = vector.broadcast %417 : vector<16x1xf32> to vector<16x16xf32>
    %419 = arith.subf %415, %418 : vector<16x16xf32>
    %420 = math.exp %419 : vector<16x16xf32>
    %cst_155 = arith.constant dense<0.000000e+00> : vector<16xf32>
    %421 = vector.multi_reduction <add>, %420, %cst_155 [1] : vector<16x16xf32> to vector<16xf32>
    %422 = vector.shape_cast %421 : vector<16xf32> to vector<16x1xf32>
    %423 = tpu.reciprocal %422 {approx = true} : vector<16x1xf32> -> vector<16x1xf32>
    %424 = vector.broadcast %423 : vector<16x1xf32> to vector<16x16xf32>
    %425 = arith.mulf %420, %424 : vector<16x16xf32>
    %426 = vector.extract_strided_slice %393 {offsets = [16, 0], sizes = [16, 18], strides = [1, 1]} : vector<32x18xf32> to vector<16x18xf32>
    %cst_156 = arith.constant dense<0.000000e+00> : vector<16x18xf32>
    %427 = tpu.matmul %425, %426, %cst_156 {dimension_numbers = #tpu.dot_dimension_numbers<[1], [0], [0], [1], [0, 0, 1, 1], [], []>} : vector<16x16xf32>, vector<16x18xf32>, vector<16x18xf32> -> vector<16x18xf32>
    %428 = tpu.concatenate %410, %427 in 0 : vector<16x18xf32>, vector<16x18xf32> -> vector<32x18xf32>
    %c5 = arith.constant 5 : index
    %c0_157 = arith.constant 0 : index
    %c0_158 = arith.constant 0 : index
    %429 = vector.load %arg6[%c5, %c0_157, %c0_158] : memref<8x18x36xf32, #tpu.memory_space<vmem>>, vector<1x18x36xf32>
    %430 = vector.shape_cast %429 : vector<1x18x36xf32> to vector<18x36xf32>
    %cst_159 = arith.constant dense<0.000000e+00> : vector<32x36xf32>
    %431 = tpu.matmul %428, %430, %cst_159 {dimension_numbers = #tpu.dot_dimension_numbers<[1], [0], [0], [1], [0, 0, 1, 1], [], []>} : vector<32x18xf32>, vector<18x36xf32>, vector<32x36xf32> -> vector<32x36xf32>
    %432 = arith.addf %390, %431 : vector<32x36xf32>
    %433 = arith.addf %333, %432 : vector<32x36xf32>
    %cst_160 = arith.constant dense<0.000000e+00> : vector<32xf32>
    %434 = vector.multi_reduction <add>, %433, %cst_160 [1] : vector<32x36xf32> to vector<32xf32>
    %435 = vector.shape_cast %434 : vector<32xf32> to vector<32x1xf32>
    %cst_161 = arith.constant 3.600000e+01 : f32
    %436 = vector.broadcast %cst_161 : f32 to vector<32x1xf32>
    %437 = arith.divf %435, %436 : vector<32x1xf32>
    %438 = vector.broadcast %437 : vector<32x1xf32> to vector<32x36xf32>
    %439 = arith.subf %433, %438 : vector<32x36xf32>
    %440 = arith.mulf %439, %439 : vector<32x36xf32>
    %cst_162 = arith.constant dense<0.000000e+00> : vector<32xf32>
    %441 = vector.multi_reduction <add>, %440, %cst_162 [1] : vector<32x36xf32> to vector<32xf32>
    %442 = vector.shape_cast %441 : vector<32xf32> to vector<32x1xf32>
    %cst_163 = arith.constant 3.600000e+01 : f32
    %443 = vector.broadcast %cst_163 : f32 to vector<32x1xf32>
    %444 = arith.divf %442, %443 : vector<32x1xf32>
    %445 = vector.broadcast %437 : vector<32x1xf32> to vector<32x36xf32>
    %446 = arith.subf %433, %445 : vector<32x36xf32>
    %cst_164 = arith.constant 9.99999974E-6 : f32
    %447 = vector.broadcast %cst_164 : f32 to vector<32x1xf32>
    %448 = arith.addf %444, %447 : vector<32x1xf32>
    %449 = math.rsqrt %448 : vector<32x1xf32>
    %450 = vector.broadcast %449 : vector<32x1xf32> to vector<32x36xf32>
    %451 = arith.mulf %446, %450 : vector<32x36xf32>
    %452 = vector.broadcast %337 : vector<1x36xf32> to vector<32x36xf32>
    %453 = arith.mulf %451, %452 : vector<32x36xf32>
    %454 = vector.broadcast %338 : vector<1x36xf32> to vector<32x36xf32>
    %455 = arith.addf %453, %454 : vector<32x36xf32>
    %c2_165 = arith.constant 2 : index
    %c0_166 = arith.constant 0 : index
    %c0_167 = arith.constant 0 : index
    %456 = vector.load %arg8[%c2_165, %c0_166, %c0_167] : memref<4x36x128xf32, #tpu.memory_space<vmem>>, vector<1x36x128xf32>
    %457 = vector.shape_cast %456 : vector<1x36x128xf32> to vector<36x128xf32>
    %cst_168 = arith.constant dense<0.000000e+00> : vector<32x128xf32>
    %458 = tpu.matmul %455, %457, %cst_168 {dimension_numbers = #tpu.dot_dimension_numbers<[1], [0], [0], [1], [0, 0, 1, 1], [], []>} : vector<32x36xf32>, vector<36x128xf32>, vector<32x128xf32> -> vector<32x128xf32>
    %c2_169 = arith.constant 2 : index
    %c0_170 = arith.constant 0 : index
    %459 = vector.load %arg9[%c2_169, %c0_170] : memref<4x128xf32, #tpu.memory_space<vmem>>, vector<1x128xf32>
    %460 = vector.broadcast %459 : vector<1x128xf32> to vector<32x128xf32>
    %461 = arith.addf %458, %460 : vector<32x128xf32>
    %cst_171 = arith.constant 0.000000e+00 : f32
    %462 = vector.broadcast %cst_171 : f32 to vector<32x128xf32>
    %463 = arith.maximumf %461, %462 : vector<32x128xf32>
    %c2_172 = arith.constant 2 : index
    %c0_173 = arith.constant 0 : index
    %c0_174 = arith.constant 0 : index
    %464 = vector.load %arg10[%c2_172, %c0_173, %c0_174] : memref<4x128x36xf32, #tpu.memory_space<vmem>>, vector<1x128x36xf32>
    %465 = vector.shape_cast %464 : vector<1x128x36xf32> to vector<128x36xf32>
    %cst_175 = arith.constant dense<0.000000e+00> : vector<32x36xf32>
    %466 = tpu.matmul %463, %465, %cst_175 {dimension_numbers = #tpu.dot_dimension_numbers<[1], [0], [0], [1], [0, 0, 1, 1], [], []>} : vector<32x128xf32>, vector<128x36xf32>, vector<32x36xf32> -> vector<32x36xf32>
    %467 = vector.broadcast %339 : vector<1x36xf32> to vector<32x36xf32>
    %468 = arith.addf %466, %467 : vector<32x36xf32>
    %469 = arith.addf %455, %468 : vector<32x36xf32>
    %cst_176 = arith.constant dense<0.000000e+00> : vector<32xf32>
    %470 = vector.multi_reduction <add>, %469, %cst_176 [1] : vector<32x36xf32> to vector<32xf32>
    %471 = vector.shape_cast %470 : vector<32xf32> to vector<32x1xf32>
    %cst_177 = arith.constant 3.600000e+01 : f32
    %472 = vector.broadcast %cst_177 : f32 to vector<32x1xf32>
    %473 = arith.divf %471, %472 : vector<32x1xf32>
    %474 = vector.broadcast %473 : vector<32x1xf32> to vector<32x36xf32>
    %475 = arith.subf %469, %474 : vector<32x36xf32>
    %476 = arith.mulf %475, %475 : vector<32x36xf32>
    %cst_178 = arith.constant dense<0.000000e+00> : vector<32xf32>
    %477 = vector.multi_reduction <add>, %476, %cst_178 [1] : vector<32x36xf32> to vector<32xf32>
    %478 = vector.shape_cast %477 : vector<32xf32> to vector<32x1xf32>
    %cst_179 = arith.constant 3.600000e+01 : f32
    %479 = vector.broadcast %cst_179 : f32 to vector<32x1xf32>
    %480 = arith.divf %478, %479 : vector<32x1xf32>
    %481 = vector.broadcast %473 : vector<32x1xf32> to vector<32x36xf32>
    %482 = arith.subf %469, %481 : vector<32x36xf32>
    %cst_180 = arith.constant 9.99999974E-6 : f32
    %483 = vector.broadcast %cst_180 : f32 to vector<32x1xf32>
    %484 = arith.addf %480, %483 : vector<32x1xf32>
    %485 = math.rsqrt %484 : vector<32x1xf32>
    %486 = vector.broadcast %485 : vector<32x1xf32> to vector<32x36xf32>
    %487 = arith.mulf %482, %486 : vector<32x36xf32>
    %488 = vector.broadcast %340 : vector<1x36xf32> to vector<32x36xf32>
    %489 = arith.mulf %487, %488 : vector<32x36xf32>
    %490 = vector.broadcast %341 : vector<1x36xf32> to vector<32x36xf32>
    %491 = arith.addf %489, %490 : vector<32x36xf32>
    %c3_181 = arith.constant 3 : index
    %c0_182 = arith.constant 0 : index
    %c0_183 = arith.constant 0 : index
    %492 = vector.load %arg7[%c3_181, %c0_182, %c0_183] : memref<4x6x36xf32, #tpu.memory_space<vmem>>, vector<1x6x36xf32>
    %493 = vector.shape_cast %492 : vector<1x6x36xf32> to vector<6x36xf32>
    %494 = vector.extract_strided_slice %493 {offsets = [0, 0], sizes = [1, 36], strides = [1, 1]} : vector<6x36xf32> to vector<1x36xf32>
    %495 = vector.extract_strided_slice %493 {offsets = [1, 0], sizes = [1, 36], strides = [1, 1]} : vector<6x36xf32> to vector<1x36xf32>
    %496 = vector.extract_strided_slice %493 {offsets = [2, 0], sizes = [1, 36], strides = [1, 1]} : vector<6x36xf32> to vector<1x36xf32>
    %497 = vector.extract_strided_slice %493 {offsets = [3, 0], sizes = [1, 36], strides = [1, 1]} : vector<6x36xf32> to vector<1x36xf32>
    %498 = vector.extract_strided_slice %493 {offsets = [4, 0], sizes = [1, 36], strides = [1, 1]} : vector<6x36xf32> to vector<1x36xf32>
    %499 = vector.extract_strided_slice %493 {offsets = [5, 0], sizes = [1, 36], strides = [1, 1]} : vector<6x36xf32> to vector<1x36xf32>
    %c3_184 = arith.constant 3 : index
    %c0_185 = arith.constant 0 : index
    %c0_186 = arith.constant 0 : index
    %500 = vector.load %arg4[%c3_184, %c0_185, %c0_186] : memref<4x36x108xf32, #tpu.memory_space<vmem>>, vector<1x36x108xf32>
    %501 = vector.shape_cast %500 : vector<1x36x108xf32> to vector<36x108xf32>
    %cst_187 = arith.constant dense<0.000000e+00> : vector<32x108xf32>
    %502 = tpu.matmul %491, %501, %cst_187 {dimension_numbers = #tpu.dot_dimension_numbers<[1], [0], [0], [1], [0, 0, 1, 1], [], []>} : vector<32x36xf32>, vector<36x108xf32>, vector<32x108xf32> -> vector<32x108xf32>
    %c3_188 = arith.constant 3 : index
    %c0_189 = arith.constant 0 : index
    %503 = vector.load %arg5[%c3_188, %c0_189] : memref<4x108xf32, #tpu.memory_space<vmem>>, vector<1x108xf32>
    %504 = vector.broadcast %503 : vector<1x108xf32> to vector<32x108xf32>
    %505 = arith.addf %502, %504 : vector<32x108xf32>
    %506 = vector.extract_strided_slice %505 {offsets = [0, 0], sizes = [32, 18], strides = [1, 1]} : vector<32x108xf32> to vector<32x18xf32>
    %507 = vector.extract_strided_slice %505 {offsets = [0, 36], sizes = [32, 18], strides = [1, 1]} : vector<32x108xf32> to vector<32x18xf32>
    %508 = vector.extract_strided_slice %505 {offsets = [0, 72], sizes = [32, 18], strides = [1, 1]} : vector<32x108xf32> to vector<32x18xf32>
    %509 = vector.extract_strided_slice %506 {offsets = [0, 0], sizes = [16, 18], strides = [1, 1]} : vector<32x18xf32> to vector<16x18xf32>
    %510 = vector.extract_strided_slice %507 {offsets = [0, 0], sizes = [16, 18], strides = [1, 1]} : vector<32x18xf32> to vector<16x18xf32>
    %cst_190 = arith.constant dense<0.000000e+00> : vector<16x16xf32>
    %511 = tpu.matmul %509, %510, %cst_190 {dimension_numbers = #tpu.dot_dimension_numbers<[1], [1], [0], [0], [0, 0, 1, 0], [], []>} : vector<16x18xf32>, vector<16x18xf32>, vector<16x16xf32> -> vector<16x16xf32>
    %cst_191 = arith.constant 0.235702261 : f32
    %512 = vector.broadcast %cst_191 : f32 to vector<16x16xf32>
    %513 = arith.mulf %511, %512 : vector<16x16xf32>
    %cst_192 = arith.constant dense<0xFF800000> : vector<16xf32>
    %514 = vector.multi_reduction <maximumf>, %513, %cst_192 [1] : vector<16x16xf32> to vector<16xf32>
    %515 = vector.shape_cast %514 : vector<16xf32> to vector<16x1xf32>
    %516 = vector.broadcast %515 : vector<16x1xf32> to vector<16x16xf32>
    %517 = arith.subf %513, %516 : vector<16x16xf32>
    %518 = math.exp %517 : vector<16x16xf32>
    %cst_193 = arith.constant dense<0.000000e+00> : vector<16xf32>
    %519 = vector.multi_reduction <add>, %518, %cst_193 [1] : vector<16x16xf32> to vector<16xf32>
    %520 = vector.shape_cast %519 : vector<16xf32> to vector<16x1xf32>
    %521 = tpu.reciprocal %520 {approx = true} : vector<16x1xf32> -> vector<16x1xf32>
    %522 = vector.broadcast %521 : vector<16x1xf32> to vector<16x16xf32>
    %523 = arith.mulf %518, %522 : vector<16x16xf32>
    %524 = vector.extract_strided_slice %508 {offsets = [0, 0], sizes = [16, 18], strides = [1, 1]} : vector<32x18xf32> to vector<16x18xf32>
    %cst_194 = arith.constant dense<0.000000e+00> : vector<16x18xf32>
    %525 = tpu.matmul %523, %524, %cst_194 {dimension_numbers = #tpu.dot_dimension_numbers<[1], [0], [0], [1], [0, 0, 1, 1], [], []>} : vector<16x16xf32>, vector<16x18xf32>, vector<16x18xf32> -> vector<16x18xf32>
    %526 = vector.extract_strided_slice %506 {offsets = [16, 0], sizes = [16, 18], strides = [1, 1]} : vector<32x18xf32> to vector<16x18xf32>
    %527 = vector.extract_strided_slice %507 {offsets = [16, 0], sizes = [16, 18], strides = [1, 1]} : vector<32x18xf32> to vector<16x18xf32>
    %cst_195 = arith.constant dense<0.000000e+00> : vector<16x16xf32>
    %528 = tpu.matmul %526, %527, %cst_195 {dimension_numbers = #tpu.dot_dimension_numbers<[1], [1], [0], [0], [0, 0, 1, 0], [], []>} : vector<16x18xf32>, vector<16x18xf32>, vector<16x16xf32> -> vector<16x16xf32>
    %cst_196 = arith.constant 0.235702261 : f32
    %529 = vector.broadcast %cst_196 : f32 to vector<16x16xf32>
    %530 = arith.mulf %528, %529 : vector<16x16xf32>
    %cst_197 = arith.constant dense<0xFF800000> : vector<16xf32>
    %531 = vector.multi_reduction <maximumf>, %530, %cst_197 [1] : vector<16x16xf32> to vector<16xf32>
    %532 = vector.shape_cast %531 : vector<16xf32> to vector<16x1xf32>
    %533 = vector.broadcast %532 : vector<16x1xf32> to vector<16x16xf32>
    %534 = arith.subf %530, %533 : vector<16x16xf32>
    %535 = math.exp %534 : vector<16x16xf32>
    %cst_198 = arith.constant dense<0.000000e+00> : vector<16xf32>
    %536 = vector.multi_reduction <add>, %535, %cst_198 [1] : vector<16x16xf32> to vector<16xf32>
    %537 = vector.shape_cast %536 : vector<16xf32> to vector<16x1xf32>
    %538 = tpu.reciprocal %537 {approx = true} : vector<16x1xf32> -> vector<16x1xf32>
    %539 = vector.broadcast %538 : vector<16x1xf32> to vector<16x16xf32>
    %540 = arith.mulf %535, %539 : vector<16x16xf32>
    %541 = vector.extract_strided_slice %508 {offsets = [16, 0], sizes = [16, 18], strides = [1, 1]} : vector<32x18xf32> to vector<16x18xf32>
    %cst_199 = arith.constant dense<0.000000e+00> : vector<16x18xf32>
    %542 = tpu.matmul %540, %541, %cst_199 {dimension_numbers = #tpu.dot_dimension_numbers<[1], [0], [0], [1], [0, 0, 1, 1], [], []>} : vector<16x16xf32>, vector<16x18xf32>, vector<16x18xf32> -> vector<16x18xf32>
    %543 = tpu.concatenate %525, %542 in 0 : vector<16x18xf32>, vector<16x18xf32> -> vector<32x18xf32>
    %c6 = arith.constant 6 : index
    %c0_200 = arith.constant 0 : index
    %c0_201 = arith.constant 0 : index
    %544 = vector.load %arg6[%c6, %c0_200, %c0_201] : memref<8x18x36xf32, #tpu.memory_space<vmem>>, vector<1x18x36xf32>
    %545 = vector.shape_cast %544 : vector<1x18x36xf32> to vector<18x36xf32>
    %cst_202 = arith.constant dense<0.000000e+00> : vector<32x36xf32>
    %546 = tpu.matmul %543, %545, %cst_202 {dimension_numbers = #tpu.dot_dimension_numbers<[1], [0], [0], [1], [0, 0, 1, 1], [], []>} : vector<32x18xf32>, vector<18x36xf32>, vector<32x36xf32> -> vector<32x36xf32>
    %547 = vector.broadcast %494 : vector<1x36xf32> to vector<32x36xf32>
    %548 = arith.addf %547, %546 : vector<32x36xf32>
    %549 = vector.extract_strided_slice %505 {offsets = [0, 18], sizes = [32, 18], strides = [1, 1]} : vector<32x108xf32> to vector<32x18xf32>
    %550 = vector.extract_strided_slice %505 {offsets = [0, 54], sizes = [32, 18], strides = [1, 1]} : vector<32x108xf32> to vector<32x18xf32>
    %551 = vector.extract_strided_slice %505 {offsets = [0, 90], sizes = [32, 18], strides = [1, 1]} : vector<32x108xf32> to vector<32x18xf32>
    %552 = vector.extract_strided_slice %549 {offsets = [0, 0], sizes = [16, 18], strides = [1, 1]} : vector<32x18xf32> to vector<16x18xf32>
    %553 = vector.extract_strided_slice %550 {offsets = [0, 0], sizes = [16, 18], strides = [1, 1]} : vector<32x18xf32> to vector<16x18xf32>
    %cst_203 = arith.constant dense<0.000000e+00> : vector<16x16xf32>
    %554 = tpu.matmul %552, %553, %cst_203 {dimension_numbers = #tpu.dot_dimension_numbers<[1], [1], [0], [0], [0, 0, 1, 0], [], []>} : vector<16x18xf32>, vector<16x18xf32>, vector<16x16xf32> -> vector<16x16xf32>
    %cst_204 = arith.constant 0.235702261 : f32
    %555 = vector.broadcast %cst_204 : f32 to vector<16x16xf32>
    %556 = arith.mulf %554, %555 : vector<16x16xf32>
    %cst_205 = arith.constant dense<0xFF800000> : vector<16xf32>
    %557 = vector.multi_reduction <maximumf>, %556, %cst_205 [1] : vector<16x16xf32> to vector<16xf32>
    %558 = vector.shape_cast %557 : vector<16xf32> to vector<16x1xf32>
    %559 = vector.broadcast %558 : vector<16x1xf32> to vector<16x16xf32>
    %560 = arith.subf %556, %559 : vector<16x16xf32>
    %561 = math.exp %560 : vector<16x16xf32>
    %cst_206 = arith.constant dense<0.000000e+00> : vector<16xf32>
    %562 = vector.multi_reduction <add>, %561, %cst_206 [1] : vector<16x16xf32> to vector<16xf32>
    %563 = vector.shape_cast %562 : vector<16xf32> to vector<16x1xf32>
    %564 = tpu.reciprocal %563 {approx = true} : vector<16x1xf32> -> vector<16x1xf32>
    %565 = vector.broadcast %564 : vector<16x1xf32> to vector<16x16xf32>
    %566 = arith.mulf %561, %565 : vector<16x16xf32>
    %567 = vector.extract_strided_slice %551 {offsets = [0, 0], sizes = [16, 18], strides = [1, 1]} : vector<32x18xf32> to vector<16x18xf32>
    %cst_207 = arith.constant dense<0.000000e+00> : vector<16x18xf32>
    %568 = tpu.matmul %566, %567, %cst_207 {dimension_numbers = #tpu.dot_dimension_numbers<[1], [0], [0], [1], [0, 0, 1, 1], [], []>} : vector<16x16xf32>, vector<16x18xf32>, vector<16x18xf32> -> vector<16x18xf32>
    %569 = vector.extract_strided_slice %549 {offsets = [16, 0], sizes = [16, 18], strides = [1, 1]} : vector<32x18xf32> to vector<16x18xf32>
    %570 = vector.extract_strided_slice %550 {offsets = [16, 0], sizes = [16, 18], strides = [1, 1]} : vector<32x18xf32> to vector<16x18xf32>
    %cst_208 = arith.constant dense<0.000000e+00> : vector<16x16xf32>
    %571 = tpu.matmul %569, %570, %cst_208 {dimension_numbers = #tpu.dot_dimension_numbers<[1], [1], [0], [0], [0, 0, 1, 0], [], []>} : vector<16x18xf32>, vector<16x18xf32>, vector<16x16xf32> -> vector<16x16xf32>
    %cst_209 = arith.constant 0.235702261 : f32
    %572 = vector.broadcast %cst_209 : f32 to vector<16x16xf32>
    %573 = arith.mulf %571, %572 : vector<16x16xf32>
    %cst_210 = arith.constant dense<0xFF800000> : vector<16xf32>
    %574 = vector.multi_reduction <maximumf>, %573, %cst_210 [1] : vector<16x16xf32> to vector<16xf32>
    %575 = vector.shape_cast %574 : vector<16xf32> to vector<16x1xf32>
    %576 = vector.broadcast %575 : vector<16x1xf32> to vector<16x16xf32>
    %577 = arith.subf %573, %576 : vector<16x16xf32>
    %578 = math.exp %577 : vector<16x16xf32>
    %cst_211 = arith.constant dense<0.000000e+00> : vector<16xf32>
    %579 = vector.multi_reduction <add>, %578, %cst_211 [1] : vector<16x16xf32> to vector<16xf32>
    %580 = vector.shape_cast %579 : vector<16xf32> to vector<16x1xf32>
    %581 = tpu.reciprocal %580 {approx = true} : vector<16x1xf32> -> vector<16x1xf32>
    %582 = vector.broadcast %581 : vector<16x1xf32> to vector<16x16xf32>
    %583 = arith.mulf %578, %582 : vector<16x16xf32>
    %584 = vector.extract_strided_slice %551 {offsets = [16, 0], sizes = [16, 18], strides = [1, 1]} : vector<32x18xf32> to vector<16x18xf32>
    %cst_212 = arith.constant dense<0.000000e+00> : vector<16x18xf32>
    %585 = tpu.matmul %583, %584, %cst_212 {dimension_numbers = #tpu.dot_dimension_numbers<[1], [0], [0], [1], [0, 0, 1, 1], [], []>} : vector<16x16xf32>, vector<16x18xf32>, vector<16x18xf32> -> vector<16x18xf32>
    %586 = tpu.concatenate %568, %585 in 0 : vector<16x18xf32>, vector<16x18xf32> -> vector<32x18xf32>
    %c7 = arith.constant 7 : index
    %c0_213 = arith.constant 0 : index
    %c0_214 = arith.constant 0 : index
    %587 = vector.load %arg6[%c7, %c0_213, %c0_214] : memref<8x18x36xf32, #tpu.memory_space<vmem>>, vector<1x18x36xf32>
    %588 = vector.shape_cast %587 : vector<1x18x36xf32> to vector<18x36xf32>
    %cst_215 = arith.constant dense<0.000000e+00> : vector<32x36xf32>
    %589 = tpu.matmul %586, %588, %cst_215 {dimension_numbers = #tpu.dot_dimension_numbers<[1], [0], [0], [1], [0, 0, 1, 1], [], []>} : vector<32x18xf32>, vector<18x36xf32>, vector<32x36xf32> -> vector<32x36xf32>
    %590 = arith.addf %548, %589 : vector<32x36xf32>
    %591 = arith.addf %491, %590 : vector<32x36xf32>
    %cst_216 = arith.constant dense<0.000000e+00> : vector<32xf32>
    %592 = vector.multi_reduction <add>, %591, %cst_216 [1] : vector<32x36xf32> to vector<32xf32>
    %593 = vector.shape_cast %592 : vector<32xf32> to vector<32x1xf32>
    %cst_217 = arith.constant 3.600000e+01 : f32
    %594 = vector.broadcast %cst_217 : f32 to vector<32x1xf32>
    %595 = arith.divf %593, %594 : vector<32x1xf32>
    %596 = vector.broadcast %595 : vector<32x1xf32> to vector<32x36xf32>
    %597 = arith.subf %591, %596 : vector<32x36xf32>
    %598 = arith.mulf %597, %597 : vector<32x36xf32>
    %cst_218 = arith.constant dense<0.000000e+00> : vector<32xf32>
    %599 = vector.multi_reduction <add>, %598, %cst_218 [1] : vector<32x36xf32> to vector<32xf32>
    %600 = vector.shape_cast %599 : vector<32xf32> to vector<32x1xf32>
    %cst_219 = arith.constant 3.600000e+01 : f32
    %601 = vector.broadcast %cst_219 : f32 to vector<32x1xf32>
    %602 = arith.divf %600, %601 : vector<32x1xf32>
    %603 = vector.broadcast %595 : vector<32x1xf32> to vector<32x36xf32>
    %604 = arith.subf %591, %603 : vector<32x36xf32>
    %cst_220 = arith.constant 9.99999974E-6 : f32
    %605 = vector.broadcast %cst_220 : f32 to vector<32x1xf32>
    %606 = arith.addf %602, %605 : vector<32x1xf32>
    %607 = math.rsqrt %606 : vector<32x1xf32>
    %608 = vector.broadcast %607 : vector<32x1xf32> to vector<32x36xf32>
    %609 = arith.mulf %604, %608 : vector<32x36xf32>
    %610 = vector.broadcast %495 : vector<1x36xf32> to vector<32x36xf32>
    %611 = arith.mulf %609, %610 : vector<32x36xf32>
    %612 = vector.broadcast %496 : vector<1x36xf32> to vector<32x36xf32>
    %613 = arith.addf %611, %612 : vector<32x36xf32>
    %c3_221 = arith.constant 3 : index
    %c0_222 = arith.constant 0 : index
    %c0_223 = arith.constant 0 : index
    %614 = vector.load %arg8[%c3_221, %c0_222, %c0_223] : memref<4x36x128xf32, #tpu.memory_space<vmem>>, vector<1x36x128xf32>
    %615 = vector.shape_cast %614 : vector<1x36x128xf32> to vector<36x128xf32>
    %cst_224 = arith.constant dense<0.000000e+00> : vector<32x128xf32>
    %616 = tpu.matmul %613, %615, %cst_224 {dimension_numbers = #tpu.dot_dimension_numbers<[1], [0], [0], [1], [0, 0, 1, 1], [], []>} : vector<32x36xf32>, vector<36x128xf32>, vector<32x128xf32> -> vector<32x128xf32>
    %c3_225 = arith.constant 3 : index
    %c0_226 = arith.constant 0 : index
    %617 = vector.load %arg9[%c3_225, %c0_226] : memref<4x128xf32, #tpu.memory_space<vmem>>, vector<1x128xf32>
    %618 = vector.broadcast %617 : vector<1x128xf32> to vector<32x128xf32>
    %619 = arith.addf %616, %618 : vector<32x128xf32>
    %cst_227 = arith.constant 0.000000e+00 : f32
    %620 = vector.broadcast %cst_227 : f32 to vector<32x128xf32>
    %621 = arith.maximumf %619, %620 : vector<32x128xf32>
    %c3_228 = arith.constant 3 : index
    %c0_229 = arith.constant 0 : index
    %c0_230 = arith.constant 0 : index
    %622 = vector.load %arg10[%c3_228, %c0_229, %c0_230] : memref<4x128x36xf32, #tpu.memory_space<vmem>>, vector<1x128x36xf32>
    %623 = vector.shape_cast %622 : vector<1x128x36xf32> to vector<128x36xf32>
    %cst_231 = arith.constant dense<0.000000e+00> : vector<32x36xf32>
    %624 = tpu.matmul %621, %623, %cst_231 {dimension_numbers = #tpu.dot_dimension_numbers<[1], [0], [0], [1], [0, 0, 1, 1], [], []>} : vector<32x128xf32>, vector<128x36xf32>, vector<32x36xf32> -> vector<32x36xf32>
    %625 = vector.broadcast %497 : vector<1x36xf32> to vector<32x36xf32>
    %626 = arith.addf %624, %625 : vector<32x36xf32>
    %627 = arith.addf %613, %626 : vector<32x36xf32>
    %cst_232 = arith.constant dense<0.000000e+00> : vector<32xf32>
    %628 = vector.multi_reduction <add>, %627, %cst_232 [1] : vector<32x36xf32> to vector<32xf32>
    %629 = vector.shape_cast %628 : vector<32xf32> to vector<32x1xf32>
    %cst_233 = arith.constant 3.600000e+01 : f32
    %630 = vector.broadcast %cst_233 : f32 to vector<32x1xf32>
    %631 = arith.divf %629, %630 : vector<32x1xf32>
    %632 = vector.broadcast %631 : vector<32x1xf32> to vector<32x36xf32>
    %633 = arith.subf %627, %632 : vector<32x36xf32>
    %634 = arith.mulf %633, %633 : vector<32x36xf32>
    %cst_234 = arith.constant dense<0.000000e+00> : vector<32xf32>
    %635 = vector.multi_reduction <add>, %634, %cst_234 [1] : vector<32x36xf32> to vector<32xf32>
    %636 = vector.shape_cast %635 : vector<32xf32> to vector<32x1xf32>
    %cst_235 = arith.constant 3.600000e+01 : f32
    %637 = vector.broadcast %cst_235 : f32 to vector<32x1xf32>
    %638 = arith.divf %636, %637 : vector<32x1xf32>
    %639 = vector.broadcast %631 : vector<32x1xf32> to vector<32x36xf32>
    %640 = arith.subf %627, %639 : vector<32x36xf32>
    %cst_236 = arith.constant 9.99999974E-6 : f32
    %641 = vector.broadcast %cst_236 : f32 to vector<32x1xf32>
    %642 = arith.addf %638, %641 : vector<32x1xf32>
    %643 = math.rsqrt %642 : vector<32x1xf32>
    %644 = vector.broadcast %643 : vector<32x1xf32> to vector<32x36xf32>
    %645 = arith.mulf %640, %644 : vector<32x36xf32>
    %646 = vector.broadcast %498 : vector<1x36xf32> to vector<32x36xf32>
    %647 = arith.mulf %645, %646 : vector<32x36xf32>
    %648 = vector.broadcast %499 : vector<1x36xf32> to vector<32x36xf32>
    %649 = arith.addf %647, %648 : vector<32x36xf32>
    %c0_237 = arith.constant 0 : index
    %c0_238 = arith.constant 0 : index
    %650 = vector.load %arg11[%c0_237, %c0_238] : memref<36x46xf32, #tpu.memory_space<vmem>>, vector<36x46xf32>
    %cst_239 = arith.constant dense<0.000000e+00> : vector<32x46xf32>
    %651 = tpu.matmul %649, %650, %cst_239 {dimension_numbers = #tpu.dot_dimension_numbers<[1], [0], [0], [1], [0, 0, 1, 1], [], []>} : vector<32x36xf32>, vector<36x46xf32>, vector<32x46xf32> -> vector<32x46xf32>
    %c0_240 = arith.constant 0 : index
    %c0_241 = arith.constant 0 : index
    %652 = vector.load %arg12[%c0_240, %c0_241] : memref<1x46xf32, #tpu.memory_space<vmem>>, vector<1x46xf32>
    %653 = vector.broadcast %652 : vector<1x46xf32> to vector<32x46xf32>
    %654 = arith.addf %651, %653 : vector<32x46xf32>
    %cst_242 = arith.constant 0.000000e+00 : f32
    %655 = vector.broadcast %cst_242 : f32 to vector<32x46xf32>
    %656 = arith.maximumf %654, %655 : vector<32x46xf32>
    %c0_243 = arith.constant 0 : index
    %c0_244 = arith.constant 0 : index
    %657 = vector.load %arg13[%c0_243, %c0_244] : memref<51x46xf32, #tpu.memory_space<vmem>>, vector<51x46xf32>
    %c0_245 = arith.constant 0 : index
    %c0_246 = arith.constant 0 : index
    %658 = vector.load %arg14[%c0_245, %c0_246] : memref<51x1xf32, #tpu.memory_space<vmem>>, vector<51x1xf32>
    %659 = vector.extract_strided_slice %656 {offsets = [0, 0], sizes = [16, 46], strides = [1, 1]} : vector<32x46xf32> to vector<16x46xf32>
    %cst_247 = arith.constant dense<0.000000e+00> : vector<51x16xf32>
    %660 = tpu.matmul %657, %659, %cst_247 {dimension_numbers = #tpu.dot_dimension_numbers<[1], [1], [0], [0], [0, 0, 1, 0], [], []>} : vector<51x46xf32>, vector<16x46xf32>, vector<51x16xf32> -> vector<51x16xf32>
    %661 = vector.broadcast %658 : vector<51x1xf32> to vector<51x16xf32>
    %662 = arith.addf %660, %661 : vector<51x16xf32>
    %c0_248 = arith.constant 0 : index
    %c0_249 = arith.constant 0 : index
    %c0_250 = arith.constant 0 : index
    %663 = vector.load %arg15[%c0_248, %c0_249, %c0_250] : memref<2x51x16xf32, #tpu.memory_space<vmem>>, vector<1x51x16xf32>
    %664 = vector.shape_cast %663 : vector<1x51x16xf32> to vector<51x16xf32>
    %665 = vector.shape_cast %662 : vector<51x16xf32> to vector<1x51x16xf32>
    tpu.vector_store %arg15[%c0_248, %c0_249, %c0_250], %665 {strides = array<i32>} : memref<2x51x16xf32, #tpu.memory_space<vmem>>, vector<1x51x16xf32>,
    %666 = vector.extract_strided_slice %656 {offsets = [16, 0], sizes = [16, 46], strides = [1, 1]} : vector<32x46xf32> to vector<16x46xf32>
    %cst_251 = arith.constant dense<0.000000e+00> : vector<51x16xf32>
    %667 = tpu.matmul %657, %666, %cst_251 {dimension_numbers = #tpu.dot_dimension_numbers<[1], [1], [0], [0], [0, 0, 1, 0], [], []>} : vector<51x46xf32>, vector<16x46xf32>, vector<51x16xf32> -> vector<51x16xf32>
    %668 = vector.broadcast %658 : vector<51x1xf32> to vector<51x16xf32>
    %669 = arith.addf %667, %668 : vector<51x16xf32>
    %c1_252 = arith.constant 1 : index
    %c0_253 = arith.constant 0 : index
    %c0_254 = arith.constant 0 : index
    %670 = vector.load %arg15[%c1_252, %c0_253, %c0_254] : memref<2x51x16xf32, #tpu.memory_space<vmem>>, vector<1x51x16xf32>
    %671 = vector.shape_cast %670 : vector<1x51x16xf32> to vector<51x16xf32>
    %672 = vector.shape_cast %669 : vector<51x16xf32> to vector<1x51x16xf32>
    tpu.vector_store %arg15[%c1_252, %c0_253, %c0_254], %672 {strides = array<i32>} : memref<2x51x16xf32, #tpu.memory_space<vmem>>, vector<1x51x16xf32>,
    return
  }
  func.func @transform_0(%arg0: i32) -> (i32, i32, i32) {
    %c0_i32 = arith.constant 0 : i32
    %c0_i32_0 = arith.constant 0 : i32
    %c0_i32_1 = arith.constant 0 : i32
    return %arg0, %c0_i32, %c0_i32_0 : i32, i32, i32
  }
  func.func @transform_1(%arg0: i32) -> (i32, i32) {
    %c0_i32 = arith.constant 0 : i32
    %c0_i32_0 = arith.constant 0 : i32
    %c0_i32_1 = arith.constant 0 : i32
    return %c0_i32, %c0_i32_0 : i32, i32
  }
  func.func @transform_2(%arg0: i32) -> (i32, i32) {
    %c0_i32 = arith.constant 0 : i32
    %c0_i32_0 = arith.constant 0 : i32
    %c0_i32_1 = arith.constant 0 : i32
    return %c0_i32, %c0_i32_0 : i32, i32
  }
  func.func @transform_3(%arg0: i32) -> (i32, i32, i32) {
    %c0_i32 = arith.constant 0 : i32
    %c0_i32_0 = arith.constant 0 : i32
    %c0_i32_1 = arith.constant 0 : i32
    %c0_i32_2 = arith.constant 0 : i32
    return %c0_i32, %c0_i32_0, %c0_i32_1 : i32, i32, i32
  }
  func.func @transform_4(%arg0: i32) -> (i32, i32) {
    %c0_i32 = arith.constant 0 : i32
    %c0_i32_0 = arith.constant 0 : i32
    %c0_i32_1 = arith.constant 0 : i32
    return %c0_i32, %c0_i32_0 : i32, i32
  }
  func.func @transform_5(%arg0: i32) -> (i32, i32, i32) {
    %c0_i32 = arith.constant 0 : i32
    %c0_i32_0 = arith.constant 0 : i32
    %c0_i32_1 = arith.constant 0 : i32
    %c0_i32_2 = arith.constant 0 : i32
    return %c0_i32, %c0_i32_0, %c0_i32_1 : i32, i32, i32
  }
  func.func @transform_6(%arg0: i32) -> (i32, i32, i32) {
    %c0_i32 = arith.constant 0 : i32
    %c0_i32_0 = arith.constant 0 : i32
    %c0_i32_1 = arith.constant 0 : i32
    %c0_i32_2 = arith.constant 0 : i32
    return %c0_i32, %c0_i32_0, %c0_i32_1 : i32, i32, i32
  }
  func.func @transform_7(%arg0: i32) -> (i32, i32, i32) {
    %c0_i32 = arith.constant 0 : i32
    %c0_i32_0 = arith.constant 0 : i32
    %c0_i32_1 = arith.constant 0 : i32
    %c0_i32_2 = arith.constant 0 : i32
    return %c0_i32, %c0_i32_0, %c0_i32_1 : i32, i32, i32
  }
  func.func @transform_8(%arg0: i32) -> (i32, i32) {
    %c0_i32 = arith.constant 0 : i32
    %c0_i32_0 = arith.constant 0 : i32
    %c0_i32_1 = arith.constant 0 : i32
    return %c0_i32, %c0_i32_0 : i32, i32
  }
  func.func @transform_9(%arg0: i32) -> (i32, i32, i32) {
    %c0_i32 = arith.constant 0 : i32
    %c0_i32_0 = arith.constant 0 : i32
    %c0_i32_1 = arith.constant 0 : i32
    %c0_i32_2 = arith.constant 0 : i32
    return %c0_i32, %c0_i32_0, %c0_i32_1 : i32, i32, i32
  }
  func.func @transform_10(%arg0: i32) -> (i32, i32) {
    %c0_i32 = arith.constant 0 : i32
    %c0_i32_0 = arith.constant 0 : i32
    %c0_i32_1 = arith.constant 0 : i32
    return %c0_i32, %c0_i32_0 : i32, i32
  }
  func.func @transform_11(%arg0: i32) -> (i32, i32) {
    %c0_i32 = arith.constant 0 : i32
    %c0_i32_0 = arith.constant 0 : i32
    %c0_i32_1 = arith.constant 0 : i32
    return %c0_i32, %c0_i32_0 : i32, i32
  }
  func.func @transform_12(%arg0: i32) -> (i32, i32) {
    %c0_i32 = arith.constant 0 : i32
    %c0_i32_0 = arith.constant 0 : i32
    %c0_i32_1 = arith.constant 0 : i32
    return %c0_i32, %c0_i32_0 : i32, i32
  }
  func.func @transform_13(%arg0: i32) -> (i32, i32) {
    %c0_i32 = arith.constant 0 : i32
    %c0_i32_0 = arith.constant 0 : i32
    %c0_i32_1 = arith.constant 0 : i32
    return %c0_i32, %c0_i32_0 : i32, i32
  }
  func.func @transform_14(%arg0: i32) -> (i32, i32, i32) {
    %c0_i32 = arith.constant 0 : i32
    %c0_i32_0 = arith.constant 0 : i32
    %c0_i32_1 = arith.constant 0 : i32
    return %arg0, %c0_i32, %c0_i32_0 : i32, i32, i32
  }
}

</mosaic_0001>

<bundles_post_ra>
// kernel: transformer_encoder_forward.1
= control target key start
LH: loop header
LB: loop body
LE: loop exit
PB: predicated region body
PF: predicated region fallthrough
CT: control target
= control target key end

     0   :  { %vm74_vm0 = vcmask 130048   ;;  %v47_v0 = vlaneseq  ;;  %v9213_v14 = vmov 0.0   ;;  %vm184_vm3 = vcmask 1042432   ;;  %s9214_s19 = smov 92   ;;  %s9215_s20 = smov 74   ;;  %s10787_s0 = inlined_call_operand.vmem [shape: f32[2,51,16], index: 0, kind: input, shape index: {}]   ;;  %s10788_s2 = inlined_call_operand.vmem [shape: f32[51,36], index: 2, kind: input, shape index: {}]   ;;  %s10789_s3 = inlined_call_operand.vmem [shape: f32[4,36,108], index: 3, kind: input, shape index: {}]   ;;  %s10790_s1 = inlined_call_operand.vmem [shape: f32[16,36], index: 1, kind: input, shape index: {}]   ;;  %s10791_s4 = inlined_call_operand.vmem [shape: f32[4,108], index: 4, kind: input, shape index: {}]   ;;  %s10792_s5 = inlined_call_operand.vmem [shape: f32[8,18,36], index: 5, kind: input, shape index: {}]   ;;  %s10793_s6 = inlined_call_operand.vmem [shape: f32[4,6,36], index: 6, kind: input, shape index: {}]   ;;  %s10794_s7 = inlined_call_operand.vmem [shape: f32[4,36,128], index: 7, kind: input, shape index: {}]   ;;  %s10795_s9 = inlined_call_operand.vmem [shape: f32[4,128,36], index: 9, kind: input, shape index: {}]   ;;  %s10796_s8 = inlined_call_operand.vmem [shape: f32[4,128], index: 8, kind: input, shape index: {}]   ;;  %s10797_s10 = inlined_call_operand.vmem [shape: f32[36,46], index: 10, kind: input, shape index: {}]   ;;  %s10798_s13 = inlined_call_operand.vmem [shape: f32[51,1], index: 13, kind: input, shape index: {}]   ;;  %s10799_s11 = inlined_call_operand.vmem [shape: f32[1,46], index: 11, kind: input, shape index: {}]   ;;  %s10800_s12 = inlined_call_operand.vmem [shape: f32[51,46], index: 12, kind: input, shape index: {}]   ;;  %s10801_s14 = inlined_call_operand.vmem [shape: f32[2,51,16], index: 14, kind: output, shape index: {}]  }
   0x1   :  { %v67_v1 = vld [vmem:[%s10787_s0] sm:$0xff]  ;;  %v68_v2 = vld [vmem:[%s10787_s0 + $0x8] sm:$0xff]  ;;  %vm9305_vm1 = vmpackc.low %vm74_vm0, %vm74_vm0  ;;  %vm177_vm5 = vcmask 416768   ;;  %vm459_vm6 = vcmask 293888   ;;  %vm472_vm7 = vcmask 1043456   ;;  %vm567_vm8 = vcmask 146432  }
   0x2   :  { %v8358_v4 = vpack.c.bf16 %v68_v2, %v67_v1  ;;  %v69_v5 = vld [vmem:[%s10787_s0 + $0x10] sm:$0xff]  ;;  %v70_v6 = vld [vmem:[%s10787_s0 + $0x18] sm:$0xff]  ;;  %v9315_v7 = vshrl.u32 %v47_v0, 7  ;;  %v51_v8 = vand.u32 127, %v47_v0  ;;  %v60_v10 = vld [vmem:[%s10788_s2] sm:$0xff]  ;;  %s9216_s21 = smov 110  }
   0x3   :  { %v8364_v9 = vpack.c.bf16 %v70_v6, %v69_v5  ;;  %v61_v11 = vld [vmem:[%s10788_s2 + $0x8] sm:$0xff]  ;;  %v62_v12 = vld [vmem:[%s10788_s2 + $0x10] sm:$0xff]  ;;  %v63_v13 = vld [vmem:[%s10788_s2 + $0x18] sm:$0xff]  ;;  %s9217_s22 = smov 56   ;;  %vm977_vm10 = vcmask 1041408   ;;  %s9218_s27 = smov 38  }
   0x4   :  { %8360 = vmatprep.subr.msk.bf16.mxu0 %vm9305_vm1, %v8358_v4  ;;  %vm52_vm2 = vcmp.eq.s32.totalorder %v9315_v7, %v51_v8  ;;  %v8376_v16 = vpack.c.bf16 %v61_v11, %v60_v10  ;;  %v8380_v17 = vpack.c.bf16 %v63_v13, %v62_v12  ;;  %v64_v18 = vld [vmem:[%s10788_s2 + $0x20] sm:$0xff]  ;;  %v65_v19 = vld [vmem:[%s10788_s2 + $0x28] sm:$0xff]  ;;  %v66_v24 = vld [vmem:[%s10788_s2 + $0x30] sm:$0x7]  ;;  %v49_v26 = vadd.s32 8, %v9315_v7 }
   0x5   :  { %8363 = vmatpush3.bf16.xpose.msk.msra.mxu0 %vm9305_vm1, %v8358_v4  ;;  %v6875_v15 = vsel %vm52_vm2, 1.0, %v9213_v14  ;;  %v71_v20 = vld [vmem:[%s10787_s0 + $0x20] sm:$0xff]  ;;  %v72_v21 = vld [vmem:[%s10787_s0 + $0x28] sm:$0xff]  ;;  %v8384_v22 = vpack.c.bf16 %v65_v19, %v64_v18  ;;  %v73_v25 = vld [vmem:[%s10787_s0 + $0x30] sm:$0x7]  ;;  %vm9220_vm11 = vmmov 0  }
   0x6   :  { %8366 = vmatprep.subr.msk.bf16.mxu0 %vm9305_vm1, %v8364_v9  ;;  %7638 = vmatprep.mubr.msk.f32.mxu0 %vm74_vm0, %v6875_v15  ;;  %v8370_v23 = vpack.c.bf16 %v72_v21, %v71_v20  ;;  %vm53_vm4 = vcmp.eq.s32.totalorder %v49_v26, %v51_v8  ;;  %v6889_v28 = vld [vmem:[%s10787_s0 + $0x38] sm:$0xff]  ;;  %v6890_v29 = vld [vmem:[%s10787_s0 + $0x40] sm:$0xff]  ;;  %v6891_v31 = vld [vmem:[%s10787_s0 + $0x48] sm:$0xff]  ;;  %vm6621_vm12 = vcmask 375808   ;;  %vm6755_vm14 = vcmask 124928  }
   0x7   :  { %8377 = vmatprep.subr.bf16.mxu1 %v8376_v16  ;;  %v6876_v27 = vsel %vm53_vm4, 1.0, %v9213_v14  ;;  %v8388_v30 = vpack.c.bf16 %v6890_v29, %v6889_v28  ;;  %v6892_v32 = vld [vmem:[%s10787_s0 + $0x50] sm:$0xff]  ;;  %v6893_v36 = vld [vmem:[%s10787_s0 + $0x58] sm:$0xff]  ;;  %v6894_v37 = vld [vmem:[%s10787_s0 + $0x60] sm:$0xff] }
   0x8   :  { %8379 = vmatpush3.bf16.msra.mxu1 %v8376_v16  ;;  %v8394_v35 = vpack.c.bf16 %v6892_v32, %v6891_v31  ;;  %v8400_v38 = vpack.c.bf16 %v6894_v37, %v6893_v36  ;;  %v6895_v39 = vld [vmem:[%s10787_s0 + $0x68] sm:$0x7]  ;;  %v449_v40 = vld [vmem:[%s10789_s3] sm:$0xff]  ;;  %v451_v45 = vld [vmem:[%s10789_s3 + $0x10] sm:$0xff] }
   0x9   :  { %8381 = vmatprep.subr.bf16.mxu1 %v8380_v17  ;;  %v450_v41 = vld [vmem:[%s10789_s3 + $0x8] sm:$0xff]  ;;  %v452_v46 = vld [vmem:[%s10789_s3 + $0x18] sm:$0xff]  ;;  %v58_v47 = vld [vmem:[%s10790_s1] sm:$0xff] }
   0xa   :  { %v8418_v42 = vpack.c.bf16 %v450_v41, %v449_v40  ;;  %v8422_v50 = vpack.c.bf16 %v452_v46, %v451_v45  ;;  %v453_v52 = vld [vmem:[%s10789_s3 + $0x20] sm:$0xf]  ;;  %v59_v53 = vld [vmem:[%s10790_s1 + $0x8] sm:$0xff]  ;;  %vm9461_vm9 = vmpackc.low %vm567_vm8, %vm567_vm8 }
   0xb   :  { %v6908_v59 = vld [vmem:[%s10791_s4] ss:$0 sm:$0xff]  ;;  %vm8812_vm13 = vmpackc.low %vm6621_vm12, %vm6621_vm12 }
   0xc   :  { %8383 = vmatpush3.bf16.msra.mxu1 %v8380_v17 }
   0xd   :  { %8369 = vmatpush3.bf16.xpose.msk.msra.mxu0 %vm9305_vm1, %v8364_v9  ;;  %8385 = vmatprep.subr.bf16.mxu1 %v8384_v22 }
   0xe   :  { %8372 = vmatprep.subr.msk.bf16.mxu0 %vm9305_vm1, %v8370_v23 }
  0x10   :  { %8387 = vmatpush3.bf16.msra.mxu1 %v8384_v22 }
  0x11   :  { %7653 = vmatprep.subr.msk.mxu1 %vm184_vm3, %v66_v24 }
  0x14   :  { %7654 = vmatpush3.msk.msra.mxu1 %vm184_vm3, %v66_v24 }
  0x15   :  { %8375 = vmatpush3.bf16.xpose.msk.msra.mxu0 %vm9305_vm1, %v8370_v23  ;;  %8390 = vmatprep.subr.msk.bf16.mxu1 %vm9305_vm1, %v8388_v30 }
  0x16   :  { %7636 = vmatprep.subr.msk.mxu0 %vm74_vm0, %v73_v25 }
  0x1d   :  { %7637 = vmatpush3.xpose.msk.msra.mxu0 %vm74_vm0, %v73_v25 }
  0x1e   :  { %8407 = vmatprep.subr.bf16.mxu0 %v8376_v16 }
  0x20   :  { %7639 = vmatmul.mubr.msk.f32.vlgmr.msra.gmra.mrb[0].mxu0 %vm74_vm0, %v6876_v27 }
  0x21   :  { %8409 = vmatpush3.bf16.msra.mxu0 %v8376_v16 }
  0x22   :  { %8411 = vmatprep.subr.bf16.mxu0 %v8380_v17 }
  0x25   :  { %8413 = vmatpush3.bf16.msra.mxu0 %v8380_v17 }
  0x26   :  { %8415 = vmatprep.subr.bf16.mxu0 %v8384_v22 }
  0x29   :  { %8417 = vmatpush3.bf16.msra.mxu0 %v8384_v22 }
  0x2a   :  { %7687 = vmatprep.subr.msk.mxu0 %vm184_vm3, %v66_v24 }
  0x2d   :  { %7688 = vmatpush3.msk.msra.mxu0 %vm184_vm3, %v66_v24 }
  0x2e   :  { %8419 = vmatprep.subr.bf16.mxu0 %v8418_v42 }
  0xf3   :  { %v7640_v33 = vpop.f32.mrb[0].mxu0 }
  0xf4   :  { %v168_v34 = vpop.f32.mrb[1].mxu0 }
  0xf5   :  { %7655 = vmatprep.mubr.msk.f32.mxu1 %vm177_vm5, %v168_v34 }
  0xf6   :  { %7656 = vmatmul.mubr.msk.f32.vlgmr.msra.gmra.mrb[0].mxu1 %vm177_vm5, %v7640_v33 }
  0xf7   :  { %8393 = vmatpush3.bf16.xpose.msk.msra.mxu1 %vm9305_vm1, %v8388_v30  ;;  %7672 = vmatprep.mubr.msk.f32.mxu1 %vm74_vm0, %v6875_v15 }
  0xf8   :  { %8396 = vmatprep.subr.msk.bf16.mxu1 %vm9305_vm1, %v8394_v35 }
  0xff   :  { %8399 = vmatpush3.bf16.xpose.msk.msra.mxu1 %vm9305_vm1, %v8394_v35 }
 0x100   :  { %8402 = vmatprep.subr.msk.bf16.mxu1 %vm9305_vm1, %v8400_v38 }
 0x107   :  { %8405 = vmatpush3.bf16.xpose.msk.msra.mxu1 %vm9305_vm1, %v8400_v38 }
 0x108   :  { %7670 = vmatprep.subr.msk.mxu1 %vm74_vm0, %v6895_v39 }
 0x10f   :  { %7671 = vmatpush3.xpose.msk.msra.mxu1 %vm74_vm0, %v6895_v39 }
 0x112   :  { %7673 = vmatmul.mubr.msk.f32.vlgmr.msra.gmra.mrb[2].mxu1 %vm74_vm0, %v6876_v27 }
 0x1c9   :  { %v7657_v43 = vpop.f32.mrb[0].mxu1 }
 0x1ca   :  { %v254_v44 = vpop.f32.mrb[1].mxu1  ;;  %v9438_v54 = vadd.f32 %v7657_v43, %v59_v53 }
 0x1cb   :  { %v9425_v51 = vadd.f32 %v254_v44, %v58_v47 }
 0x1e5   :  { %v7674_v48 = vpop.f32.mrb[2].mxu1 }
 0x1e6   :  { %v358_v49 = vpop.f32.mrb[3].mxu1 }
 0x1e7   :  { %7689 = vmatprep.mubr.msk.f32.mxu0 %vm177_vm5, %v358_v49 }
 0x1e8   :  { %7690 = vmatmul.mubr.msk.f32.vlgmr.msra.gmra.mrb[2].mxu0 %vm177_vm5, %v7674_v48 }
 0x1e9   :  { %8421 = vmatpush3.bf16.msra.mxu0 %v8418_v42  ;;  %7702 = vmatprep.mubr.msk.f32.mxu0 %vm459_vm6, %v9425_v51 }
 0x1ea   :  { %8423 = vmatprep.subr.bf16.mxu0 %v8422_v50 }
 0x1ed   :  { %8425 = vmatpush3.bf16.msra.mxu0 %v8422_v50 }
 0x1ee   :  { %7700 = vmatprep.subr.msk.mxu0 %vm472_vm7, %v453_v52 }
 0x1f1   :  { %7701 = vmatpush3.msk.msra.mxu0 %vm472_vm7, %v453_v52 }
 0x1f2   :  { %7703 = vmatmul.mubr.msk.f32.vlgmr.msra.gmra.mrb[4].mxu0 %vm459_vm6, %v9438_v54 }
 0x2bb   :  { %v7691_v55 = vpop.f32.mrb[2].mxu0 }
 0x2bc   :  { %v439_v56 = vpop.f32.mrb[3].mxu0  ;;  %v9445_v58 = vadd.f32 %v7691_v55, %v59_v53 }
 0x2bd   :  { %v9443_v57 = vadd.f32 %v439_v56, %v58_v47 }
 0x2bf   :  { %7705 = vmatprep.mubr.msk.f32.mxu0 %vm459_vm6, %v9443_v57 }
 0x2c0   :  { %7706 = vmatmul.mubr.msk.f32.gmra.mrb[6].mxu0 %vm459_vm6, %v9445_v58 }
 0x2c5   :  { %v7704_v60 = vpop.f32.mrb[4].mxu0 }
 0x2c6   :  { %v548_v61 = vadd.f32 %v7704_v60, %v6908_v59  ;;  %v542_v62 = vpop.f32.mrb[5].mxu0 }
 0x2c7   :  { %v543_v63 = vadd.f32 %v6908_v59, %v542_v62 }
 0x2c9   :  { %7712 = vmatprep.mubr.msk.f32.mxu1 %vm567_vm8, %v543_v63  ;;  %v9455_v0 = vpack.i.bf16 %v548_v61, %v543_v63 }
 0x2cb   :  { %8860 = vrot.lane.b32.xlu0 %v9455_v0, %s9214_s19 }
 0x33d   :  { %v8861_v1 = vpop.permute.xlu0 %8860 }
 0x33e   :  { %v8863_v2 = vunpack.i.h.bf16 %v8861_v1  ;;  %v8862_v3 = vunpack.i.l.bf16 %v8861_v1 }
 0x340   :  { %v8426_v5 = vpack.c.bf16 %v8863_v2, %v8862_v3 }
 0x342   :  { %8428 = vmatprep.subr.msk.bf16.mxu1 %vm9461_vm9, %v8426_v5 }
 0x343   :  { %8431 = vmatpush3.bf16.xpose.msk.msra.mxu1 %vm9461_vm9, %v8426_v5 }
 0x34a   :  { %7713 = vmatmul.mubr.msk.f32.vlgmr.msra.gmra.mrb[4].mxu1 %vm567_vm8, %v548_v61 }
 0x393   :  { %v7707_v6 = vpop.f32.mrb[6].mxu0 }
 0x394   :  { %v9470_v8 = vadd.f32 %v7707_v6, %v6908_v59  ;;  %v552_v9 = vpop.f32.mrb[7].mxu0 }
 0x395   :  { %v9472_v10 = vadd.f32 %v6908_v59, %v552_v9 }
 0x397   :  { %7726 = vmatprep.mubr.msk.f32.mxu0 %vm567_vm8, %v9472_v10  ;;  %v9478_v11 = vpack.i.bf16 %v9470_v8, %v9472_v10 }
 0x399   :  { %8865 = vrot.lane.b32.xlu0 %v9478_v11, %s9214_s19 }
 0x40b   :  { %v8866_v12 = vpop.permute.xlu0 %8865 }
 0x40c   :  { %v8868_v13 = vunpack.i.h.bf16 %v8866_v12  ;;  %v8867_v15 = vunpack.i.l.bf16 %v8866_v12 }
 0x40e   :  { %v8436_v16 = vpack.c.bf16 %v8868_v13, %v8867_v15  ;;  %v962_v15 = vld [vmem:[%s10792_s5] sm:$0xff] }
 0x410   :  { %8438 = vmatprep.subr.msk.bf16.mxu0 %vm9461_vm9, %v8436_v16 }
 0x411   :  { %8441 = vmatpush3.bf16.xpose.msk.msra.mxu0 %vm9461_vm9, %v8436_v16  ;;  %v963_v16 = vld [vmem:[%s10792_s5 + $0x8] sm:$0xff] }
 0x418   :  { %7727 = vmatmul.mubr.msk.f32.vlgmr.msra.gmra.mrb[8].mxu0 %vm567_vm8, %v9470_v8 }
 0x41d   :  { %v7714_v17 = vpop.f32.mrb[4].mxu1 }
 0x41e   :  { %v642_v18 = vpop.f32.mrb[5].mxu1  ;;  %v652_v20 = vmul.f32 0.23570226, %v7714_v17 }
 0x41f   :  { %v651_v19 = vmul.f32 0.23570226, %v642_v18 }
 0x420   :  { %v656_v22 = vsel %vm74_vm0, %v652_v20, -inf }
 0x421   :  { %v653_v21 = vsel %vm74_vm0, %v651_v19, -inf }
 0x422   :  { %654 = vmax.xlane.f32.xlu1 %v653_v21 }
 0x426   :  { %657 = vmax.xlane.f32.xlu1 %v656_v22 }
 0x4af   :  { %v655_v23 = vpop.xlane.xlu1 %654 }
 0x4b0   :  { %v659_v35 = vsub.f32 %v651_v19, %v655_v23 }
 0x4b2   :  { %v661_v36 = vmul.f32 1.442695, %v659_v35 }
 0x4b3   :  { %v658_v24 = vpop.xlane.xlu1 %657 }
 0x4b4   :  { %v660_v25 = vsub.f32 %v652_v20, %v658_v24  ;;  %v8446_v20 = vpack.c.bf16 %v963_v16, %v962_v15  ;;  %v6945_v15 = vld [vmem:[%s10792_s5 + $0x28] sm:$0x3] }
 0x4b6   :  { %v663_v26 = vmul.f32 1.442695, %v660_v25 }
 0x4b8   :  { %9021 = vpow2.f32 %v663_v26  ;;  %v964_v26 = vld [vmem:[%s10792_s5 + $0x10] sm:$0x3] }
 0x4b9   :  { %9023 = vpow2.f32 %v661_v36 }
 0x4c2   :  { %v9022_v33 = vpop.eup %9021 }
 0x4c3   :  { %v668_v34 = vsel %vm74_vm0, %v9022_v33, 0.0  ;;  %v9024_v37 = vpop.eup %9023 }
 0x4c4   :  { %v665_v38 = vsel %vm74_vm0, %v9024_v37, 0.0 }
 0x4eb   :  { %v7728_v27 = vpop.f32.mrb[8].mxu0 }
 0x4ec   :  { %v852_v28 = vmul.f32 0.23570226, %v7728_v27  ;;  %v842_v29 = vpop.f32.mrb[9].mxu0 }
 0x4ed   :  { %v851_v30 = vmul.f32 0.23570226, %v842_v29 }
 0x4ee   :  { %v856_v31 = vsel %vm74_vm0, %v852_v28, -inf }
 0x4ef   :  { %857 = vmax.xlane.f32.xlu1 %v856_v31  ;;  %v853_v32 = vsel %vm74_vm0, %v851_v30, -inf }
 0x4f0   :  { %854 = vmax.xlane.f32.xlu0 %v853_v32 }
 0x4f4   :  { %669 = vadd.xlane.f32.xlu0 %v668_v34 }
 0x500   :  { %8870 = vrot.lane.b32.xlu1 %v9455_v0, %s9215_s20 }
 0x504   :  { %1074 = vrot.lane.b32.xlu1 %v543_v63, %s9216_s21 }
 0x508   :  { %1076 = vrot.lane.b32.xlu1 %v548_v61, %s9216_s21 }
 0x50a   :  { %8875 = vrot.lane.b32.xlu0 %v9455_v0, %s9217_s22 }
 0x52c   :  { %666 = vadd.xlane.f32.xlu1 %v665_v38 }
 0x53d   :  { %8885 = vrot.lane.b32.xlu1 %v9478_v11, %s9215_s20 }
 0x57c   :  { %v858_v39 = vpop.xlane.xlu1 %857 }
 0x57d   :  { %v860_v40 = vsub.f32 %v852_v28, %v858_v39  ;;  %v855_v41 = vpop.xlane.xlu0 %854 }
 0x57e   :  { %v859_v42 = vsub.f32 %v851_v30, %v855_v41 }
 0x57f   :  { %v863_v43 = vmul.f32 1.442695, %v860_v40 }
 0x580   :  { %v861_v44 = vmul.f32 1.442695, %v859_v42  ;;  %v8871_v45 = vpop.permute.xlu1 %8870 }
 0x581   :  { %9025 = vpow2.f32 %v863_v43  ;;  %v8873_v46 = vunpack.i.h.bf16 %v8871_v45  ;;  %v8872_v47 = vunpack.i.l.bf16 %v8871_v45  ;;  %v670_v48 = vpop.xlane.xlu0 %669 }
 0x582   :  { %9027 = vpow2.f32 %v861_v44 }
 0x583   :  { %v8450_v49 = vpack.c.bf16 %v8873_v46, %v8872_v47  ;;  %9029 = vrcp.f32 %v670_v48 }
 0x584   :  { %v1075_v50 = vpop.permute.xlu1 %1074 }
 0x585   :  { %v8876_v52 = vpop.permute.xlu0 %8875  ;;  %8452 = vmatprep.subr.msk.bf16.mxu0 %vm9461_vm9, %v8450_v49  ;;  %7752 = vmatprep.mubr.msk.f32.mxu0 %vm567_vm8, %v1075_v50 }
 0x586   :  { %v8878_v53 = vunpack.i.h.bf16 %v8876_v52  ;;  %v8877_v55 = vunpack.i.l.bf16 %v8876_v52  ;;  %8455 = vmatpush3.bf16.xpose.msk.msra.mxu0 %vm9461_vm9, %v8450_v49 }
 0x588   :  { %v8432_v56 = vpack.c.bf16 %v8878_v53, %v8877_v55  ;;  %v1077_v60 = vpop.permute.xlu1 %1076 }
 0x58a   :  { %8433 = vmatprep.subr.bf16.mxu1 %v8432_v56 }
 0x58b   :  { %v9026_v59 = vpop.eup %9025  ;;  %8435 = vmatpush3.bf16.msra.mxu1 %v8432_v56 }
 0x58c   :  { %v868_v61 = vsel %vm74_vm0, %v9026_v59, 0.0  ;;  %v9028_v62 = vpop.eup %9027 }
 0x58d   :  { %869 = vadd.xlane.f32.xlu0 %v868_v61  ;;  %7753 = vmatmul.mubr.msk.f32.vlgmr.msra.gmra.mrb[10].mxu0 %vm567_vm8, %v1077_v60  ;;  %v865_v63 = vsel %vm74_vm0, %v9028_v62, 0.0  ;;  %v9030_v2 = vpop.eup %9029 }
 0x58e   :  { %v674_v6 = vmul.f32 %v9030_v2, %v9022_v33 }
 0x591   :  { %866 = vadd.xlane.f32.xlu0 %v865_v63 }
 0x5a7   :  { %8880 = vrot.lane.b32.xlu0 %v9478_v11, %s9217_s22 }
 0x5b9   :  { %v667_v1 = vpop.xlane.xlu1 %666 }
 0x5ba   :  { %9031 = vrcp.f32 %v667_v1 }
 0x5bd   :  { %v8886_v23 = vpop.permute.xlu1 %8885 }
 0x5be   :  { %v8888_v27 = vunpack.i.h.bf16 %v8886_v23  ;;  %v8887_v28 = vunpack.i.l.bf16 %v8886_v23 }
 0x5c0   :  { %v8460_v29 = vpack.c.bf16 %v8888_v27, %v8887_v28 }
 0x5c4   :  { %v9032_v3 = vpop.eup %9031 }
 0x5c5   :  { %v673_v5 = vmul.f32 %v9032_v3, %v9024_v37 }
 0x5c7   :  { %7719 = vmatprep.mubr.msk.f32.mxu1 %vm74_vm0, %v673_v5 }
 0x5c8   :  { %7720 = vmatmul.mubr.msk.f32.vlgmr.msra.gmra.mrb[6].mxu1 %vm74_vm0, %v674_v6 }
 0x61a   :  { %v870_v9 = vpop.xlane.xlu0 %869 }
 0x61b   :  { %9033 = vrcp.f32 %v870_v9  ;;  %v6943_v9 = vld [vmem:[%s10792_s5 + $0x18] sm:$0xff] }
 0x61e   :  { %v867_v12 = vpop.xlane.xlu0 %866 }
 0x61f   :  { %9035 = vrcp.f32 %v867_v12  ;;  %v6944_v12 = vld [vmem:[%s10792_s5 + $0x20] sm:$0xff] }
 0x622   :  { %v8881_v13 = vpop.permute.xlu0 %8880 }
 0x623   :  { %v8883_v17 = vunpack.i.h.bf16 %v8881_v13  ;;  %v8882_v18 = vunpack.i.l.bf16 %v8881_v13  ;;  %v8470_v13 = vpack.c.bf16 %v6944_v12, %v6943_v9  ;;  %v1776_v12 = vld [vmem:[%s10795_s9 + $0x18] sm:$0xff] }
 0x625   :  { %v8442_v19 = vpack.c.bf16 %v8883_v17, %v8882_v18  ;;  %v9034_v21 = vpop.eup %9033 }
 0x626   :  { %v874_v25 = vmul.f32 %v9034_v21, %v9026_v59 }
 0x627   :  { %8443 = vmatprep.subr.bf16.mxu1 %v8442_v19 }
 0x628   :  { %8445 = vmatpush3.bf16.msra.mxu1 %v8442_v19 }
 0x629   :  { %v9036_v22 = vpop.eup %9035  ;;  %8447 = vmatprep.subr.bf16.mxu1 %v8446_v20 }
 0x62a   :  { %v873_v24 = vmul.f32 %v9036_v22, %v9028_v62 }
 0x62c   :  { %7733 = vmatprep.mubr.msk.f32.mxu1 %vm74_vm0, %v873_v24 }
 0x62d   :  { %7734 = vmatmul.mubr.msk.f32.vlgmr.msra.gmra.mrb[8].mxu1 %vm74_vm0, %v874_v25 }
 0x62e   :  { %8449 = vmatpush3.bf16.msra.mxu1 %v8446_v20 }
 0x62f   :  { %7740 = vmatprep.subr.msk.mxu1 %vm977_vm10, %v964_v26 }
 0x632   :  { %7741 = vmatpush3.msk.msra.mxu1 %vm977_vm10, %v964_v26 }
 0x633   :  { %8462 = vmatprep.subr.msk.bf16.mxu1 %vm9461_vm9, %v8460_v29 }
 0x660   :  { %v7754_v30 = vpop.f32.mrb[10].mxu0 }
 0x661   :  { %v1166_v31 = vmul.f32 0.23570226, %v7754_v30  ;;  %v1156_v32 = vpop.f32.mrb[11].mxu0 }
 0x662   :  { %v1165_v33 = vmul.f32 0.23570226, %v1156_v32 }
 0x663   :  { %v1170_v34 = vsel %vm74_vm0, %v1166_v31, -inf }
 0x664   :  { %1171 = vmax.xlane.f32.xlu1 %v1170_v34  ;;  %v1167_v35 = vsel %vm74_vm0, %v1165_v33, -inf }
 0x665   :  { %1168 = vmax.xlane.f32.xlu0 %v1167_v35 }
 0x675   :  { %1278 = vrot.lane.b32.xlu1 %v9470_v8, %s9216_s21 }
 0x67b   :  { %1276 = vrot.lane.b32.xlu0 %v9472_v10, %s9216_s21 }
 0x69b   :  { %v7721_v36 = vpop.f32.mrb[6].mxu1 }
 0x69c   :  { %v753_v37 = vpop.f32.mrb[7].mxu1 }
 0x69d   :  { %7742 = vmatprep.mubr.msk.f32.mxu1 %vm567_vm8, %v753_v37 }
 0x69e   :  { %7743 = vmatmul.mubr.msk.f32.vlgmr.msra.gmra.mrb[10].mxu1 %vm567_vm8, %v7721_v36 }
 0x69f   :  { %8465 = vmatpush3.bf16.xpose.msk.msra.mxu1 %vm9461_vm9, %v8460_v29 }
 0x6a0   :  { %8471 = vmatprep.subr.bf16.mxu1 %v8470_v13 }
 0x6f1   :  { %v1172_v38 = vpop.xlane.xlu1 %1171 }
 0x6f2   :  { %v1174_v39 = vsub.f32 %v1166_v31, %v1172_v38  ;;  %v1169_v40 = vpop.xlane.xlu0 %1168  ;;  %v9576_v38 = vld [vmem:[%s10793_s6] sm:$0x3f] }
 0x6f3   :  { %v1173_v41 = vsub.f32 %v1165_v33, %v1169_v40 }
 0x6f4   :  { %v1177_v42 = vmul.f32 1.442695, %v1174_v39 }
 0x6f5   :  { %v1175_v43 = vmul.f32 1.442695, %v1173_v41  ;;  %v1279_v49 = vpop.permute.xlu1 %1278 }
 0x6f6   :  { %9037 = vpow2.f32 %v1177_v42  ;;  %v1277_v48 = vpop.permute.xlu0 %1276 }
 0x6f7   :  { %9039 = vpow2.f32 %v1175_v43 }
 0x700   :  { %v9038_v8 = vpop.eup %9037  ;;  %v7735_v44 = vpop.f32.mrb[8].mxu1 }
 0x701   :  { %v9040_v10 = vpop.eup %9039  ;;  %v953_v45 = vpop.f32.mrb[9].mxu1  ;;  %v1182_v46 = vsel %vm74_vm0, %v9038_v8, 0.0 }
 0x702   :  { %7745 = vmatprep.mubr.msk.f32.mxu1 %vm567_vm8, %v953_v45  ;;  %1183 = vadd.xlane.f32.xlu1 %v1182_v46  ;;  %v1179_v47 = vsel %vm74_vm0, %v9040_v10, 0.0 }
 0x703   :  { %7746 = vmatmul.mubr.msk.f32.gmra.mrb[12].mxu1 %vm567_vm8, %v7735_v44  ;;  %1180 = vadd.xlane.f32.xlu0 %v1179_v47 }
 0x704   :  { %7766 = vmatprep.mubr.msk.f32.mxu1 %vm567_vm8, %v1277_v48 }
 0x707   :  { %7767 = vmatmul.mubr.msk.f32.vlgmr.msra.gmra.mrb[14].mxu1 %vm567_vm8, %v1279_v49 }
 0x708   :  { %8473 = vmatpush3.bf16.msra.mxu1 %v8470_v13 }
 0x709   :  { %7780 = vmatprep.subr.msk.mxu1 %vm977_vm10, %v6945_v15 }
 0x70c   :  { %7781 = vmatpush3.msk.msra.mxu1 %vm977_vm10, %v6945_v15  ;;  %v1777_v15 = vld [vmem:[%s10795_s9 + $0x20] sm:$0xff] }
 0x719   :  { %8890 = vrot.lane.b32.xlu0 %v9455_v0, %s9218_s27 }
 0x78f   :  { %v1184_v50 = vpop.xlane.xlu1 %1183 }
 0x790   :  { %9041 = vrcp.f32 %v1184_v50  ;;  %v1181_v52 = vpop.xlane.xlu0 %1180 }
 0x791   :  { %9043 = vrcp.f32 %v1181_v52 }
 0x794   :  { %v8891_v53 = vpop.permute.xlu0 %8890 }
 0x795   :  { %v8893_v55 = vunpack.i.h.bf16 %v8891_v53  ;;  %v8892_v56 = vunpack.i.l.bf16 %v8891_v53 }
 0x797   :  { %v8456_v59 = vpack.c.bf16 %v8893_v55, %v8892_v56 }
 0x799   :  { %8457 = vmatprep.subr.bf16.mxu0 %v8456_v59 }
 0x79a   :  { %v9042_v60 = vpop.eup %9041  ;;  %8459 = vmatpush3.bf16.msra.mxu0 %v8456_v59 }
 0x79b   :  { %v9044_v61 = vpop.eup %9043  ;;  %v1188_v63 = vmul.f32 %v9042_v60, %v9038_v8  ;;  %v1659_v60 = vld [vmem:[%s10794_s7] sm:$0xff] }
 0x79c   :  { %v1187_v62 = vmul.f32 %v9044_v61, %v9040_v10  ;;  %v1660_v61 = vld [vmem:[%s10794_s7 + $0x8] sm:$0xff] }
 0x79e   :  { %7759 = vmatprep.mubr.msk.f32.mxu0 %vm74_vm0, %v1187_v62  ;;  %v8474_v62 = vpack.c.bf16 %v1660_v61, %v1659_v60  ;;  %v9702_v61 = vld [vmem:[%s10796_s8] ss:$0 sm:$0xff] }
 0x79f   :  { %7760 = vmatmul.mubr.msk.f32.vlgmr.msra.gmra.mrb[12].mxu0 %vm74_vm0, %v1188_v63  ;;  %v1661_v63 = vld [vmem:[%s10794_s7 + $0x10] sm:$0xff] }
 0x7da   :  { %v7768_v1 = vpop.f32.mrb[14].mxu1 }
 0x7db   :  { %v1368_v0 = vmul.f32 0.23570226, %v7768_v1  ;;  %v1358_v2 = vpop.f32.mrb[15].mxu1  ;;  %v1662_v1 = vld [vmem:[%s10794_s7 + $0x18] sm:$0xff] }
 0x7dc   :  { %v1367_v3 = vmul.f32 0.23570226, %v1358_v2  ;;  %v1663_v2 = vld [vmem:[%s10794_s7 + $0x20] sm:$0xf] }
 0x7dd   :  { %v1372_v5 = vsel %vm74_vm0, %v1368_v0, -inf }
 0x7de   :  { %1373 = vmax.xlane.f32.xlu0 %v1372_v5  ;;  %v1369_v6 = vsel %vm74_vm0, %v1367_v3, -inf  ;;  %v1774_v5 = vld [vmem:[%s10795_s9 + $0x8] sm:$0xff] }
 0x7df   :  { %1370 = vmax.xlane.f32.xlu1 %v1369_v6  ;;  %v1775_v6 = vld [vmem:[%s10795_s9 + $0x10] sm:$0xff] }
 0x7e0   :  { %v8486_v13 = vpack.c.bf16 %v1776_v12, %v1775_v6 }
 0x86b   :  { %v1374_v16 = vpop.xlane.xlu0 %1373 }
 0x86c   :  { %v1376_v17 = vsub.f32 %v1368_v0, %v1374_v16  ;;  %v1371_v18 = vpop.xlane.xlu1 %1370  ;;  %v8478_v0 = vpack.c.bf16 %v1662_v1, %v1661_v63  ;;  %v1778_v16 = vld [vmem:[%s10795_s9 + $0x28] sm:$0xff] }
 0x86d   :  { %v1375_v19 = vsub.f32 %v1367_v3, %v1371_v18  ;;  %v1773_v3 = vld [vmem:[%s10795_s9] sm:$0xff]  ;;  %v1779_v18 = vld [vmem:[%s10795_s9 + $0x30] sm:$0xff] }
 0x86e   :  { %v1379_v20 = vmul.f32 1.442695, %v1376_v17  ;;  %v8482_v9 = vpack.c.bf16 %v1774_v5, %v1773_v3  ;;  %v8490_v17 = vpack.c.bf16 %v1778_v16, %v1777_v15 }
 0x86f   :  { %v1377_v21 = vmul.f32 1.442695, %v1375_v19  ;;  %v1780_v19 = vld [vmem:[%s10795_s9 + $0x38] sm:$0xff] }
 0x870   :  { %9045 = vpow2.f32 %v1379_v20  ;;  %8483 = vmatprep.subr.bf16.mxu1 %v8482_v9  ;;  %v8494_v20 = vpack.c.bf16 %v1780_v19, %v1779_v18 }
 0x871   :  { %9047 = vpow2.f32 %v1377_v21  ;;  %v1781_v21 = vld [vmem:[%s10795_s9 + $0x40] sm:$0xff] }
 0x872   :  { %v7761_v22 = vpop.f32.mrb[12].mxu0 }
 0x873   :  { %v1267_v23 = vpop.f32.mrb[13].mxu0 }
 0x874   :  { %7782 = vmatprep.mubr.msk.f32.mxu1 %vm567_vm8, %v1267_v23 }
 0x875   :  { %7783 = vmatmul.mubr.msk.f32.vlgmr.msra.gmra.mrb[10].mxu1 %vm567_vm8, %v7761_v22  ;;  %v1782_v22 = vld [vmem:[%s10795_s9 + $0x48] sm:$0xff] }
 0x876   :  { %8485 = vmatpush3.bf16.msra.mxu1 %v8482_v9  ;;  %v8498_v23 = vpack.c.bf16 %v1782_v22, %v1781_v21 }
 0x877   :  { %8487 = vmatprep.subr.bf16.mxu1 %v8486_v13 }
 0x87a   :  { %v9046_v24 = vpop.eup %9045  ;;  %8489 = vmatpush3.bf16.msra.mxu1 %v8486_v13 }
 0x87b   :  { %v1384_v25 = vsel %vm74_vm0, %v9046_v24, 0.0  ;;  %v9048_v26 = vpop.eup %9047  ;;  %8491 = vmatprep.subr.bf16.mxu1 %v8490_v17 }
 0x87c   :  { %1385 = vadd.xlane.f32.xlu1 %v1384_v25  ;;  %v1381_v27 = vsel %vm74_vm0, %v9048_v26, 0.0  ;;  %v1784_v25 = vld [vmem:[%s10795_s9 + $0x58] sm:$0xff] }
 0x87e   :  { %8493 = vmatpush3.bf16.msra.mxu1 %v8490_v17 }
 0x87f   :  { %8495 = vmatprep.subr.bf16.mxu1 %v8494_v20 }
 0x880   :  { %1382 = vadd.xlane.f32.xlu1 %v1381_v27 }
 0x882   :  { %8497 = vmatpush3.bf16.msra.mxu1 %v8494_v20 }
 0x883   :  { %8499 = vmatprep.subr.bf16.mxu1 %v8498_v23 }
 0x886   :  { %8501 = vmatpush3.bf16.msra.mxu1 %v8498_v23 }
 0x891   :  { %8895 = vrot.lane.b32.xlu1 %v9478_v11, %s9218_s27  ;;  %v9571_v11 = vsub.s32 0, %v9315_v7 }
 0x893   :  { %v9580_v39 = vrot.slane %v9576_v38, %v9571_v11 }
 0x909   :  { %v1386_v28 = vpop.xlane.xlu1 %1385 }
 0x90a   :  { %9049 = vrcp.f32 %v1386_v28 }
 0x90d   :  { %v1383_v29 = vpop.xlane.xlu1 %1382 }
 0x90e   :  { %9051 = vrcp.f32 %v1383_v29 }
 0x911   :  { %v8896_v30 = vpop.permute.xlu1 %8895 }
 0x912   :  { %v8898_v31 = vunpack.i.h.bf16 %v8896_v30  ;;  %v8897_v32 = vunpack.i.l.bf16 %v8896_v30 }
 0x914   :  { %v8466_v33 = vpack.c.bf16 %v8898_v31, %v8897_v32  ;;  %v9050_v34 = vpop.eup %9049 }
 0x915   :  { %v1390_v37 = vmul.f32 %v9050_v34, %v9046_v24  ;;  %v1783_v24 = vld [vmem:[%s10795_s9 + $0x50] sm:$0xff]  ;;  %v9657_v34 = vsub.s32 2, %v9315_v7 }
 0x916   :  { %8467 = vmatprep.subr.bf16.mxu0 %v8466_v33 }
 0x917   :  { %8469 = vmatpush3.bf16.msra.mxu0 %v8466_v33  ;;  %v9654_v33 = vsub.s32 1, %v9315_v7 }
 0x918   :  { %v9052_v35 = vpop.eup %9051  ;;  %8475 = vmatprep.subr.bf16.mxu0 %v8474_v62 }
 0x919   :  { %v1389_v36 = vmul.f32 %v9052_v35, %v9048_v26  ;;  %v8502_v26 = vpack.c.bf16 %v1784_v25, %v1783_v24  ;;  %v9661_v35 = vrot.slane %v9576_v38, %v9654_v33 }
 0x91b   :  { %7773 = vmatprep.mubr.msk.f32.mxu0 %vm74_vm0, %v1389_v36  ;;  %8503 = vmatprep.subr.bf16.mxu1 %v8502_v26 }
 0x91c   :  { %7774 = vmatmul.mubr.msk.f32.vlgmr.msra.gmra.mrb[14].mxu0 %vm74_vm0, %v1390_v37  ;;  %8505 = vmatpush3.bf16.msra.mxu1 %v8502_v26 }
 0x91d   :  { %8477 = vmatpush3.bf16.msra.mxu0 %v8474_v62 }
 0x91e   :  { %8479 = vmatprep.subr.bf16.mxu0 %v8478_v0 }
 0x921   :  { %8481 = vmatpush3.bf16.msra.mxu0 %v8478_v0 }
 0x922   :  { %7796 = vmatprep.subr.msk.mxu0 %vm472_vm7, %v1663_v2 }
 0x925   :  { %7797 = vmatpush3.msk.msra.mxu0 %vm472_vm7, %v1663_v2 }
 0x948   :  { %v7784_v40 = vpop.f32.mrb[10].mxu1 }
 0x949   :  { %v8818_v41 = vadd.f32 %v7784_v40, %v9580_v39  ;;  %v1563_v42 = vpop.f32.mrb[11].mxu1  ;;  %v9666_v40 = vrot.slane %v9576_v38, %v9657_v34 }
 0x94a   :  { %v8819_v43 = vadd.f32 %v1563_v42, %v9580_v39 }
 0x94b   :  { %v1587_v8 = vadd.f32 %v8818_v41, %v9438_v54 }
 0x94c   :  { %v1586_v44 = vadd.f32 %v8819_v43, %v9425_v51 }
 0x94d   :  { %v1593_v10 = vsel %vm459_vm6, %v1587_v8, 0.0 }
 0x94e   :  { %1594 = vadd.xlane.f32.xlu0 %v1593_v10  ;;  %v1590_v45 = vsel %vm459_vm6, %v1586_v44, 0.0 }
 0x94f   :  { %1591 = vadd.xlane.f32.xlu1 %v1590_v45 }
 0x9db   :  { %v1595_v46 = vpop.xlane.xlu0 %1594 }
 0x9dc   :  { %v1604_v47 = vmul.f32 0.027777778, %v1595_v46  ;;  %v1592_v48 = vpop.xlane.xlu1 %1591 }
 0x9dd   :  { %v1603_v49 = vmul.f32 0.027777778, %v1592_v48 }
 0x9de   :  { %v9588_v50 = vsub.f32 %v1587_v8, %v1604_v47 }
 0x9df   :  { %v9590_v52 = vsub.f32 %v1586_v44, %v1603_v49 }
 0x9e0   :  { %v1612_v51 = vmul.f32 %v9588_v50, %v9588_v50 }
 0x9e1   :  { %v1611_v53 = vmul.f32 %v9590_v52, %v9590_v52 }
 0x9e2   :  { %v1618_v55 = vsel %vm459_vm6, %v1612_v51, 0.0  ;;  %v1786_v51 = vld [vmem:[%s10795_s9 + $0x68] sm:$0xff] }
 0x9e3   :  { %v1615_v54 = vsel %vm459_vm6, %v1611_v53, 0.0 }
 0x9e4   :  { %1616 = vadd.xlane.f32.xlu0 %v1615_v54  ;;  %v1785_v54 = vld [vmem:[%s10795_s9 + $0x60] sm:$0xff] }
 0x9e8   :  { %1619 = vadd.xlane.f32.xlu0 %v1618_v55  ;;  %v8506_v55 = vpack.c.bf16 %v1786_v51, %v1785_v54 }
 0x9ea   :  { %8507 = vmatprep.subr.bf16.mxu1 %v8506_v55 }
 0x9eb   :  { %8509 = vmatpush3.bf16.msra.mxu1 %v8506_v55 }
 0x9ef   :  { %v7775_v56 = vpop.f32.mrb[14].mxu0 }
 0x9f0   :  { %v1469_v59 = vpop.f32.mrb[15].mxu0 }
 0x9f1   :  { %7785 = vmatprep.mubr.msk.f32.mxu1 %vm567_vm8, %v1469_v59 }
 0x9f2   :  { %7786 = vmatmul.mubr.msk.f32.gmra.mrb[12].mxu1 %vm567_vm8, %v7775_v56 }
 0xa71   :  { %v1617_v27 = vpop.xlane.xlu0 %1616 }
 0xa72   :  { %v1627_v28 = vmul.f32 0.027777778, %v1617_v27 }
 0xa74   :  { %v1631_v29 = vadd.f32 1e-05, %v1627_v28 }
 0xa75   :  { %v1620_v30 = vpop.xlane.xlu0 %1619 }
 0xa76   :  { %9053 = vrsqrt.f32 %v1631_v29  ;;  %v1628_v31 = vmul.f32 0.027777778, %v1620_v30 }
 0xa78   :  { %v1632_v32 = vadd.f32 1e-05, %v1628_v31  ;;  %v9721_v31 = vsub.s32 3, %v9315_v7 }
 0xa7a   :  { %9055 = vrsqrt.f32 %v1632_v32  ;;  %v9725_v32 = vrot.slane %v9576_v38, %v9721_v31 }
 0xa80   :  { %v9054_v36 = vpop.eup %9053 }
 0xa81   :  { %v1639_v37 = vmul.f32 %v9054_v36, %v9590_v52 }
 0xa83   :  { %v1647_v41 = vmul.f32 %v9661_v35, %v1639_v37 }
 0xa84   :  { %v9056_v42 = vpop.eup %9055 }
 0xa85   :  { %v1640_v43 = vmul.f32 %v9056_v42, %v9588_v50  ;;  %v9671_v8 = vadd.f32 %v9666_v40, %v1647_v41 }
 0xa87   :  { %7798 = vmatprep.mubr.msk.f32.mxu0 %vm459_vm6, %v9671_v8  ;;  %v1648_v44 = vmul.f32 %v9661_v35, %v1640_v43 }
 0xa89   :  { %v9677_v10 = vadd.f32 %v9666_v40, %v1648_v44 }
 0xa8b   :  { %7799 = vmatmul.mubr.msk.f32.vlgmr.msra.gmra.mrb[16].mxu0 %vm459_vm6, %v9677_v10 }
 0xac5   :  { %v7787_v45 = vpop.f32.mrb[12].mxu1 }
 0xac6   :  { %v1573_v46 = vpop.f32.mrb[13].mxu1  ;;  %v8820_v47 = vadd.f32 %v7787_v45, %v9580_v39 }
 0xac7   :  { %v8821_v48 = vadd.f32 %v1573_v46, %v9580_v39 }
 0xac8   :  { %v1589_v52 = vadd.f32 %v8820_v47, %v9445_v58  ;;  %v1788_v58 = vld [vmem:[%s10795_s9 + $0x78] sm:$0xff] }
 0xac9   :  { %v1588_v49 = vadd.f32 %v8821_v48, %v9443_v57  ;;  %v1787_v57 = vld [vmem:[%s10795_s9 + $0x70] sm:$0xff] }
 0xaca   :  { %v1599_v53 = vsel %vm459_vm6, %v1589_v52, 0.0  ;;  %v8510_v39 = vpack.c.bf16 %v1788_v58, %v1787_v57 }
 0xacb   :  { %v1596_v50 = vsel %vm459_vm6, %v1588_v49, 0.0 }
 0xacc   :  { %1597 = vadd.xlane.f32.xlu0 %v1596_v50  ;;  %8511 = vmatprep.subr.bf16.mxu1 %v8510_v39 }
 0xacd   :  { %8513 = vmatpush3.bf16.msra.mxu1 %v8510_v39 }
 0xad0   :  { %1600 = vadd.xlane.f32.xlu0 %v1599_v53 }
 0xb59   :  { %v1598_v56 = vpop.xlane.xlu0 %1597 }
 0xb5a   :  { %v1605_v59 = vmul.f32 0.027777778, %v1598_v56  ;;  %v6958_v56 = vld [vmem:[%s10789_s3 + $0x28] sm:$0xff] }
 0xb5c   :  { %v1609_v60 = vsub.f32 %v1588_v49, %v1605_v59  ;;  %v6959_v59 = vld [vmem:[%s10789_s3 + $0x30] sm:$0xff] }
 0xb5d   :  { %v1601_v62 = vpop.xlane.xlu0 %1600 }
 0xb5e   :  { %v1606_v63 = vmul.f32 0.027777778, %v1601_v62  ;;  %v7800_v1 = vpop.f32.mrb[16].mxu0  ;;  %v1613_v0 = vmul.f32 %v1609_v60, %v1609_v60  ;;  %v6960_v62 = vld [vmem:[%s10789_s3 + $0x38] sm:$0xff] }
 0xb5f   :  { %v1756_v2 = vadd.f32 %v7800_v1, %v9702_v61  ;;  %v1750_v3 = vpop.f32.mrb[17].mxu0  ;;  %v6962_v1 = vld [vmem:[%s10789_s3 + $0x48] sm:$0xf] }
 0xb60   :  { %v1610_v5 = vsub.f32 %v1589_v52, %v1606_v63  ;;  %v1751_v6 = vadd.f32 %v9702_v61, %v1750_v3  ;;  %v1621_v9 = vsel %vm459_vm6, %v1613_v0, 0.0 }
 0xb61   :  { %1622 = vadd.xlane.f32.xlu0 %v1621_v9  ;;  %v1770_v15 = vmax.f32 %v1756_v2, 0.0 }
 0xb62   :  { %v1769_v12 = vmax.f32 %v1751_v6, 0.0  ;;  %v1614_v13 = vmul.f32 %v1610_v5, %v1610_v5 }
 0xb64   :  { %7836 = vmatprep.mubr.f32.mxu1 %v1769_v12  ;;  %v1624_v16 = vsel %vm459_vm6, %v1614_v13, 0.0  ;;  %v9755_v12 = vsub.s32 4, %v9315_v7  ;;  %v9758_v13 = vsub.s32 5, %v9315_v7 }
 0xb65   :  { %7837 = vmatmul.mubr.f32.vlgmr.msra.gmra.mrb[16].mxu1 %v1770_v15  ;;  %1625 = vadd.xlane.f32.xlu0 %v1624_v16 }
 0xb66   :  { %v1937_v15 = vrot.slane %v9576_v38, %v9755_v12 }
 0xbee   :  { %v1623_v17 = vpop.xlane.xlu0 %1622 }
 0xbef   :  { %v1629_v18 = vmul.f32 0.027777778, %v1623_v17 }
 0xbf1   :  { %v1633_v19 = vadd.f32 1e-05, %v1629_v18 }
 0xbf2   :  { %v1626_v20 = vpop.xlane.xlu0 %1625 }
 0xbf3   :  { %9057 = vrsqrt.f32 %v1633_v19  ;;  %v1630_v21 = vmul.f32 0.027777778, %v1626_v20  ;;  %v1945_v20 = vrot.slane %v9576_v38, %v9758_v13 }
 0xbf5   :  { %v1634_v22 = vadd.f32 1e-05, %v1630_v21 }
 0xbf7   :  { %9059 = vrsqrt.f32 %v1634_v22 }
 0xbfd   :  { %v9058_v23 = vpop.eup %9057 }
 0xbfe   :  { %v1641_v24 = vmul.f32 %v9058_v23, %v1609_v60  ;;  %v8514_v60 = vpack.c.bf16 %v6959_v59, %v6958_v56 }
 0xc00   :  { %v1649_v25 = vmul.f32 %v9661_v35, %v1641_v24  ;;  %8515 = vmatprep.subr.bf16.mxu0 %v8514_v60 }
 0xc01   :  { %v9060_v26 = vpop.eup %9059  ;;  %8517 = vmatpush3.bf16.msra.mxu0 %v8514_v60 }
 0xc02   :  { %v9710_v27 = vadd.f32 %v9666_v40, %v1649_v25  ;;  %v1642_v28 = vmul.f32 %v9060_v26, %v1610_v5 }
 0xc04   :  { %7801 = vmatprep.mubr.msk.f32.mxu0 %vm459_vm6, %v9710_v27  ;;  %v1650_v29 = vmul.f32 %v9661_v35, %v1642_v28 }
 0xc06   :  { %v9716_v30 = vadd.f32 %v9666_v40, %v1650_v29 }
 0xc08   :  { %7802 = vmatmul.mubr.msk.f32.gmra.mrb[18].mxu0 %vm459_vm6, %v9716_v30 }
 0xc38   :  { %v7838_v36 = vpop.f32.mrb[16].mxu1 }
 0xc39   :  { %v1865_v37 = vadd.f32 %v7838_v36, %v9725_v32  ;;  %v1859_v41 = vpop.f32.mrb[17].mxu1 }
 0xc3a   :  { %v1860_v42 = vadd.f32 %v1859_v41, %v9725_v32 }
 0xc3b   :  { %v1879_v35 = vadd.f32 %v1865_v37, %v9677_v10 }
 0xc3c   :  { %v1878_v40 = vadd.f32 %v1860_v42, %v9671_v8 }
 0xc3d   :  { %v1885_v43 = vsel %vm459_vm6, %v1879_v35, 0.0 }
 0xc3e   :  { %1886 = vadd.xlane.f32.xlu1 %v1885_v43  ;;  %v1882_v44 = vsel %vm459_vm6, %v1878_v40, 0.0 }
 0xc3f   :  { %1883 = vadd.xlane.f32.xlu0 %v1882_v44 }
 0xccb   :  { %v1887_v45 = vpop.xlane.xlu1 %1886 }
 0xccc   :  { %v1895_v46 = vmul.f32 0.027777778, %v1887_v45  ;;  %v1884_v47 = vpop.xlane.xlu0 %1883 }
 0xccd   :  { %v1894_v48 = vmul.f32 0.027777778, %v1884_v47 }
 0xcce   :  { %v1899_v49 = vsub.f32 %v1879_v35, %v1895_v46 }
 0xccf   :  { %v1898_v50 = vsub.f32 %v1878_v40, %v1894_v48  ;;  %v6963_v48 = vld [vmem:[%s10791_s4 + $0x1] ss:$0 sm:$0xff] }
 0xcd0   :  { %v1903_v52 = vmul.f32 %v1899_v49, %v1899_v49 }
 0xcd1   :  { %v1902_v53 = vmul.f32 %v1898_v50, %v1898_v50 }
 0xcd2   :  { %v1909_v54 = vsel %vm459_vm6, %v1903_v52, 0.0 }
 0xcd3   :  { %1910 = vadd.xlane.f32.xlu1 %v1909_v54  ;;  %v1906_v10 = vsel %vm459_vm6, %v1902_v53, 0.0 }
 0xcd4   :  { %1907 = vadd.xlane.f32.xlu0 %v1906_v10 }
 0xcdb   :  { %v7803_v8 = vpop.f32.mrb[18].mxu0 }
 0xcdc   :  { %v1766_v51 = vadd.f32 %v7803_v8, %v9702_v61  ;;  %v1760_v55 = vpop.f32.mrb[19].mxu0 }
 0xcdd   :  { %v1761_v57 = vadd.f32 %v9702_v61, %v1760_v55  ;;  %v6961_v61 = vld [vmem:[%s10789_s3 + $0x40] sm:$0xff] }
 0xcde   :  { %v1772_v39 = vmax.f32 %v1766_v51, 0.0  ;;  %v8518_v63 = vpack.c.bf16 %v6961_v61, %v6960_v62 }
 0xcdf   :  { %v1771_v58 = vmax.f32 %v1761_v57, 0.0 }
 0xce0   :  { %8519 = vmatprep.subr.bf16.mxu0 %v8518_v63 }
 0xce1   :  { %7839 = vmatprep.mubr.f32.mxu1 %v1771_v58  ;;  %8521 = vmatpush3.bf16.msra.mxu0 %v8518_v63 }
 0xce2   :  { %7840 = vmatmul.mubr.f32.gmra.mrb[18].mxu1 %v1772_v39  ;;  %7850 = vmatprep.subr.msk.mxu0 %vm472_vm7, %v6962_v1 }
 0xce5   :  { %7851 = vmatpush3.msk.msra.mxu0 %vm472_vm7, %v6962_v1 }
 0xd60   :  { %v1911_v0 = vpop.xlane.xlu1 %1910 }
 0xd61   :  { %v1919_v2 = vmul.f32 0.027777778, %v1911_v0  ;;  %v1908_v3 = vpop.xlane.xlu0 %1907 }
 0xd62   :  { %v1918_v5 = vmul.f32 0.027777778, %v1908_v3 }
 0xd63   :  { %v1923_v6 = vadd.f32 1e-05, %v1919_v2 }
 0xd64   :  { %v1922_v9 = vadd.f32 1e-05, %v1918_v5 }
 0xd65   :  { %9061 = vrsqrt.f32 %v1923_v6 }
 0xd66   :  { %9063 = vrsqrt.f32 %v1922_v9 }
 0xd6f   :  { %v9062_v16 = vpop.eup %9061 }
 0xd70   :  { %v9064_v17 = vpop.eup %9063  ;;  %v1931_v18 = vmul.f32 %v9062_v16, %v1899_v49 }
 0xd71   :  { %v1930_v19 = vmul.f32 %v9064_v17, %v1898_v50 }
 0xd72   :  { %v1939_v21 = vmul.f32 %v1937_v15, %v1931_v18 }
 0xd73   :  { %v1938_v22 = vmul.f32 %v1937_v15, %v1930_v19 }
 0xd74   :  { %v9766_v24 = vadd.f32 %v1945_v20, %v1939_v21 }
 0xd75   :  { %v9764_v23 = vadd.f32 %v1945_v20, %v1938_v22 }
 0xd77   :  { %7852 = vmatprep.mubr.msk.f32.mxu0 %vm459_vm6, %v9764_v23 }
 0xd78   :  { %7853 = vmatmul.mubr.msk.f32.vlgmr.msra.gmra.mrb[20].mxu0 %vm459_vm6, %v9766_v24 }
 0xdb5   :  { %v7841_v7 = vpop.f32.mrb[18].mxu1 }
 0xdb6   :  { %v1875_v25 = vadd.f32 %v7841_v7, %v9725_v32  ;;  %v1869_v26 = vpop.f32.mrb[19].mxu1 }
 0xdb7   :  { %v1870_v28 = vadd.f32 %v1869_v26, %v9725_v32 }
 0xdb8   :  { %v1881_v38 = vadd.f32 %v1875_v25, %v9716_v30 }
 0xdb9   :  { %v1880_v29 = vadd.f32 %v1870_v28, %v9710_v27 }
 0xdba   :  { %v1891_v36 = vsel %vm459_vm6, %v1881_v38, 0.0 }
 0xdbb   :  { %1892 = vadd.xlane.f32.xlu1 %v1891_v36  ;;  %v1888_v37 = vsel %vm459_vm6, %v1880_v29, 0.0 }
 0xdbc   :  { %1889 = vadd.xlane.f32.xlu0 %v1888_v37 }
 0xe48   :  { %v1893_v41 = vpop.xlane.xlu1 %1892 }
 0xe49   :  { %v1897_v42 = vmul.f32 0.027777778, %v1893_v41  ;;  %v1890_v35 = vpop.xlane.xlu0 %1889 }
 0xe4a   :  { %v1896_v40 = vmul.f32 0.027777778, %v1890_v35 }
 0xe4b   :  { %v1901_v43 = vsub.f32 %v1881_v38, %v1897_v42  ;;  %v7854_v44 = vpop.f32.mrb[20].mxu0 }
 0xe4c   :  { %v1900_v45 = vsub.f32 %v1880_v29, %v1896_v40  ;;  %v2044_v46 = vpop.f32.mrb[21].mxu0  ;;  %v9783_v49 = vadd.f32 %v7854_v44, %v6963_v48 }
 0xe4d   :  { %v1905_v47 = vmul.f32 %v1901_v43, %v1901_v43  ;;  %v9785_v50 = vadd.f32 %v6963_v48, %v2044_v46 }
 0xe4e   :  { %v1904_v32 = vmul.f32 %v1900_v45, %v1900_v45 }
 0xe4f   :  { %v1915_v30 = vsel %vm459_vm6, %v1905_v47, 0.0  ;;  %v9789_v52 = vpack.i.bf16 %v9783_v49, %v9785_v50 }
 0xe50   :  { %1916 = vadd.xlane.f32.xlu1 %v1915_v30  ;;  %v1912_v27 = vsel %vm459_vm6, %v1904_v32, 0.0 }
 0xe51   :  { %1913 = vadd.xlane.f32.xlu0 %v1912_v27 }
 0xe67   :  { %8900 = vrot.lane.b32.xlu0 %v9789_v52, %s9214_s19 }
 0xedd   :  { %v1917_v53 = vpop.xlane.xlu1 %1916 }
 0xede   :  { %v1921_v54 = vmul.f32 0.027777778, %v1917_v53  ;;  %v1914_v10 = vpop.xlane.xlu0 %1913 }
 0xedf   :  { %v1920_v8 = vmul.f32 0.027777778, %v1914_v10  ;;  %v6981_v10 = vld [vmem:[%s10792_s5 + $0x30] sm:$0xff] }
 0xee0   :  { %v1925_v51 = vadd.f32 1e-05, %v1921_v54 }
 0xee1   :  { %v1924_v55 = vadd.f32 1e-05, %v1920_v8  ;;  %v6982_v8 = vld [vmem:[%s10792_s5 + $0x38] sm:$0xff] }
 0xee2   :  { %9065 = vrsqrt.f32 %v1925_v51  ;;  %v8901_v57 = vpop.permute.xlu0 %8900  ;;  %v8542_v51 = vpack.c.bf16 %v6982_v8, %v6981_v10 }
 0xee3   :  { %9067 = vrsqrt.f32 %v1924_v55  ;;  %v8903_v58 = vunpack.i.h.bf16 %v8901_v57  ;;  %v8902_v39 = vunpack.i.l.bf16 %v8901_v57  ;;  %v6983_v55 = vld [vmem:[%s10792_s5 + $0x40] sm:$0x3] }
 0xee5   :  { %v8522_v56 = vpack.c.bf16 %v8903_v58, %v8902_v39 }
 0xee7   :  { %8524 = vmatprep.subr.msk.bf16.mxu0 %vm9461_vm9, %v8522_v56 }
 0xee8   :  { %8527 = vmatpush3.bf16.xpose.msk.msra.mxu0 %vm9461_vm9, %v8522_v56 }
 0xeec   :  { %v9066_v59 = vpop.eup %9065 }
 0xeed   :  { %v9068_v60 = vpop.eup %9067  ;;  %v1933_v62 = vmul.f32 %v9066_v59, %v1901_v43 }
 0xeee   :  { %v1932_v61 = vmul.f32 %v9068_v60, %v1900_v45 }
 0xeef   :  { %v1941_v63 = vmul.f32 %v1937_v15, %v1933_v62 }
 0xef0   :  { %v1940_v1 = vmul.f32 %v1937_v15, %v1932_v61 }
 0xef1   :  { %v9799_v2 = vadd.f32 %v1945_v20, %v1941_v63 }
 0xef2   :  { %v9797_v0 = vadd.f32 %v1945_v20, %v1940_v1 }
 0xef4   :  { %7855 = vmatprep.mubr.msk.f32.mxu0 %vm459_vm6, %v9797_v0 }
 0xef5   :  { %7856 = vmatmul.mubr.msk.f32.gmra.mrb[22].mxu0 %vm459_vm6, %v9799_v2 }
 0xef6   :  { %7862 = vmatprep.mubr.msk.f32.mxu0 %vm567_vm8, %v9785_v50 }
 0xef9   :  { %7863 = vmatmul.mubr.msk.f32.vlgmr.msra.gmra.mrb[24].mxu0 %vm567_vm8, %v9783_v49 }
 0xfc8   :  { %v7857_v3 = vpop.f32.mrb[22].mxu0 }
 0xfc9   :  { %v9809_v5 = vadd.f32 %v7857_v3, %v6963_v48  ;;  %v2054_v6 = vpop.f32.mrb[23].mxu0 }
 0xfca   :  { %v9811_v9 = vadd.f32 %v6963_v48, %v2054_v6 }
 0xfcc   :  { %v7864_v15 = vpop.f32.mrb[24].mxu0  ;;  %v9815_v16 = vpack.i.bf16 %v9809_v5, %v9811_v9 }
 0xfcd   :  { %v2143_v17 = vpop.f32.mrb[25].mxu0  ;;  %v2153_v19 = vmul.f32 0.23570226, %v7864_v15 }
 0xfce   :  { %v2152_v18 = vmul.f32 0.23570226, %v2143_v17  ;;  %8910 = vrot.lane.b32.xlu0 %v9815_v16, %s9214_s19 }
 0xfcf   :  { %v2157_v21 = vsel %vm74_vm0, %v2153_v19, -inf }
 0xfd0   :  { %v2154_v20 = vsel %vm74_vm0, %v2152_v18, -inf }
 0xfd1   :  { %2155 = vmax.xlane.f32.xlu1 %v2154_v20 }
 0xfd5   :  { %2158 = vmax.xlane.f32.xlu1 %v2157_v21 }
0x1040   :  { %v8911_v40 = vpop.permute.xlu0 %8910 }
0x1041   :  { %v8913_v44 = vunpack.i.h.bf16 %v8911_v40  ;;  %v8912_v45 = vunpack.i.l.bf16 %v8911_v40 }
0x1043   :  { %v8532_v30 = vpack.c.bf16 %v8913_v44, %v8912_v45 }
0x105e   :  { %v2156_v22 = vpop.xlane.xlu1 %2155 }
0x105f   :  { %v2160_v7 = vsub.f32 %v2152_v18, %v2156_v22 }
0x1061   :  { %v2162_v28 = vmul.f32 1.442695, %v2160_v7 }
0x1062   :  { %v2159_v25 = vpop.xlane.xlu1 %2158 }
0x1063   :  { %v2161_v26 = vsub.f32 %v2153_v19, %v2159_v25 }
0x1065   :  { %v2164_v38 = vmul.f32 1.442695, %v2161_v26 }
0x1067   :  { %9069 = vpow2.f32 %v2164_v38 }
0x1068   :  { %9071 = vpow2.f32 %v2162_v28 }
0x1071   :  { %v9070_v29 = vpop.eup %9069 }
0x1072   :  { %v2169_v36 = vsel %vm74_vm0, %v9070_v29, 0.0  ;;  %v9072_v37 = vpop.eup %9071 }
0x1073   :  { %2170 = vadd.xlane.f32.xlu1 %v2169_v36  ;;  %v2166_v41 = vsel %vm74_vm0, %v9072_v37, 0.0 }
0x1077   :  { %2167 = vadd.xlane.f32.xlu1 %v2166_v41 }
0x1088   :  { %8905 = vrot.lane.b32.xlu1 %v9789_v52, %s9217_s22 }
0x1100   :  { %v2171_v42 = vpop.xlane.xlu1 %2170 }
0x1101   :  { %9073 = vrcp.f32 %v2171_v42 }
0x1104   :  { %v2168_v35 = vpop.xlane.xlu1 %2167 }
0x1105   :  { %9075 = vrcp.f32 %v2168_v35 }
0x1108   :  { %v8906_v43 = vpop.permute.xlu1 %8905 }
0x1109   :  { %v8908_v46 = vunpack.i.h.bf16 %v8906_v43  ;;  %v8907_v47 = vunpack.i.l.bf16 %v8906_v43 }
0x110b   :  { %v8528_v32 = vpack.c.bf16 %v8908_v46, %v8907_v47  ;;  %v9074_v27 = vpop.eup %9073 }
0x110c   :  { %v2175_v54 = vmul.f32 %v9074_v27, %v9070_v29 }
0x110d   :  { %8529 = vmatprep.subr.bf16.mxu0 %v8528_v32 }
0x110e   :  { %8531 = vmatpush3.bf16.msra.mxu0 %v8528_v32 }
0x110f   :  { %v9076_v48 = vpop.eup %9075  ;;  %8534 = vmatprep.subr.msk.bf16.mxu0 %vm9461_vm9, %v8532_v30 }
0x1110   :  { %v2174_v53 = vmul.f32 %v9076_v48, %v9072_v37 }
0x1112   :  { %7869 = vmatprep.mubr.msk.f32.mxu0 %vm74_vm0, %v2174_v53 }
0x1113   :  { %7870 = vmatmul.mubr.msk.f32.vlgmr.msra.gmra.mrb[26].mxu0 %vm74_vm0, %v2175_v54 }
0x1114   :  { %7876 = vmatprep.mubr.msk.f32.mxu0 %vm567_vm8, %v9811_v9 }
0x1117   :  { %8537 = vmatpush3.bf16.xpose.msk.msra.mxu0 %vm9461_vm9, %v8532_v30 }
0x1118   :  { %8543 = vmatprep.subr.bf16.mxu0 %v8542_v51 }
0x111e   :  { %7877 = vmatmul.mubr.msk.f32.vlgmr.msra.gmra.mrb[28].mxu0 %vm567_vm8, %v9809_v5 }
0x111f   :  { %8545 = vmatpush3.bf16.msra.mxu0 %v8542_v51 }
0x1120   :  { %7890 = vmatprep.subr.msk.mxu0 %vm977_vm10, %v6983_v55 }
0x1123   :  { %7891 = vmatpush3.msk.msra.mxu0 %vm977_vm10, %v6983_v55 }
0x11e6   :  { %v7871_v57 = vpop.f32.mrb[26].mxu0 }
0x11e7   :  { %v2254_v58 = vpop.f32.mrb[27].mxu0 }
0x11e8   :  { %7892 = vmatprep.mubr.msk.f32.mxu0 %vm567_vm8, %v2254_v58 }
0x11e9   :  { %7893 = vmatmul.mubr.msk.f32.vlgmr.msra.gmra.mrb[30].mxu0 %vm567_vm8, %v7871_v57 }
0x11f1   :  { %v7878_v39 = vpop.f32.mrb[28].mxu0 }
0x11f2   :  { %v2353_v56 = vmul.f32 0.23570226, %v7878_v39  ;;  %v2343_v59 = vpop.f32.mrb[29].mxu0 }
0x11f3   :  { %v2352_v60 = vmul.f32 0.23570226, %v2343_v59 }
0x11f4   :  { %v2357_v62 = vsel %vm74_vm0, %v2353_v56, -inf }
0x11f5   :  { %2358 = vmax.xlane.f32.xlu1 %v2357_v62  ;;  %v2354_v61 = vsel %vm74_vm0, %v2352_v60, -inf }
0x11f6   :  { %2355 = vmax.xlane.f32.xlu0 %v2354_v61 }
0x1206   :  { %8920 = vrot.lane.b32.xlu1 %v9789_v52, %s9215_s20 }
0x120a   :  { %2577 = vrot.lane.b32.xlu1 %v9783_v49, %s9216_s21 }
0x120e   :  { %2777 = vrot.lane.b32.xlu1 %v9811_v9, %s9216_s21 }
0x1282   :  { %v2359_v63 = vpop.xlane.xlu1 %2358 }
0x1283   :  { %v2361_v1 = vsub.f32 %v2353_v56, %v2359_v63  ;;  %v2356_v3 = vpop.xlane.xlu0 %2355 }
0x1284   :  { %v2360_v6 = vsub.f32 %v2352_v60, %v2356_v3 }
0x1285   :  { %v2364_v15 = vmul.f32 1.442695, %v2361_v1 }
0x1286   :  { %v2362_v17 = vmul.f32 1.442695, %v2360_v6  ;;  %v8921_v22 = vpop.permute.xlu1 %8920 }
0x1287   :  { %9077 = vpow2.f32 %v2364_v15  ;;  %v8923_v25 = vunpack.i.h.bf16 %v8921_v22  ;;  %v8922_v26 = vunpack.i.l.bf16 %v8921_v22 }
0x1288   :  { %9079 = vpow2.f32 %v2362_v17 }
0x1289   :  { %v8546_v37 = vpack.c.bf16 %v8923_v25, %v8922_v26 }
0x128a   :  { %v2578_v45 = vpop.permute.xlu1 %2577 }
0x128e   :  { %v2778_v46 = vpop.permute.xlu1 %2777 }
0x1291   :  { %v9078_v18 = vpop.eup %9077 }
0x1292   :  { %v2369_v19 = vsel %vm74_vm0, %v9078_v18, 0.0  ;;  %v9080_v20 = vpop.eup %9079 }
0x1293   :  { %2370 = vadd.xlane.f32.xlu0 %v2369_v19  ;;  %v2366_v21 = vsel %vm74_vm0, %v9080_v20, 0.0 }
0x1297   :  { %2367 = vadd.xlane.f32.xlu0 %v2366_v21 }
0x12ad   :  { %8915 = vrot.lane.b32.xlu0 %v9815_v16, %s9217_s22 }
0x12b1   :  { %2575 = vrot.lane.b32.xlu0 %v9785_v50, %s9216_s21 }
0x12b5   :  { %8925 = vrot.lane.b32.xlu0 %v9815_v16, %s9215_s20 }
0x12b9   :  { %2779 = vrot.lane.b32.xlu0 %v9809_v5, %s9216_s21 }
0x1320   :  { %v2371_v49 = vpop.xlane.xlu0 %2370 }
0x1321   :  { %9081 = vrcp.f32 %v2371_v49 }
0x1324   :  { %v2368_v9 = vpop.xlane.xlu0 %2367 }
0x1325   :  { %9083 = vrcp.f32 %v2368_v9 }
0x1328   :  { %v8916_v7 = vpop.permute.xlu0 %8915 }
0x1329   :  { %v8918_v28 = vunpack.i.h.bf16 %v8916_v7  ;;  %v8917_v38 = vunpack.i.l.bf16 %v8916_v7 }
0x132b   :  { %v8538_v29 = vpack.c.bf16 %v8918_v28, %v8917_v38  ;;  %v9082_v50 = vpop.eup %9081 }
0x132c   :  { %v2576_v36 = vpop.permute.xlu0 %2575  ;;  %v2375_v35 = vmul.f32 %v9082_v50, %v9078_v18 }
0x132d   :  { %8539 = vmatprep.subr.bf16.mxu1 %v8538_v29 }
0x132e   :  { %8541 = vmatpush3.bf16.msra.mxu1 %v8538_v29 }
0x132f   :  { %v9084_v41 = vpop.eup %9083  ;;  %8548 = vmatprep.subr.msk.bf16.mxu1 %vm9461_vm9, %v8546_v37 }
0x1330   :  { %v8926_v5 = vpop.permute.xlu0 %8925  ;;  %v2374_v42 = vmul.f32 %v9084_v41, %v9080_v20 }
0x1331   :  { %v8928_v40 = vunpack.i.h.bf16 %v8926_v5  ;;  %v8927_v43 = vunpack.i.l.bf16 %v8926_v5 }
0x1332   :  { %7883 = vmatprep.mubr.msk.f32.mxu1 %vm74_vm0, %v2374_v42 }
0x1333   :  { %7884 = vmatmul.mubr.msk.f32.vlgmr.msra.gmra.mrb[20].mxu1 %vm74_vm0, %v2375_v35  ;;  %v8556_v44 = vpack.c.bf16 %v8928_v40, %v8927_v43 }
0x1334   :  { %7902 = vmatprep.mubr.msk.f32.mxu1 %vm567_vm8, %v2576_v36  ;;  %v2780_v47 = vpop.permute.xlu0 %2779 }
0x1337   :  { %8551 = vmatpush3.bf16.xpose.msk.msra.mxu1 %vm9461_vm9, %v8546_v37 }
0x1338   :  { %8558 = vmatprep.subr.msk.bf16.mxu1 %vm9461_vm9, %v8556_v44 }
0x133e   :  { %7903 = vmatmul.mubr.msk.f32.vlgmr.msra.gmra.mrb[22].mxu1 %vm567_vm8, %v2578_v45  ;;  %v7002_v45 = vld [vmem:[%s10792_s5 + $0x50] sm:$0xff] }
0x133f   :  { %8561 = vmatpush3.bf16.xpose.msk.msra.mxu1 %vm9461_vm9, %v8556_v44  ;;  %7916 = vmatprep.mubr.msk.f32.mxu1 %vm567_vm8, %v2778_v46  ;;  %v7001_v44 = vld [vmem:[%s10792_s5 + $0x48] sm:$0xff] }
0x1346   :  { %7917 = vmatmul.mubr.msk.f32.vlgmr.msra.gmra.mrb[24].mxu1 %vm567_vm8, %v2780_v47 }
0x1406   :  { %v7885_v32 = vpop.f32.mrb[20].mxu1 }
0x1407   :  { %v2454_v30 = vpop.f32.mrb[21].mxu1 }
0x1408   :  { %7895 = vmatprep.mubr.msk.f32.mxu0 %vm567_vm8, %v2454_v30  ;;  %v8566_v30 = vpack.c.bf16 %v7002_v45, %v7001_v44 }
0x1409   :  { %7896 = vmatmul.mubr.msk.f32.gmra.mrb[32].mxu0 %vm567_vm8, %v7885_v32 }
0x1411   :  { %v7904_v27 = vpop.f32.mrb[22].mxu1 }
0x1412   :  { %v2667_v48 = vmul.f32 0.23570226, %v7904_v27  ;;  %v2657_v53 = vpop.f32.mrb[23].mxu1 }
0x1413   :  { %v2666_v54 = vmul.f32 0.23570226, %v2657_v53 }
0x1414   :  { %v2671_v10 = vsel %vm74_vm0, %v2667_v48, -inf }
0x1415   :  { %2672 = vmax.xlane.f32.xlu0 %v2671_v10  ;;  %v2668_v8 = vsel %vm74_vm0, %v2666_v54, -inf }
0x1416   :  { %2669 = vmax.xlane.f32.xlu1 %v2668_v8 }
0x1419   :  { %v7918_v51 = vpop.f32.mrb[24].mxu1 }
0x141a   :  { %v2859_v55 = vpop.f32.mrb[25].mxu1  ;;  %v2869_v6 = vmul.f32 0.23570226, %v7918_v51 }
0x141b   :  { %v2868_v63 = vmul.f32 0.23570226, %v2859_v55 }
0x141c   :  { %v2873_v17 = vsel %vm74_vm0, %v2869_v6, -inf }
0x141d   :  { %v2870_v15 = vsel %vm74_vm0, %v2868_v63, -inf }
0x14a2   :  { %v2673_v57 = vpop.xlane.xlu0 %2672 }
0x14a3   :  { %v2675_v58 = vsub.f32 %v2667_v48, %v2673_v57  ;;  %v2670_v39 = vpop.xlane.xlu1 %2669  ;;  %v9916_v57 = vld [vmem:[%s10793_s6 + $0x8] sm:$0x3f] }
0x14a4   :  { %v2674_v56 = vsub.f32 %v2666_v54, %v2670_v39  ;;  %v7003_v54 = vld [vmem:[%s10792_s5 + $0x58] sm:$0x3]  ;;  %v9949_v44 = vrot.slane %v9916_v57, %v9654_v33 }
0x14a5   :  { %v2678_v59 = vmul.f32 1.442695, %v2675_v58  ;;  %v2570_v58 = vrot.slane %v9916_v57, %v9571_v11 }
0x14a6   :  { %v2676_v60 = vmul.f32 1.442695, %v2674_v56 }
0x14a7   :  { %9085 = vpow2.f32 %v2678_v59 }
0x14a8   :  { %9087 = vpow2.f32 %v2676_v60 }
0x14b1   :  { %v9086_v62 = vpop.eup %9085 }
0x14b2   :  { %v9088_v61 = vpop.eup %9087  ;;  %v2683_v1 = vsel %vm74_vm0, %v9086_v62, 0.0 }
0x14b3   :  { %2684 = vadd.xlane.f32.xlu1 %v2683_v1  ;;  %v2680_v3 = vsel %vm74_vm0, %v9088_v61, 0.0 }
0x14b4   :  { %2681 = vadd.xlane.f32.xlu0 %v2680_v3 }
0x14b7   :  { %2871 = vmax.xlane.f32.xlu1 %v2870_v15 }
0x14bb   :  { %2874 = vmax.xlane.f32.xlu1 %v2873_v17 }
0x14ca   :  { %8930 = vrot.lane.b32.xlu0 %v9789_v52, %s9218_s27 }
0x1540   :  { %v2685_v18 = vpop.xlane.xlu1 %2684 }
0x1541   :  { %9089 = vrcp.f32 %v2685_v18  ;;  %v2682_v19 = vpop.xlane.xlu0 %2681 }
0x1542   :  { %9091 = vrcp.f32 %v2682_v19 }
0x1544   :  { %v2872_v20 = vpop.xlane.xlu1 %2871 }
0x1545   :  { %v8931_v21 = vpop.permute.xlu0 %8930  ;;  %v2876_v22 = vsub.f32 %v2868_v63, %v2872_v20 }
0x1546   :  { %v8933_v49 = vunpack.i.h.bf16 %v8931_v21  ;;  %v8932_v9 = vunpack.i.l.bf16 %v8931_v21 }
0x1547   :  { %v2878_v38 = vmul.f32 1.442695, %v2876_v22 }
0x1548   :  { %v2875_v7 = vpop.xlane.xlu1 %2874  ;;  %v8552_v25 = vpack.c.bf16 %v8933_v49, %v8932_v9 }
0x1549   :  { %v2877_v26 = vsub.f32 %v2869_v6, %v2875_v7 }
0x154a   :  { %8553 = vmatprep.subr.bf16.mxu0 %v8552_v25 }
0x154b   :  { %v9090_v28 = vpop.eup %9089  ;;  %v2880_v29 = vmul.f32 1.442695, %v2877_v26  ;;  %8555 = vmatpush3.bf16.msra.mxu0 %v8552_v25 }
0x154c   :  { %v9092_v36 = vpop.eup %9091  ;;  %v2689_v37 = vmul.f32 %v9090_v28, %v9086_v62 }
0x154d   :  { %9093 = vpow2.f32 %v2880_v29  ;;  %v2688_v52 = vmul.f32 %v9092_v36, %v9088_v61  ;;  %v7009_v29 = vld [vmem:[%s10794_s7 + $0x28] sm:$0xff]  ;;  %v7010_v36 = vld [vmem:[%s10794_s7 + $0x30] sm:$0xff] }
0x154e   :  { %9095 = vpow2.f32 %v2878_v38 }
0x154f   :  { %7909 = vmatprep.mubr.msk.f32.mxu0 %vm74_vm0, %v2688_v52  ;;  %v8570_v52 = vpack.c.bf16 %v7010_v36, %v7009_v29  ;;  %v7035_v29 = vld [vmem:[%s10795_s9 + $0xf8] sm:$0xff] }
0x1550   :  { %7910 = vmatmul.mubr.msk.f32.vlgmr.msra.gmra.mrb[34].mxu0 %vm74_vm0, %v2689_v37 }
0x1551   :  { %8571 = vmatprep.subr.bf16.mxu1 %v8570_v52 }
0x1552   :  { %8573 = vmatpush3.bf16.msra.mxu1 %v8570_v52 }
0x1557   :  { %v9094_v50 = vpop.eup %9093 }
0x1558   :  { %v2885_v41 = vsel %vm74_vm0, %v9094_v50, 0.0  ;;  %v9096_v5 = vpop.eup %9095 }
0x1559   :  { %2886 = vadd.xlane.f32.xlu1 %v2885_v41  ;;  %v2882_v42 = vsel %vm74_vm0, %v9096_v5, 0.0 }
0x155d   :  { %2883 = vadd.xlane.f32.xlu1 %v2882_v42 }
0x156e   :  { %8935 = vrot.lane.b32.xlu1 %v9815_v16, %s9218_s27 }
0x15e6   :  { %v2887_v35 = vpop.xlane.xlu1 %2886 }
0x15e7   :  { %9097 = vrcp.f32 %v2887_v35 }
0x15ea   :  { %v2884_v40 = vpop.xlane.xlu1 %2883 }
0x15eb   :  { %9099 = vrcp.f32 %v2884_v40 }
0x15ee   :  { %v8936_v43 = vpop.permute.xlu1 %8935 }
0x15ef   :  { %v8938_v46 = vunpack.i.h.bf16 %v8936_v43  ;;  %v8937_v47 = vunpack.i.l.bf16 %v8936_v43 }
0x15f1   :  { %v8562_v32 = vpack.c.bf16 %v8938_v46, %v8937_v47  ;;  %v9098_v27 = vpop.eup %9097  ;;  %v9953_v47 = vrot.slane %v9916_v57, %v9657_v34 }
0x15f2   :  { %v2891_v53 = vmul.f32 %v9098_v27, %v9094_v50  ;;  %v7013_v50 = vld [vmem:[%s10794_s7 + $0x48] sm:$0xf] }
0x15f3   :  { %8563 = vmatprep.subr.bf16.mxu0 %v8562_v32 }
0x15f4   :  { %8565 = vmatpush3.bf16.msra.mxu0 %v8562_v32 }
0x15f5   :  { %v9100_v16 = vpop.eup %9099  ;;  %8567 = vmatprep.subr.bf16.mxu0 %v8566_v30 }
0x15f6   :  { %v2890_v48 = vmul.f32 %v9100_v16, %v9096_v5 }
0x15f8   :  { %7923 = vmatprep.mubr.msk.f32.mxu0 %vm74_vm0, %v2890_v48 }
0x15f9   :  { %7924 = vmatmul.mubr.msk.f32.vlgmr.msra.gmra.mrb[36].mxu0 %vm74_vm0, %v2891_v53 }
0x15fa   :  { %8569 = vmatpush3.bf16.msra.mxu0 %v8566_v30 }
0x15fb   :  { %7930 = vmatprep.subr.msk.mxu0 %vm977_vm10, %v7003_v54 }
0x15fe   :  { %7931 = vmatpush3.msk.msra.mxu0 %vm977_vm10, %v7003_v54 }
0x1623   :  { %v7911_v10 = vpop.f32.mrb[34].mxu0 }
0x1624   :  { %v2768_v8 = vpop.f32.mrb[35].mxu0 }
0x1625   :  { %7932 = vmatprep.mubr.msk.f32.mxu0 %vm567_vm8, %v2768_v8 }
0x1626   :  { %7933 = vmatmul.mubr.msk.f32.vlgmr.msra.gmra.mrb[30].mxu0 %vm567_vm8, %v7911_v10 }
0x16cc   :  { %v7925_v51 = vpop.f32.mrb[36].mxu0 }
0x16cd   :  { %v2970_v55 = vpop.f32.mrb[37].mxu0 }
0x16ce   :  { %7935 = vmatprep.mubr.msk.f32.mxu0 %vm567_vm8, %v2970_v55 }
0x16cf   :  { %7936 = vmatmul.mubr.msk.f32.gmra.mrb[32].mxu0 %vm567_vm8, %v7925_v51 }
0x16f9   :  { %v7934_v39 = vpop.f32.mrb[30].mxu0 }
0x16fa   :  { %v8822_v56 = vadd.f32 %v7934_v39, %v2570_v58  ;;  %v3064_v59 = vpop.f32.mrb[31].mxu0 }
0x16fb   :  { %v8823_v60 = vadd.f32 %v3064_v59, %v2570_v58 }
0x16fc   :  { %v3088_v62 = vadd.f32 %v8822_v56, %v9766_v24 }
0x16fd   :  { %v3087_v61 = vadd.f32 %v8823_v60, %v9764_v23 }
0x16fe   :  { %v3094_v63 = vsel %vm459_vm6, %v3088_v62, 0.0 }
0x16ff   :  { %3095 = vadd.xlane.f32.xlu1 %v3094_v63  ;;  %v3091_v1 = vsel %vm459_vm6, %v3087_v61, 0.0  ;;  %v7022_v63 = vld [vmem:[%s10795_s9 + $0x90] sm:$0xff] }
0x1700   :  { %3092 = vadd.xlane.f32.xlu0 %v3091_v1 }
0x178c   :  { %v3096_v3 = vpop.xlane.xlu1 %3095 }
0x178d   :  { %v3104_v6 = vmul.f32 0.027777778, %v3096_v3  ;;  %v3093_v15 = vpop.xlane.xlu0 %3092  ;;  %v7023_v3 = vld [vmem:[%s10795_s9 + $0x98] sm:$0xff] }
0x178e   :  { %v3103_v17 = vmul.f32 0.027777778, %v3093_v15  ;;  %v7024_v15 = vld [vmem:[%s10795_s9 + $0xa0] sm:$0xff] }
0x178f   :  { %v3108_v18 = vsub.f32 %v3088_v62, %v3104_v6  ;;  %v7020_v62 = vld [vmem:[%s10795_s9 + $0x80] sm:$0xff]  ;;  %v8582_v6 = vpack.c.bf16 %v7023_v3, %v7022_v63 }
0x1790   :  { %v3107_v19 = vsub.f32 %v3087_v61, %v3103_v17  ;;  %v7021_v61 = vld [vmem:[%s10795_s9 + $0x88] sm:$0xff] }
0x1791   :  { %v3112_v49 = vmul.f32 %v3108_v18, %v3108_v18  ;;  %v8578_v1 = vpack.c.bf16 %v7021_v61, %v7020_v62  ;;  %v7025_v17 = vld [vmem:[%s10795_s9 + $0xa8] sm:$0xff] }
0x1792   :  { %v3111_v20 = vmul.f32 %v3107_v19, %v3107_v19 }
0x1793   :  { %v3118_v24 = vsel %vm459_vm6, %v3112_v49, 0.0  ;;  %8579 = vmatprep.subr.bf16.mxu0 %v8578_v1  ;;  %v7028_v49 = vld [vmem:[%s10795_s9 + $0xc0] sm:$0xff] }
0x1794   :  { %v3115_v21 = vsel %vm459_vm6, %v3111_v20, 0.0  ;;  %8581 = vmatpush3.bf16.msra.mxu0 %v8578_v1  ;;  %v7027_v20 = vld [vmem:[%s10795_s9 + $0xb8] sm:$0xff] }
0x1795   :  { %3116 = vadd.xlane.f32.xlu0 %v3115_v21  ;;  %8583 = vmatprep.subr.bf16.mxu0 %v8582_v6 }
0x1798   :  { %8585 = vmatpush3.bf16.msra.mxu0 %v8582_v6 }
0x1799   :  { %3119 = vadd.xlane.f32.xlu0 %v3118_v24  ;;  %v7029_v24 = vld [vmem:[%s10795_s9 + $0xc8] sm:$0xff] }
0x17a2   :  { %v7937_v23 = vpop.f32.mrb[32].mxu0 }
0x17a3   :  { %v3074_v9 = vpop.f32.mrb[33].mxu0  ;;  %v8824_v22 = vadd.f32 %v7937_v23, %v2570_v58  ;;  %v8594_v23 = vpack.c.bf16 %v7029_v24, %v7028_v49 }
0x17a4   :  { %v8825_v7 = vadd.f32 %v3074_v9, %v2570_v58  ;;  %v7030_v9 = vld [vmem:[%s10795_s9 + $0xd0] sm:$0xff] }
0x17a5   :  { %v3090_v28 = vadd.f32 %v8824_v22, %v9799_v2  ;;  %v7012_v2 = vld [vmem:[%s10794_s7 + $0x40] sm:$0xff]  ;;  %v7031_v22 = vld [vmem:[%s10795_s9 + $0xd8] sm:$0xff] }
0x17a6   :  { %v3089_v25 = vadd.f32 %v8825_v7, %v9797_v0  ;;  %v7011_v0 = vld [vmem:[%s10794_s7 + $0x38] sm:$0xff]  ;;  %v8598_v7 = vpack.c.bf16 %v7031_v22, %v7030_v9 }
0x17a7   :  { %v3100_v38 = vsel %vm459_vm6, %v3090_v28, 0.0  ;;  %v8574_v37 = vpack.c.bf16 %v7012_v2, %v7011_v0 }
0x17a8   :  { %v3097_v26 = vsel %vm459_vm6, %v3089_v25, 0.0 }
0x17a9   :  { %3098 = vadd.xlane.f32.xlu0 %v3097_v26  ;;  %8575 = vmatprep.subr.bf16.mxu1 %v8574_v37  ;;  %v7033_v26 = vld [vmem:[%s10795_s9 + $0xe8] sm:$0xff] }
0x17aa   :  { %8577 = vmatpush3.bf16.msra.mxu1 %v8574_v37 }
0x17ab   :  { %7946 = vmatprep.subr.msk.mxu1 %vm472_vm7, %v7013_v50 }
0x17ad   :  { %3101 = vadd.xlane.f32.xlu0 %v3100_v38  ;;  %v7034_v38 = vld [vmem:[%s10795_s9 + $0xf0] sm:$0xff] }
0x17ae   :  { %7947 = vmatpush3.msk.msra.mxu1 %vm472_vm7, %v7013_v50  ;;  %v8606_v36 = vpack.c.bf16 %v7035_v29, %v7034_v38 }
0x1822   :  { %v3117_v41 = vpop.xlane.xlu0 %3116 }
0x1823   :  { %v3127_v5 = vmul.f32 0.027777778, %v3117_v41 }
0x1825   :  { %v3131_v42 = vadd.f32 1e-05, %v3127_v5 }
0x1826   :  { %v3120_v35 = vpop.xlane.xlu0 %3119 }
0x1827   :  { %9101 = vrsqrt.f32 %v3131_v42  ;;  %v3128_v40 = vmul.f32 0.027777778, %v3120_v35 }
0x1829   :  { %v3132_v43 = vadd.f32 1e-05, %v3128_v40 }
0x182b   :  { %9103 = vrsqrt.f32 %v3132_v43 }
0x1831   :  { %v9102_v45 = vpop.eup %9101 }
0x1832   :  { %v3139_v46 = vmul.f32 %v9102_v45, %v3107_v19  ;;  %v7026_v19 = vld [vmem:[%s10795_s9 + $0xb0] sm:$0xff] }
0x1833   :  { %v8590_v21 = vpack.c.bf16 %v7027_v20, %v7026_v19 }
0x1834   :  { %v3147_v32 = vmul.f32 %v9949_v44, %v3139_v46 }
0x1835   :  { %v9104_v30 = vpop.eup %9103 }
0x1836   :  { %v3140_v27 = vmul.f32 %v9104_v30, %v3108_v18  ;;  %v3099_v16 = vpop.xlane.xlu0 %3098  ;;  %v9957_v48 = vadd.f32 %v9953_v47, %v3147_v32  ;;  %v8586_v18 = vpack.c.bf16 %v7025_v17, %v7024_v15  ;;  %v7014_v30 = vld [vmem:[%s10796_s8 + $0x1] ss:$0 sm:$0xff] }
0x1837   :  { %v3105_v53 = vmul.f32 0.027777778, %v3099_v16 }
0x1838   :  { %7948 = vmatprep.mubr.msk.f32.mxu1 %vm459_vm6, %v9957_v48  ;;  %v3148_v54 = vmul.f32 %v9949_v44, %v3140_v27  ;;  %8587 = vmatprep.subr.bf16.mxu0 %v8586_v18 }
0x1839   :  { %v3109_v10 = vsub.f32 %v3089_v25, %v3105_v53  ;;  %8589 = vmatpush3.bf16.msra.mxu0 %v8586_v18  ;;  %v7032_v25 = vld [vmem:[%s10795_s9 + $0xe0] sm:$0xff] }
0x183a   :  { %v3102_v8 = vpop.xlane.xlu0 %3101  ;;  %v9963_v51 = vadd.f32 %v9953_v47, %v3148_v54  ;;  %8591 = vmatprep.subr.bf16.mxu0 %v8590_v21 }
0x183b   :  { %v3106_v55 = vmul.f32 0.027777778, %v3102_v8  ;;  %v3113_v58 = vmul.f32 %v3109_v10, %v3109_v10 }
0x183c   :  { %7949 = vmatmul.mubr.msk.f32.vlgmr.msra.gmra.mrb[26].mxu1 %vm459_vm6, %v9963_v51 }
0x183d   :  { %v3110_v39 = vsub.f32 %v3090_v28, %v3106_v55  ;;  %v3121_v56 = vsel %vm459_vm6, %v3113_v58, 0.0  ;;  %8593 = vmatpush3.bf16.msra.mxu0 %v8590_v21  ;;  %v8602_v28 = vpack.c.bf16 %v7033_v26, %v7032_v25 }
0x183e   :  { %3122 = vadd.xlane.f32.xlu0 %v3121_v56  ;;  %8595 = vmatprep.subr.bf16.mxu0 %v8594_v23 }
0x183f   :  { %v3114_v59 = vmul.f32 %v3110_v39, %v3110_v39 }
0x1841   :  { %v3124_v60 = vsel %vm459_vm6, %v3114_v59, 0.0  ;;  %8597 = vmatpush3.bf16.msra.mxu0 %v8594_v23  ;;  %v3294_v59 = vrot.slane %v9916_v57, %v9721_v31 }
0x1842   :  { %3125 = vadd.xlane.f32.xlu1 %v3124_v60  ;;  %8599 = vmatprep.subr.bf16.mxu0 %v8598_v7 }
0x1845   :  { %8601 = vmatpush3.bf16.msra.mxu0 %v8598_v7 }
0x1846   :  { %8603 = vmatprep.subr.bf16.mxu0 %v8602_v28 }
0x1849   :  { %8605 = vmatpush3.bf16.msra.mxu0 %v8602_v28 }
0x184a   :  { %8607 = vmatprep.subr.bf16.mxu0 %v8606_v36 }
0x184d   :  { %8609 = vmatpush3.bf16.msra.mxu0 %v8606_v36  ;;  %v7037_v36 = vld [vmem:[%s10789_s3 + $0x50] sm:$0xff] }
0x18cb   :  { %v3123_v52 = vpop.xlane.xlu0 %3122 }
0x18cc   :  { %v3129_v0 = vmul.f32 0.027777778, %v3123_v52  ;;  %v7038_v52 = vld [vmem:[%s10789_s3 + $0x58] sm:$0xff] }
0x18ce   :  { %v3133_v2 = vadd.f32 1e-05, %v3129_v0  ;;  %v8610_v0 = vpack.c.bf16 %v7038_v52, %v7037_v36 }
0x18cf   :  { %v3126_v37 = vpop.xlane.xlu1 %3125 }
0x18d0   :  { %9105 = vrsqrt.f32 %v3133_v2  ;;  %v3130_v50 = vmul.f32 0.027777778, %v3126_v37  ;;  %8611 = vmatprep.subr.bf16.mxu1 %v8610_v0  ;;  %v7039_v2 = vld [vmem:[%s10789_s3 + $0x60] sm:$0xff]  ;;  %v7040_v37 = vld [vmem:[%s10789_s3 + $0x68] sm:$0xff] }
0x18d1   :  { %8613 = vmatpush3.bf16.msra.mxu1 %v8610_v0 }
0x18d2   :  { %v3134_v41 = vadd.f32 1e-05, %v3130_v50  ;;  %v8614_v50 = vpack.c.bf16 %v7040_v37, %v7039_v2 }
0x18d4   :  { %9107 = vrsqrt.f32 %v3134_v41  ;;  %8615 = vmatprep.subr.bf16.mxu1 %v8614_v50  ;;  %v7041_v41 = vld [vmem:[%s10789_s3 + $0x70] sm:$0xf] }
0x18d5   :  { %8617 = vmatpush3.bf16.msra.mxu1 %v8614_v50 }
0x18d6   :  { %8000 = vmatprep.subr.msk.mxu1 %vm472_vm7, %v7041_v41 }
0x18d9   :  { %8001 = vmatpush3.msk.msra.mxu1 %vm472_vm7, %v7041_v41 }
0x18da   :  { %v9106_v5 = vpop.eup %9105 }
0x18db   :  { %v3141_v42 = vmul.f32 %v9106_v5, %v3109_v10 }
0x18dd   :  { %v3149_v35 = vmul.f32 %v9949_v44, %v3141_v42 }
0x18de   :  { %v9108_v40 = vpop.eup %9107 }
0x18df   :  { %v3157_v43 = vadd.f32 %v9953_v47, %v3149_v35  ;;  %v3142_v45 = vmul.f32 %v9108_v40, %v3110_v39 }
0x18e1   :  { %7951 = vmatprep.mubr.msk.f32.mxu1 %vm459_vm6, %v3157_v43  ;;  %v3150_v46 = vmul.f32 %v9949_v44, %v3142_v45 }
0x18e3   :  { %v3158_v32 = vadd.f32 %v9953_v47, %v3150_v46  ;;  %v3439_v46 = vrot.slane %v9916_v57, %v9755_v12 }
0x18e5   :  { %7952 = vmatmul.mubr.msk.f32.gmra.mrb[28].mxu1 %vm459_vm6, %v3158_v32 }
0x190f   :  { %v7950_v27 = vpop.f32.mrb[26].mxu1 }
0x1910   :  { %v3257_v16 = vadd.f32 %v7950_v27, %v7014_v30  ;;  %v3251_v53 = vpop.f32.mrb[27].mxu1 }
0x1911   :  { %v3252_v54 = vadd.f32 %v7014_v30, %v3251_v53  ;;  %v3447_v53 = vrot.slane %v9916_v57, %v9758_v13 }
0x1912   :  { %v3271_v8 = vmax.f32 %v3257_v16, 0.0 }
0x1913   :  { %v3270_v10 = vmax.f32 %v3252_v54, 0.0 }
0x1915   :  { %7986 = vmatprep.mubr.f32.mxu0 %v3270_v10 }
0x1916   :  { %7987 = vmatmul.mubr.f32.vlgmr.msra.gmra.mrb[38].mxu0 %v3271_v8 }
0x19b8   :  { %v7953_v55 = vpop.f32.mrb[28].mxu1 }
0x19b9   :  { %v3267_v58 = vadd.f32 %v7953_v55, %v7014_v30  ;;  %v3261_v39 = vpop.f32.mrb[29].mxu1 }
0x19ba   :  { %v3262_v44 = vadd.f32 %v7014_v30, %v3261_v39 }
0x19bb   :  { %v3273_v47 = vmax.f32 %v3267_v58, 0.0 }
0x19bc   :  { %v3272_v56 = vmax.f32 %v3262_v44, 0.0 }
0x19be   :  { %7989 = vmatprep.mubr.f32.mxu0 %v3272_v56 }
0x19bf   :  { %7990 = vmatmul.mubr.f32.gmra.mrb[40].mxu0 %v3273_v47 }
0x19e9   :  { %v7988_v60 = vpop.f32.mrb[38].mxu0 }
0x19ea   :  { %v3367_v62 = vadd.f32 %v7988_v60, %v3294_v59  ;;  %v3361_v61 = vpop.f32.mrb[39].mxu0 }
0x19eb   :  { %v3362_v63 = vadd.f32 %v3361_v61, %v3294_v59 }
0x19ec   :  { %v3381_v1 = vadd.f32 %v3367_v62, %v9963_v51 }
0x19ed   :  { %v3380_v3 = vadd.f32 %v3362_v63, %v9957_v48 }
0x19ee   :  { %v3387_v6 = vsel %vm459_vm6, %v3381_v1, 0.0 }
0x19ef   :  { %3388 = vadd.xlane.f32.xlu1 %v3387_v6  ;;  %v3384_v15 = vsel %vm459_vm6, %v3380_v3, 0.0 }
0x19f0   :  { %3385 = vadd.xlane.f32.xlu0 %v3384_v15 }
0x1a7c   :  { %v3389_v17 = vpop.xlane.xlu1 %3388 }
0x1a7d   :  { %v3397_v18 = vmul.f32 0.027777778, %v3389_v17  ;;  %v3386_v19 = vpop.xlane.xlu0 %3385 }
0x1a7e   :  { %v3396_v20 = vmul.f32 0.027777778, %v3386_v19 }
0x1a7f   :  { %v3401_v21 = vsub.f32 %v3381_v1, %v3397_v18 }
0x1a80   :  { %v3400_v49 = vsub.f32 %v3380_v3, %v3396_v20 }
0x1a81   :  { %v3405_v24 = vmul.f32 %v3401_v21, %v3401_v21 }
0x1a82   :  { %v3404_v23 = vmul.f32 %v3400_v49, %v3400_v49 }
0x1a83   :  { %v3411_v9 = vsel %vm459_vm6, %v3405_v24, 0.0 }
0x1a84   :  { %3412 = vadd.xlane.f32.xlu1 %v3411_v9  ;;  %v3408_v51 = vsel %vm459_vm6, %v3404_v23, 0.0 }
0x1a85   :  { %3409 = vadd.xlane.f32.xlu0 %v3408_v51  ;;  %v7042_v51 = vld [vmem:[%s10791_s4 + $0x2] ss:$0 sm:$0xff] }
0x1a92   :  { %v7991_v48 = vpop.f32.mrb[40].mxu0 }
0x1a93   :  { %v3377_v22 = vadd.f32 %v7991_v48, %v3294_v59  ;;  %v3371_v7 = vpop.f32.mrb[41].mxu0 }
0x1a94   :  { %v3372_v25 = vadd.f32 %v3371_v7, %v3294_v59 }
0x1a95   :  { %v3383_v26 = vadd.f32 %v3377_v22, %v3158_v32 }
0x1a96   :  { %v3382_v28 = vadd.f32 %v3372_v25, %v3157_v43 }
0x1a97   :  { %v3393_v38 = vsel %vm459_vm6, %v3383_v26, 0.0 }
0x1a98   :  { %3394 = vadd.xlane.f32.xlu1 %v3393_v38  ;;  %v3390_v29 = vsel %vm459_vm6, %v3382_v28, 0.0 }
0x1a99   :  { %3391 = vadd.xlane.f32.xlu0 %v3390_v29 }
0x1b11   :  { %v3413_v5 = vpop.xlane.xlu1 %3412 }
0x1b12   :  { %v3421_v42 = vmul.f32 0.027777778, %v3413_v5  ;;  %v3410_v35 = vpop.xlane.xlu0 %3409 }
0x1b13   :  { %v3420_v40 = vmul.f32 0.027777778, %v3410_v35 }
0x1b14   :  { %v3425_v43 = vadd.f32 1e-05, %v3421_v42 }
0x1b15   :  { %v3424_v45 = vadd.f32 1e-05, %v3420_v40 }
0x1b16   :  { %9109 = vrsqrt.f32 %v3425_v43 }
0x1b17   :  { %9111 = vrsqrt.f32 %v3424_v45 }
0x1b20   :  { %v9110_v32 = vpop.eup %9109 }
0x1b21   :  { %v9112_v30 = vpop.eup %9111  ;;  %v3433_v27 = vmul.f32 %v9110_v32, %v3401_v21 }
0x1b22   :  { %v3432_v16 = vmul.f32 %v9112_v30, %v3400_v49 }
0x1b23   :  { %v3441_v54 = vmul.f32 %v3439_v46, %v3433_v27 }
0x1b24   :  { %v3440_v10 = vmul.f32 %v3439_v46, %v3432_v16 }
0x1b25   :  { %v3395_v8 = vpop.xlane.xlu1 %3394  ;;  %v10059_v56 = vadd.f32 %v3447_v53, %v3441_v54 }
0x1b26   :  { %v3399_v55 = vmul.f32 0.027777778, %v3395_v8  ;;  %v3392_v58 = vpop.xlane.xlu0 %3391  ;;  %v10057_v39 = vadd.f32 %v3447_v53, %v3440_v10 }
0x1b27   :  { %v3398_v44 = vmul.f32 0.027777778, %v3392_v58  ;;  %v7061_v58 = vld [vmem:[%s10792_s5 + $0x68] sm:$0xff] }
0x1b28   :  { %v3403_v47 = vsub.f32 %v3383_v26, %v3399_v55  ;;  %8002 = vmatprep.mubr.msk.f32.mxu1 %vm459_vm6, %v10057_v39  ;;  %v7060_v55 = vld [vmem:[%s10792_s5 + $0x60] sm:$0xff] }
0x1b29   :  { %v3402_v59 = vsub.f32 %v3382_v28, %v3398_v44  ;;  %8003 = vmatmul.mubr.msk.f32.vlgmr.msra.gmra.mrb[30].mxu1 %vm459_vm6, %v10059_v56  ;;  %v8638_v44 = vpack.c.bf16 %v7061_v58, %v7060_v55 }
0x1b2a   :  { %v3407_v60 = vmul.f32 %v3403_v47, %v3403_v47 }
0x1b2b   :  { %v3406_v57 = vmul.f32 %v3402_v59, %v3402_v59  ;;  %8639 = vmatprep.subr.bf16.mxu0 %v8638_v44 }
0x1b2c   :  { %v3417_v62 = vsel %vm459_vm6, %v3407_v60, 0.0  ;;  %8641 = vmatpush3.bf16.msra.mxu0 %v8638_v44 }
0x1b2d   :  { %3418 = vadd.xlane.f32.xlu1 %v3417_v62  ;;  %v3414_v61 = vsel %vm459_vm6, %v3406_v57, 0.0 }
0x1b2e   :  { %3415 = vadd.xlane.f32.xlu0 %v3414_v61 }
0x1bba   :  { %v3419_v63 = vpop.xlane.xlu1 %3418 }
0x1bbb   :  { %v3423_v1 = vmul.f32 0.027777778, %v3419_v63  ;;  %v3416_v3 = vpop.xlane.xlu0 %3415 }
0x1bbc   :  { %v3422_v6 = vmul.f32 0.027777778, %v3416_v3 }
0x1bbd   :  { %v3427_v15 = vadd.f32 1e-05, %v3423_v1 }
0x1bbe   :  { %v3426_v17 = vadd.f32 1e-05, %v3422_v6 }
0x1bbf   :  { %9113 = vrsqrt.f32 %v3427_v15 }
0x1bc0   :  { %9115 = vrsqrt.f32 %v3426_v17 }
0x1bc9   :  { %v9114_v18 = vpop.eup %9113 }
0x1bca   :  { %v9116_v19 = vpop.eup %9115  ;;  %v3435_v20 = vmul.f32 %v9114_v18, %v3403_v47 }
0x1bcb   :  { %v3434_v21 = vmul.f32 %v9116_v19, %v3402_v59 }
0x1bcc   :  { %v3443_v49 = vmul.f32 %v3439_v46, %v3435_v20  ;;  %v7062_v20 = vld [vmem:[%s10792_s5 + $0x70] sm:$0x3] }
0x1bcd   :  { %v3442_v24 = vmul.f32 %v3439_v46, %v3434_v21  ;;  %8040 = vmatprep.subr.msk.mxu0 %vm977_vm10, %v7062_v20 }
0x1bce   :  { %v10069_v9 = vadd.f32 %v3447_v53, %v3443_v49  ;;  %8041 = vmatpush3.msk.msra.mxu0 %vm977_vm10, %v7062_v20 }
0x1bcf   :  { %v10067_v23 = vadd.f32 %v3447_v53, %v3442_v24 }
0x1bd1   :  { %8005 = vmatprep.mubr.msk.f32.mxu1 %vm459_vm6, %v10067_v23 }
0x1bd2   :  { %8006 = vmatmul.mubr.msk.f32.gmra.mrb[32].mxu1 %vm459_vm6, %v10069_v9 }
0x1bfc   :  { %v8004_v48 = vpop.f32.mrb[30].mxu1 }
0x1bfd   :  { %v10078_v22 = vadd.f32 %v8004_v48, %v7042_v51  ;;  %v3546_v7 = vpop.f32.mrb[31].mxu1 }
0x1bfe   :  { %v10080_v25 = vadd.f32 %v7042_v51, %v3546_v7 }
0x1c00   :  { %8012 = vmatprep.mubr.msk.f32.mxu1 %vm567_vm8, %v10080_v25  ;;  %v10086_v26 = vpack.i.bf16 %v10078_v22, %v10080_v25 }
0x1c02   :  { %8940 = vrot.lane.b32.xlu0 %v10086_v26, %s9214_s19 }
0x1c74   :  { %v8941_v28 = vpop.permute.xlu0 %8940 }
0x1c75   :  { %v8943_v38 = vunpack.i.h.bf16 %v8941_v28  ;;  %v8942_v29 = vunpack.i.l.bf16 %v8941_v28 }
0x1c77   :  { %v8618_v36 = vpack.c.bf16 %v8943_v38, %v8942_v29 }
0x1c79   :  { %8620 = vmatprep.subr.msk.bf16.mxu1 %vm9461_vm9, %v8618_v36 }
0x1c7a   :  { %8623 = vmatpush3.bf16.xpose.msk.msra.mxu1 %vm9461_vm9, %v8618_v36 }
0x1c81   :  { %8013 = vmatmul.mubr.msk.f32.vlgmr.msra.gmra.mrb[34].mxu1 %vm567_vm8, %v10078_v22 }
0x1ca5   :  { %v8007_v52 = vpop.f32.mrb[32].mxu1 }
0x1ca6   :  { %v10096_v0 = vadd.f32 %v8007_v52, %v7042_v51  ;;  %v3556_v2 = vpop.f32.mrb[33].mxu1 }
0x1ca7   :  { %v10098_v37 = vadd.f32 %v7042_v51, %v3556_v2 }
0x1ca9   :  { %v10102_v50 = vpack.i.bf16 %v10096_v0, %v10098_v37 }
0x1cab   :  { %8950 = vrot.lane.b32.xlu0 %v10102_v50, %s9214_s19 }
0x1d1d   :  { %v8951_v60 = vpop.permute.xlu0 %8950 }
0x1d1e   :  { %v8953_v62 = vunpack.i.h.bf16 %v8951_v60  ;;  %v8952_v61 = vunpack.i.l.bf16 %v8951_v60 }
0x1d20   :  { %v8628_v6 = vpack.c.bf16 %v8953_v62, %v8952_v61 }
0x1d54   :  { %v8014_v41 = vpop.f32.mrb[34].mxu1 }
0x1d55   :  { %v3645_v5 = vpop.f32.mrb[35].mxu1  ;;  %v3655_v35 = vmul.f32 0.23570226, %v8014_v41 }
0x1d56   :  { %v3654_v42 = vmul.f32 0.23570226, %v3645_v5 }
0x1d57   :  { %v3659_v43 = vsel %vm74_vm0, %v3655_v35, -inf }
0x1d58   :  { %v3656_v40 = vsel %vm74_vm0, %v3654_v42, -inf }
0x1d59   :  { %3657 = vmax.xlane.f32.xlu1 %v3656_v40 }
0x1d5d   :  { %3660 = vmax.xlane.f32.xlu1 %v3659_v43 }
0x1de6   :  { %v3658_v45 = vpop.xlane.xlu1 %3657 }
0x1de7   :  { %v3662_v46 = vsub.f32 %v3654_v42, %v3658_v45 }
0x1de9   :  { %v3664_v27 = vmul.f32 1.442695, %v3662_v46 }
0x1dea   :  { %v3661_v32 = vpop.xlane.xlu1 %3660 }
0x1deb   :  { %v3663_v30 = vsub.f32 %v3655_v35, %v3661_v32 }
0x1ded   :  { %v3666_v16 = vmul.f32 1.442695, %v3663_v30 }
0x1def   :  { %9117 = vpow2.f32 %v3666_v16 }
0x1df0   :  { %9119 = vpow2.f32 %v3664_v27 }
0x1df9   :  { %v9118_v53 = vpop.eup %9117 }
0x1dfa   :  { %v3671_v54 = vsel %vm74_vm0, %v9118_v53, 0.0  ;;  %v9120_v10 = vpop.eup %9119 }
0x1dfb   :  { %3672 = vadd.xlane.f32.xlu1 %v3671_v54  ;;  %v3668_v8 = vsel %vm74_vm0, %v9120_v10, 0.0 }
0x1dff   :  { %3669 = vadd.xlane.f32.xlu1 %v3668_v8 }
0x1e10   :  { %8945 = vrot.lane.b32.xlu1 %v10086_v26, %s9217_s22 }
0x1e88   :  { %v3673_v47 = vpop.xlane.xlu1 %3672 }
0x1e89   :  { %9121 = vrcp.f32 %v3673_v47 }
0x1e8c   :  { %v3670_v59 = vpop.xlane.xlu1 %3669 }
0x1e8d   :  { %9123 = vrcp.f32 %v3670_v59 }
0x1e90   :  { %v8946_v57 = vpop.permute.xlu1 %8945 }
0x1e91   :  { %v8948_v63 = vunpack.i.h.bf16 %v8946_v57  ;;  %v8947_v1 = vunpack.i.l.bf16 %v8946_v57 }
0x1e93   :  { %v8624_v3 = vpack.c.bf16 %v8948_v63, %v8947_v1  ;;  %v9122_v15 = vpop.eup %9121 }
0x1e94   :  { %v3677_v19 = vmul.f32 %v9122_v15, %v9118_v53 }
0x1e95   :  { %8625 = vmatprep.subr.bf16.mxu1 %v8624_v3 }
0x1e96   :  { %8627 = vmatpush3.bf16.msra.mxu1 %v8624_v3 }
0x1e97   :  { %v9124_v17 = vpop.eup %9123  ;;  %8630 = vmatprep.subr.msk.bf16.mxu1 %vm9461_vm9, %v8628_v6 }
0x1e98   :  { %v3676_v18 = vmul.f32 %v9124_v17, %v9120_v10 }
0x1e9a   :  { %8019 = vmatprep.mubr.msk.f32.mxu1 %vm74_vm0, %v3676_v18 }
0x1e9b   :  { %8020 = vmatmul.mubr.msk.f32.vlgmr.msra.gmra.mrb[36].mxu1 %vm74_vm0, %v3677_v19 }
0x1e9c   :  { %8026 = vmatprep.mubr.msk.f32.mxu1 %vm567_vm8, %v10098_v37 }
0x1e9f   :  { %8633 = vmatpush3.bf16.xpose.msk.msra.mxu1 %vm9461_vm9, %v8628_v6 }
0x1ea6   :  { %8027 = vmatmul.mubr.msk.f32.vlgmr.msra.gmra.mrb[38].mxu1 %vm567_vm8, %v10096_v0 }
0x1f6e   :  { %v8021_v21 = vpop.f32.mrb[36].mxu1 }
0x1f6f   :  { %v3756_v49 = vpop.f32.mrb[37].mxu1 }
0x1f70   :  { %8042 = vmatprep.mubr.msk.f32.mxu0 %vm567_vm8, %v3756_v49 }
0x1f71   :  { %8043 = vmatmul.mubr.msk.f32.vlgmr.msra.gmra.mrb[42].mxu0 %vm567_vm8, %v8021_v21 }
0x1f79   :  { %v8028_v24 = vpop.f32.mrb[38].mxu1 }
0x1f7a   :  { %v3855_v51 = vmul.f32 0.23570226, %v8028_v24  ;;  %v3845_v48 = vpop.f32.mrb[39].mxu1 }
0x1f7b   :  { %v3854_v7 = vmul.f32 0.23570226, %v3845_v48 }
0x1f7c   :  { %v3859_v28 = vsel %vm74_vm0, %v3855_v51, -inf }
0x1f7d   :  { %3860 = vmax.xlane.f32.xlu1 %v3859_v28  ;;  %v3856_v38 = vsel %vm74_vm0, %v3854_v7, -inf }
0x1f7e   :  { %3857 = vmax.xlane.f32.xlu0 %v3856_v38 }
0x1f8e   :  { %8960 = vrot.lane.b32.xlu1 %v10086_v26, %s9215_s20 }
0x1f92   :  { %4079 = vrot.lane.b32.xlu1 %v10078_v22, %s9216_s21 }
0x1f96   :  { %4279 = vrot.lane.b32.xlu1 %v10098_v37, %s9216_s21 }
0x200a   :  { %v3861_v29 = vpop.xlane.xlu1 %3860 }
0x200b   :  { %v3863_v36 = vsub.f32 %v3855_v51, %v3861_v29  ;;  %v3858_v52 = vpop.xlane.xlu0 %3857 }
0x200c   :  { %v3862_v2 = vsub.f32 %v3854_v7, %v3858_v52 }
0x200d   :  { %v3866_v41 = vmul.f32 1.442695, %v3863_v36 }
0x200e   :  { %v3864_v5 = vmul.f32 1.442695, %v3862_v2  ;;  %v8961_v45 = vpop.permute.xlu1 %8960 }
0x200f   :  { %9125 = vpow2.f32 %v3866_v41  ;;  %v8963_v32 = vunpack.i.h.bf16 %v8961_v45  ;;  %v8962_v30 = vunpack.i.l.bf16 %v8961_v45 }
0x2010   :  { %9127 = vpow2.f32 %v3864_v5 }
0x2011   :  { %v8642_v10 = vpack.c.bf16 %v8963_v32, %v8962_v30 }
0x2012   :  { %v4080_v60 = vpop.permute.xlu1 %4079 }
0x2016   :  { %v4280_v57 = vpop.permute.xlu1 %4279 }
0x2019   :  { %v9126_v42 = vpop.eup %9125 }
0x201a   :  { %v3871_v35 = vsel %vm74_vm0, %v9126_v42, 0.0  ;;  %v9128_v40 = vpop.eup %9127 }
0x201b   :  { %3872 = vadd.xlane.f32.xlu0 %v3871_v35  ;;  %v3868_v43 = vsel %vm74_vm0, %v9128_v40, 0.0 }
0x201f   :  { %3869 = vadd.xlane.f32.xlu0 %v3868_v43 }
0x2035   :  { %8955 = vrot.lane.b32.xlu0 %v10102_v50, %s9217_s22 }
0x2039   :  { %4077 = vrot.lane.b32.xlu0 %v10080_v25, %s9216_s21 }
0x203d   :  { %8965 = vrot.lane.b32.xlu0 %v10102_v50, %s9215_s20 }
0x2041   :  { %4281 = vrot.lane.b32.xlu0 %v10096_v0, %s9216_s21 }
0x20a8   :  { %v3873_v22 = vpop.xlane.xlu0 %3872 }
0x20a9   :  { %9129 = vrcp.f32 %v3873_v22 }
0x20ac   :  { %v3870_v37 = vpop.xlane.xlu0 %3869 }
0x20ad   :  { %9131 = vrcp.f32 %v3870_v37 }
0x20b0   :  { %v8956_v46 = vpop.permute.xlu0 %8955 }
0x20b1   :  { %v8958_v27 = vunpack.i.h.bf16 %v8956_v46  ;;  %v8957_v16 = vunpack.i.l.bf16 %v8956_v46 }
0x20b3   :  { %v8634_v53 = vpack.c.bf16 %v8958_v27, %v8957_v16  ;;  %v9130_v25 = vpop.eup %9129 }
0x20b4   :  { %v4078_v54 = vpop.permute.xlu0 %4077  ;;  %v3877_v58 = vmul.f32 %v9130_v25, %v9126_v42 }
0x20b5   :  { %8635 = vmatprep.subr.bf16.mxu1 %v8634_v53 }
0x20b6   :  { %8637 = vmatpush3.bf16.msra.mxu1 %v8634_v53 }
0x20b7   :  { %v9132_v8 = vpop.eup %9131  ;;  %8644 = vmatprep.subr.msk.bf16.mxu1 %vm9461_vm9, %v8642_v10 }
0x20b8   :  { %v8966_v0 = vpop.permute.xlu0 %8965  ;;  %v3876_v55 = vmul.f32 %v9132_v8, %v9128_v40 }
0x20b9   :  { %v8968_v44 = vunpack.i.h.bf16 %v8966_v0  ;;  %v8967_v47 = vunpack.i.l.bf16 %v8966_v0 }
0x20ba   :  { %8033 = vmatprep.mubr.msk.f32.mxu1 %vm74_vm0, %v3876_v55 }
0x20bb   :  { %8034 = vmatmul.mubr.msk.f32.vlgmr.msra.gmra.mrb[40].mxu1 %vm74_vm0, %v3877_v58  ;;  %v8652_v59 = vpack.c.bf16 %v8968_v44, %v8967_v47 }
0x20bc   :  { %8052 = vmatprep.mubr.msk.f32.mxu1 %vm567_vm8, %v4078_v54  ;;  %v4282_v62 = vpop.permute.xlu0 %4281 }
0x20bf   :  { %8647 = vmatpush3.bf16.xpose.msk.msra.mxu1 %vm9461_vm9, %v8642_v10 }
0x20c0   :  { %8654 = vmatprep.subr.msk.bf16.mxu1 %vm9461_vm9, %v8652_v59 }
0x20c6   :  { %8053 = vmatmul.mubr.msk.f32.vlgmr.msra.gmra.mrb[42].mxu1 %vm567_vm8, %v4080_v60  ;;  %v7081_v60 = vld [vmem:[%s10792_s5 + $0x80] sm:$0xff] }
0x20c7   :  { %8657 = vmatpush3.bf16.xpose.msk.msra.mxu1 %vm9461_vm9, %v8652_v59  ;;  %8066 = vmatprep.mubr.msk.f32.mxu1 %vm567_vm8, %v4280_v57  ;;  %v7080_v59 = vld [vmem:[%s10792_s5 + $0x78] sm:$0xff] }
0x20ce   :  { %8067 = vmatmul.mubr.msk.f32.vlgmr.msra.gmra.mrb[44].mxu1 %vm567_vm8, %v4282_v62 }
0x218e   :  { %v8035_v61 = vpop.f32.mrb[40].mxu1 }
0x218f   :  { %v3956_v63 = vpop.f32.mrb[41].mxu1 }
0x2190   :  { %8045 = vmatprep.mubr.msk.f32.mxu0 %vm567_vm8, %v3956_v63  ;;  %v8662_v63 = vpack.c.bf16 %v7081_v60, %v7080_v59 }
0x2191   :  { %8046 = vmatmul.mubr.msk.f32.gmra.mrb[44].mxu0 %vm567_vm8, %v8035_v61 }
0x2199   :  { %v8054_v1 = vpop.f32.mrb[42].mxu1 }
0x219a   :  { %v4169_v3 = vmul.f32 0.23570226, %v8054_v1  ;;  %v4159_v6 = vpop.f32.mrb[43].mxu1 }
0x219b   :  { %v4168_v15 = vmul.f32 0.23570226, %v4159_v6 }
0x219c   :  { %v4173_v17 = vsel %vm74_vm0, %v4169_v3, -inf }
0x219d   :  { %4174 = vmax.xlane.f32.xlu0 %v4173_v17  ;;  %v4170_v18 = vsel %vm74_vm0, %v4168_v15, -inf }
0x219e   :  { %4171 = vmax.xlane.f32.xlu1 %v4170_v18 }
0x21a1   :  { %v8068_v19 = vpop.f32.mrb[44].mxu1 }
0x21a2   :  { %v4361_v20 = vpop.f32.mrb[45].mxu1  ;;  %v4371_v2 = vmul.f32 0.23570226, %v8068_v19 }
0x21a3   :  { %v4370_v29 = vmul.f32 0.23570226, %v4361_v20 }
0x21a4   :  { %v4375_v5 = vsel %vm74_vm0, %v4371_v2, -inf }
0x21a5   :  { %v4372_v41 = vsel %vm74_vm0, %v4370_v29, -inf }
0x222a   :  { %v4175_v21 = vpop.xlane.xlu0 %4174 }
0x222b   :  { %v4177_v49 = vsub.f32 %v4169_v3, %v4175_v21  ;;  %v4172_v24 = vpop.xlane.xlu1 %4171  ;;  %v10203_v21 = vld [vmem:[%s10793_s6 + $0x10] sm:$0x3f] }
0x222c   :  { %v4176_v51 = vsub.f32 %v4168_v15, %v4172_v24  ;;  %v7082_v15 = vld [vmem:[%s10792_s5 + $0x88] sm:$0x3]  ;;  %v10236_v59 = vrot.slane %v10203_v21, %v9654_v33 }
0x222d   :  { %v4180_v48 = vmul.f32 1.442695, %v4177_v49  ;;  %v4072_v49 = vrot.slane %v10203_v21, %v9571_v11 }
0x222e   :  { %v4178_v7 = vmul.f32 1.442695, %v4176_v51 }
0x222f   :  { %9133 = vpow2.f32 %v4180_v48 }
0x2230   :  { %9135 = vpow2.f32 %v4178_v7 }
0x2239   :  { %v9134_v28 = vpop.eup %9133 }
0x223a   :  { %v9136_v38 = vpop.eup %9135  ;;  %v4185_v36 = vsel %vm74_vm0, %v9134_v28, 0.0 }
0x223b   :  { %4186 = vadd.xlane.f32.xlu1 %v4185_v36  ;;  %v4182_v52 = vsel %vm74_vm0, %v9136_v38, 0.0 }
0x223c   :  { %4183 = vadd.xlane.f32.xlu0 %v4182_v52 }
0x223f   :  { %4373 = vmax.xlane.f32.xlu1 %v4372_v41 }
0x2243   :  { %4376 = vmax.xlane.f32.xlu1 %v4375_v5 }
0x2252   :  { %8970 = vrot.lane.b32.xlu0 %v10086_v26, %s9218_s27 }
0x22c8   :  { %v4187_v42 = vpop.xlane.xlu1 %4186 }
0x22c9   :  { %9137 = vrcp.f32 %v4187_v42  ;;  %v4184_v35 = vpop.xlane.xlu0 %4183 }
0x22ca   :  { %9139 = vrcp.f32 %v4184_v35 }
0x22cc   :  { %v4374_v40 = vpop.xlane.xlu1 %4373 }
0x22cd   :  { %v8971_v43 = vpop.permute.xlu0 %8970  ;;  %v4378_v45 = vsub.f32 %v4370_v29, %v4374_v40 }
0x22ce   :  { %v8973_v22 = vunpack.i.h.bf16 %v8971_v43  ;;  %v8972_v37 = vunpack.i.l.bf16 %v8971_v43 }
0x22cf   :  { %v4380_v16 = vmul.f32 1.442695, %v4378_v45 }
0x22d0   :  { %v8648_v46 = vpack.c.bf16 %v8973_v22, %v8972_v37  ;;  %v4377_v32 = vpop.xlane.xlu1 %4376 }
0x22d1   :  { %v4379_v30 = vsub.f32 %v4371_v2, %v4377_v32 }
0x22d2   :  { %8649 = vmatprep.subr.bf16.mxu0 %v8648_v46 }
0x22d3   :  { %v9138_v27 = vpop.eup %9137  ;;  %v4382_v53 = vmul.f32 1.442695, %v4379_v30  ;;  %8651 = vmatpush3.bf16.msra.mxu0 %v8648_v46 }
0x22d4   :  { %v9140_v54 = vpop.eup %9139  ;;  %v4191_v10 = vmul.f32 %v9138_v27, %v9134_v28 }
0x22d5   :  { %9141 = vpow2.f32 %v4382_v53  ;;  %v4190_v26 = vmul.f32 %v9140_v54, %v9136_v38  ;;  %v7088_v53 = vld [vmem:[%s10794_s7 + $0x50] sm:$0xff]  ;;  %v7089_v54 = vld [vmem:[%s10794_s7 + $0x58] sm:$0xff] }
0x22d6   :  { %9143 = vpow2.f32 %v4380_v16 }
0x22d7   :  { %8059 = vmatprep.mubr.msk.f32.mxu0 %vm74_vm0, %v4190_v26  ;;  %v8666_v26 = vpack.c.bf16 %v7089_v54, %v7088_v53  ;;  %v7114_v53 = vld [vmem:[%s10795_s9 + $0x178] sm:$0xff] }
0x22d8   :  { %8060 = vmatmul.mubr.msk.f32.vlgmr.msra.gmra.mrb[46].mxu0 %vm74_vm0, %v4191_v10 }
0x22d9   :  { %8667 = vmatprep.subr.bf16.mxu1 %v8666_v26 }
0x22da   :  { %8669 = vmatpush3.bf16.msra.mxu1 %v8666_v26 }
0x22df   :  { %v9142_v25 = vpop.eup %9141 }
0x22e0   :  { %v4387_v8 = vsel %vm74_vm0, %v9142_v25, 0.0  ;;  %v9144_v0 = vpop.eup %9143 }
0x22e1   :  { %4388 = vadd.xlane.f32.xlu1 %v4387_v8  ;;  %v4384_v55 = vsel %vm74_vm0, %v9144_v0, 0.0 }
0x22e5   :  { %4385 = vadd.xlane.f32.xlu1 %v4384_v55 }
0x22f6   :  { %8975 = vrot.lane.b32.xlu1 %v10102_v50, %s9218_s27 }
0x236e   :  { %v4389_v58 = vpop.xlane.xlu1 %4388 }
0x236f   :  { %9145 = vrcp.f32 %v4389_v58 }
0x2372   :  { %v4386_v44 = vpop.xlane.xlu1 %4385 }
0x2373   :  { %9147 = vrcp.f32 %v4386_v44 }
0x2376   :  { %v8976_v47 = vpop.permute.xlu1 %8975 }
0x2377   :  { %v8978_v57 = vunpack.i.h.bf16 %v8976_v47  ;;  %v8977_v62 = vunpack.i.l.bf16 %v8976_v47 }
0x2379   :  { %v8658_v61 = vpack.c.bf16 %v8978_v57, %v8977_v62  ;;  %v9146_v1 = vpop.eup %9145  ;;  %v10240_v62 = vrot.slane %v10203_v21, %v9657_v34 }
0x237a   :  { %v4393_v6 = vmul.f32 %v9146_v1, %v9142_v25  ;;  %v7092_v25 = vld [vmem:[%s10794_s7 + $0x70] sm:$0xf] }
0x237b   :  { %8659 = vmatprep.subr.bf16.mxu0 %v8658_v61 }
0x237c   :  { %8661 = vmatpush3.bf16.msra.mxu0 %v8658_v61 }
0x237d   :  { %v9148_v50 = vpop.eup %9147  ;;  %8663 = vmatprep.subr.bf16.mxu0 %v8662_v63 }
0x237e   :  { %v4392_v3 = vmul.f32 %v9148_v50, %v9144_v0 }
0x2380   :  { %8073 = vmatprep.mubr.msk.f32.mxu0 %vm74_vm0, %v4392_v3 }
0x2381   :  { %8074 = vmatmul.mubr.msk.f32.vlgmr.msra.gmra.mrb[48].mxu0 %vm74_vm0, %v4393_v6 }
0x2382   :  { %8665 = vmatpush3.bf16.msra.mxu0 %v8662_v63 }
0x2383   :  { %8080 = vmatprep.subr.msk.mxu0 %vm977_vm10, %v7082_v15 }
0x2386   :  { %8081 = vmatpush3.msk.msra.mxu0 %vm977_vm10, %v7082_v15 }
0x23ab   :  { %v8061_v17 = vpop.f32.mrb[46].mxu0 }
0x23ac   :  { %v4270_v18 = vpop.f32.mrb[47].mxu0 }
0x23ad   :  { %8082 = vmatprep.mubr.msk.f32.mxu0 %vm567_vm8, %v4270_v18 }
0x23ae   :  { %8083 = vmatmul.mubr.msk.f32.vlgmr.msra.gmra.mrb[42].mxu0 %vm567_vm8, %v8061_v17 }
0x2454   :  { %v8075_v19 = vpop.f32.mrb[48].mxu0 }
0x2455   :  { %v4472_v20 = vpop.f32.mrb[49].mxu0 }
0x2456   :  { %8085 = vmatprep.mubr.msk.f32.mxu0 %vm567_vm8, %v4472_v20 }
0x2457   :  { %8086 = vmatmul.mubr.msk.f32.gmra.mrb[44].mxu0 %vm567_vm8, %v8075_v19 }
0x2481   :  { %v8084_v24 = vpop.f32.mrb[42].mxu0 }
0x2482   :  { %v8826_v51 = vadd.f32 %v8084_v24, %v4072_v49  ;;  %v4566_v48 = vpop.f32.mrb[43].mxu0 }
0x2483   :  { %v8827_v7 = vadd.f32 %v4566_v48, %v4072_v49 }
0x2484   :  { %v4590_v28 = vadd.f32 %v8826_v51, %v10059_v56 }
0x2485   :  { %v4589_v38 = vadd.f32 %v8827_v7, %v10057_v39 }
0x2486   :  { %v4596_v29 = vsel %vm459_vm6, %v4590_v28, 0.0 }
0x2487   :  { %4597 = vadd.xlane.f32.xlu1 %v4596_v29  ;;  %v4593_v36 = vsel %vm459_vm6, %v4589_v38, 0.0  ;;  %v7101_v29 = vld [vmem:[%s10795_s9 + $0x110] sm:$0xff] }
0x2488   :  { %4594 = vadd.xlane.f32.xlu0 %v4593_v36 }
0x2514   :  { %v4598_v52 = vpop.xlane.xlu1 %4597 }
0x2515   :  { %v4606_v2 = vmul.f32 0.027777778, %v4598_v52  ;;  %v4595_v41 = vpop.xlane.xlu0 %4594  ;;  %v7102_v52 = vld [vmem:[%s10795_s9 + $0x118] sm:$0xff] }
0x2516   :  { %v4605_v5 = vmul.f32 0.027777778, %v4595_v41  ;;  %v7103_v41 = vld [vmem:[%s10795_s9 + $0x120] sm:$0xff] }
0x2517   :  { %v4610_v42 = vsub.f32 %v4590_v28, %v4606_v2  ;;  %v7099_v28 = vld [vmem:[%s10795_s9 + $0x100] sm:$0xff]  ;;  %v8678_v2 = vpack.c.bf16 %v7102_v52, %v7101_v29 }
0x2518   :  { %v4609_v35 = vsub.f32 %v4589_v38, %v4605_v5  ;;  %v7100_v38 = vld [vmem:[%s10795_s9 + $0x108] sm:$0xff] }
0x2519   :  { %v4614_v22 = vmul.f32 %v4610_v42, %v4610_v42  ;;  %v8674_v36 = vpack.c.bf16 %v7100_v38, %v7099_v28  ;;  %v7104_v5 = vld [vmem:[%s10795_s9 + $0x128] sm:$0xff] }
0x251a   :  { %v4613_v40 = vmul.f32 %v4609_v35, %v4609_v35 }
0x251b   :  { %v4620_v56 = vsel %vm459_vm6, %v4614_v22, 0.0  ;;  %8675 = vmatprep.subr.bf16.mxu0 %v8674_v36  ;;  %v7107_v22 = vld [vmem:[%s10795_s9 + $0x140] sm:$0xff] }
0x251c   :  { %v4617_v43 = vsel %vm459_vm6, %v4613_v40, 0.0  ;;  %8677 = vmatpush3.bf16.msra.mxu0 %v8674_v36  ;;  %v7106_v40 = vld [vmem:[%s10795_s9 + $0x138] sm:$0xff] }
0x251d   :  { %4618 = vadd.xlane.f32.xlu0 %v4617_v43  ;;  %8679 = vmatprep.subr.bf16.mxu0 %v8678_v2 }
0x2520   :  { %8681 = vmatpush3.bf16.msra.mxu0 %v8678_v2 }
0x2521   :  { %4621 = vadd.xlane.f32.xlu0 %v4620_v56  ;;  %v7108_v56 = vld [vmem:[%s10795_s9 + $0x148] sm:$0xff] }
0x252a   :  { %v8087_v39 = vpop.f32.mrb[44].mxu0 }
0x252b   :  { %v4576_v37 = vpop.f32.mrb[45].mxu0  ;;  %v8828_v45 = vadd.f32 %v8087_v39, %v4072_v49  ;;  %v8690_v39 = vpack.c.bf16 %v7108_v56, %v7107_v22 }
0x252c   :  { %v8829_v46 = vadd.f32 %v4576_v37, %v4072_v49  ;;  %v7109_v37 = vld [vmem:[%s10795_s9 + $0x150] sm:$0xff] }
0x252d   :  { %v4592_v30 = vadd.f32 %v8828_v45, %v10069_v9  ;;  %v7091_v9 = vld [vmem:[%s10794_s7 + $0x68] sm:$0xff]  ;;  %v7110_v45 = vld [vmem:[%s10795_s9 + $0x158] sm:$0xff] }
0x252e   :  { %v4591_v32 = vadd.f32 %v8829_v46, %v10067_v23  ;;  %v7090_v23 = vld [vmem:[%s10794_s7 + $0x60] sm:$0xff]  ;;  %v8694_v46 = vpack.c.bf16 %v7110_v45, %v7109_v37 }
0x252f   :  { %v4602_v16 = vsel %vm459_vm6, %v4592_v30, 0.0  ;;  %v8670_v10 = vpack.c.bf16 %v7091_v9, %v7090_v23 }
0x2530   :  { %v4599_v27 = vsel %vm459_vm6, %v4591_v32, 0.0 }
0x2531   :  { %4600 = vadd.xlane.f32.xlu0 %v4599_v27  ;;  %8671 = vmatprep.subr.bf16.mxu1 %v8670_v10 }
0x2532   :  { %8673 = vmatpush3.bf16.msra.mxu1 %v8670_v10 }
0x2533   :  { %8096 = vmatprep.subr.msk.mxu1 %vm472_vm7, %v7092_v25 }
0x2535   :  { %4603 = vadd.xlane.f32.xlu0 %v4602_v16  ;;  %v7113_v16 = vld [vmem:[%s10795_s9 + $0x170] sm:$0xff] }
0x2536   :  { %8097 = vmatpush3.msk.msra.mxu1 %vm472_vm7, %v7092_v25  ;;  %v8702_v54 = vpack.c.bf16 %v7114_v53, %v7113_v16 }
0x25aa   :  { %v4619_v8 = vpop.xlane.xlu0 %4618 }
0x25ab   :  { %v4629_v0 = vmul.f32 0.027777778, %v4619_v8 }
0x25ad   :  { %v4633_v55 = vadd.f32 1e-05, %v4629_v0 }
0x25ae   :  { %v4622_v58 = vpop.xlane.xlu0 %4621 }
0x25af   :  { %9149 = vrsqrt.f32 %v4633_v55  ;;  %v4630_v44 = vmul.f32 0.027777778, %v4622_v58 }
0x25b1   :  { %v4634_v47 = vadd.f32 1e-05, %v4630_v44 }
0x25b3   :  { %9151 = vrsqrt.f32 %v4634_v47 }
0x25b9   :  { %v9150_v60 = vpop.eup %9149 }
0x25ba   :  { %v4641_v57 = vmul.f32 %v9150_v60, %v4609_v35  ;;  %v7105_v35 = vld [vmem:[%s10795_s9 + $0x130] sm:$0xff] }
0x25bb   :  { %v8686_v43 = vpack.c.bf16 %v7106_v40, %v7105_v35 }
0x25bc   :  { %v4649_v61 = vmul.f32 %v10236_v59, %v4641_v57 }
0x25bd   :  { %v9152_v63 = vpop.eup %9151 }
0x25be   :  { %v4642_v1 = vmul.f32 %v9152_v63, %v4610_v42  ;;  %v4601_v50 = vpop.xlane.xlu0 %4600  ;;  %v10244_v3 = vadd.f32 %v10240_v62, %v4649_v61  ;;  %v8682_v42 = vpack.c.bf16 %v7104_v5, %v7103_v41  ;;  %v7093_v63 = vld [vmem:[%s10796_s8 + $0x2] ss:$0 sm:$0xff] }
0x25bf   :  { %v4607_v6 = vmul.f32 0.027777778, %v4601_v50 }
0x25c0   :  { %8098 = vmatprep.mubr.msk.f32.mxu1 %vm459_vm6, %v10244_v3  ;;  %v4650_v15 = vmul.f32 %v10236_v59, %v4642_v1  ;;  %8683 = vmatprep.subr.bf16.mxu0 %v8682_v42 }
0x25c1   :  { %v4611_v17 = vsub.f32 %v4591_v32, %v4607_v6  ;;  %8685 = vmatpush3.bf16.msra.mxu0 %v8682_v42  ;;  %v7111_v32 = vld [vmem:[%s10795_s9 + $0x160] sm:$0xff] }
0x25c2   :  { %v4604_v18 = vpop.xlane.xlu0 %4603  ;;  %v10250_v19 = vadd.f32 %v10240_v62, %v4650_v15  ;;  %8687 = vmatprep.subr.bf16.mxu0 %v8686_v43 }
0x25c3   :  { %v4608_v20 = vmul.f32 0.027777778, %v4604_v18  ;;  %v4615_v49 = vmul.f32 %v4611_v17, %v4611_v17 }
0x25c4   :  { %8099 = vmatmul.mubr.msk.f32.vlgmr.msra.gmra.mrb[46].mxu1 %vm459_vm6, %v10250_v19 }
0x25c5   :  { %v4612_v24 = vsub.f32 %v4592_v30, %v4608_v20  ;;  %v4623_v51 = vsel %vm459_vm6, %v4615_v49, 0.0  ;;  %8689 = vmatpush3.bf16.msra.mxu0 %v8686_v43  ;;  %v7112_v30 = vld [vmem:[%s10795_s9 + $0x168] sm:$0xff] }
0x25c6   :  { %4624 = vadd.xlane.f32.xlu0 %v4623_v51  ;;  %8691 = vmatprep.subr.bf16.mxu0 %v8690_v39  ;;  %v8698_v27 = vpack.c.bf16 %v7112_v30, %v7111_v32 }
0x25c7   :  { %v4616_v48 = vmul.f32 %v4612_v24, %v4612_v24 }
0x25c9   :  { %v4626_v7 = vsel %vm459_vm6, %v4616_v48, 0.0  ;;  %8693 = vmatpush3.bf16.msra.mxu0 %v8690_v39  ;;  %v4796_v48 = vrot.slane %v10203_v21, %v9721_v31 }
0x25ca   :  { %4627 = vadd.xlane.f32.xlu1 %v4626_v7  ;;  %8695 = vmatprep.subr.bf16.mxu0 %v8694_v46 }
0x25cd   :  { %8697 = vmatpush3.bf16.msra.mxu0 %v8694_v46 }
0x25ce   :  { %8699 = vmatprep.subr.bf16.mxu0 %v8698_v27 }
0x25d1   :  { %8701 = vmatpush3.bf16.msra.mxu0 %v8698_v27 }
0x25d2   :  { %8703 = vmatprep.subr.bf16.mxu0 %v8702_v54 }
0x25d5   :  { %8705 = vmatpush3.bf16.msra.mxu0 %v8702_v54  ;;  %v7116_v54 = vld [vmem:[%s10789_s3 + $0x78] sm:$0xff] }
0x2653   :  { %v4625_v26 = vpop.xlane.xlu0 %4624 }
0x2654   :  { %v4631_v23 = vmul.f32 0.027777778, %v4625_v26  ;;  %v7117_v26 = vld [vmem:[%s10789_s3 + $0x80] sm:$0xff] }
0x2656   :  { %v4635_v9 = vadd.f32 1e-05, %v4631_v23  ;;  %v8706_v23 = vpack.c.bf16 %v7117_v26, %v7116_v54 }
0x2657   :  { %v4628_v10 = vpop.xlane.xlu1 %4627 }
0x2658   :  { %9153 = vrsqrt.f32 %v4635_v9  ;;  %v4632_v25 = vmul.f32 0.027777778, %v4628_v10  ;;  %8707 = vmatprep.subr.bf16.mxu1 %v8706_v23  ;;  %v7118_v9 = vld [vmem:[%s10789_s3 + $0x88] sm:$0xff]  ;;  %v7119_v10 = vld [vmem:[%s10789_s3 + $0x90] sm:$0xff] }
0x2659   :  { %8709 = vmatpush3.bf16.msra.mxu1 %v8706_v23 }
0x265a   :  { %v4636_v8 = vadd.f32 1e-05, %v4632_v25  ;;  %v8710_v25 = vpack.c.bf16 %v7119_v10, %v7118_v9 }
0x265c   :  { %9155 = vrsqrt.f32 %v4636_v8  ;;  %8711 = vmatprep.subr.bf16.mxu1 %v8710_v25  ;;  %v7120_v8 = vld [vmem:[%s10789_s3 + $0x98] sm:$0xf] }
0x265d   :  { %8713 = vmatpush3.bf16.msra.mxu1 %v8710_v25 }
0x265e   :  { %8150 = vmatprep.subr.msk.mxu1 %vm472_vm7, %v7120_v8 }
0x2661   :  { %8151 = vmatpush3.msk.msra.mxu1 %vm472_vm7, %v7120_v8 }
0x2662   :  { %v9154_v0 = vpop.eup %9153 }
0x2663   :  { %v4643_v55 = vmul.f32 %v9154_v0, %v4611_v17 }
0x2665   :  { %v4651_v58 = vmul.f32 %v10236_v59, %v4643_v55 }
0x2666   :  { %v9156_v44 = vpop.eup %9155 }
0x2667   :  { %v4659_v47 = vadd.f32 %v10240_v62, %v4651_v58  ;;  %v4644_v60 = vmul.f32 %v9156_v44, %v4612_v24 }
0x2669   :  { %8101 = vmatprep.mubr.msk.f32.mxu1 %vm459_vm6, %v4659_v47  ;;  %v4652_v57 = vmul.f32 %v10236_v59, %v4644_v60 }
0x266b   :  { %v4660_v61 = vadd.f32 %v10240_v62, %v4652_v57  ;;  %v4941_v57 = vrot.slane %v10203_v21, %v9755_v12 }
0x266d   :  { %8102 = vmatmul.mubr.msk.f32.gmra.mrb[48].mxu1 %vm459_vm6, %v4660_v61 }
0x2697   :  { %v8100_v1 = vpop.f32.mrb[46].mxu1 }
0x2698   :  { %v4759_v50 = vadd.f32 %v8100_v1, %v7093_v63  ;;  %v4753_v6 = vpop.f32.mrb[47].mxu1 }
0x2699   :  { %v4754_v15 = vadd.f32 %v7093_v63, %v4753_v6  ;;  %v4949_v6 = vrot.slane %v10203_v21, %v9758_v13 }
0x269a   :  { %v4773_v18 = vmax.f32 %v4759_v50, 0.0 }
0x269b   :  { %v4772_v17 = vmax.f32 %v4754_v15, 0.0 }
0x269d   :  { %8136 = vmatprep.mubr.f32.mxu0 %v4772_v17 }
0x269e   :  { %8137 = vmatmul.mubr.f32.vlgmr.msra.gmra.mrb[50].mxu0 %v4773_v18 }
0x2740   :  { %v8103_v20 = vpop.f32.mrb[48].mxu1 }
0x2741   :  { %v4769_v49 = vadd.f32 %v8103_v20, %v7093_v63  ;;  %v4763_v24 = vpop.f32.mrb[49].mxu1 }
0x2742   :  { %v4764_v59 = vadd.f32 %v7093_v63, %v4763_v24 }
0x2743   :  { %v4775_v62 = vmax.f32 %v4769_v49, 0.0 }
0x2744   :  { %v4774_v51 = vmax.f32 %v4764_v59, 0.0 }
0x2746   :  { %8139 = vmatprep.mubr.f32.mxu0 %v4774_v51 }
0x2747   :  { %8140 = vmatmul.mubr.f32.gmra.mrb[52].mxu0 %v4775_v62 }
0x2771   :  { %v8138_v7 = vpop.f32.mrb[50].mxu0 }
0x2772   :  { %v4869_v28 = vadd.f32 %v8138_v7, %v4796_v48  ;;  %v4863_v38 = vpop.f32.mrb[51].mxu0 }
0x2773   :  { %v4864_v29 = vadd.f32 %v4863_v38, %v4796_v48 }
0x2774   :  { %v4883_v36 = vadd.f32 %v4869_v28, %v10250_v19 }
0x2775   :  { %v4882_v52 = vadd.f32 %v4864_v29, %v10244_v3 }
0x2776   :  { %v4889_v2 = vsel %vm459_vm6, %v4883_v36, 0.0 }
0x2777   :  { %4890 = vadd.xlane.f32.xlu1 %v4889_v2  ;;  %v4886_v41 = vsel %vm459_vm6, %v4882_v52, 0.0 }
0x2778   :  { %4887 = vadd.xlane.f32.xlu0 %v4886_v41 }
0x2804   :  { %v4891_v5 = vpop.xlane.xlu1 %4890 }
0x2805   :  { %v4899_v42 = vmul.f32 0.027777778, %v4891_v5  ;;  %v4888_v35 = vpop.xlane.xlu0 %4887 }
0x2806   :  { %v4898_v40 = vmul.f32 0.027777778, %v4888_v35 }
0x2807   :  { %v4903_v43 = vsub.f32 %v4883_v36, %v4899_v42 }
0x2808   :  { %v4902_v22 = vsub.f32 %v4882_v52, %v4898_v40 }
0x2809   :  { %v4907_v56 = vmul.f32 %v4903_v43, %v4903_v43 }
0x280a   :  { %v4906_v39 = vmul.f32 %v4902_v22, %v4902_v22 }
0x280b   :  { %v4913_v37 = vsel %vm459_vm6, %v4907_v56, 0.0 }
0x280c   :  { %4914 = vadd.xlane.f32.xlu1 %v4913_v37  ;;  %v4910_v19 = vsel %vm459_vm6, %v4906_v39, 0.0 }
0x280d   :  { %4911 = vadd.xlane.f32.xlu0 %v4910_v19  ;;  %v7121_v19 = vld [vmem:[%s10791_s4 + $0x3] ss:$0 sm:$0xff] }
0x281a   :  { %v8141_v3 = vpop.f32.mrb[52].mxu0 }
0x281b   :  { %v4879_v45 = vadd.f32 %v8141_v3, %v4796_v48  ;;  %v4873_v46 = vpop.f32.mrb[53].mxu0 }
0x281c   :  { %v4874_v32 = vadd.f32 %v4873_v46, %v4796_v48 }
0x281d   :  { %v4885_v30 = vadd.f32 %v4879_v45, %v4660_v61 }
0x281e   :  { %v4884_v27 = vadd.f32 %v4874_v32, %v4659_v47 }
0x281f   :  { %v4895_v16 = vsel %vm459_vm6, %v4885_v30, 0.0 }
0x2820   :  { %4896 = vadd.xlane.f32.xlu1 %v4895_v16  ;;  %v4892_v53 = vsel %vm459_vm6, %v4884_v27, 0.0 }
0x2821   :  { %4893 = vadd.xlane.f32.xlu0 %v4892_v53 }
0x2899   :  { %v4915_v0 = vpop.xlane.xlu1 %4914 }
0x289a   :  { %v4923_v55 = vmul.f32 0.027777778, %v4915_v0  ;;  %v4912_v58 = vpop.xlane.xlu0 %4911 }
0x289b   :  { %v4922_v44 = vmul.f32 0.027777778, %v4912_v58 }
0x289c   :  { %v4927_v47 = vadd.f32 1e-05, %v4923_v55 }
0x289d   :  { %v4926_v60 = vadd.f32 1e-05, %v4922_v44 }
0x289e   :  { %9157 = vrsqrt.f32 %v4927_v47 }
0x289f   :  { %9159 = vrsqrt.f32 %v4926_v60 }
0x28a8   :  { %v9158_v61 = vpop.eup %9157 }
0x28a9   :  { %v9160_v63 = vpop.eup %9159  ;;  %v4935_v1 = vmul.f32 %v9158_v61, %v4903_v43 }
0x28aa   :  { %v4934_v50 = vmul.f32 %v9160_v63, %v4902_v22 }
0x28ab   :  { %v4943_v15 = vmul.f32 %v4941_v57, %v4935_v1 }
0x28ac   :  { %v4942_v17 = vmul.f32 %v4941_v57, %v4934_v50 }
0x28ad   :  { %v4897_v18 = vpop.xlane.xlu1 %4896  ;;  %v10346_v51 = vadd.f32 %v4949_v6, %v4943_v15 }
0x28ae   :  { %v4901_v20 = vmul.f32 0.027777778, %v4897_v18  ;;  %v4894_v49 = vpop.xlane.xlu0 %4893  ;;  %v10344_v24 = vadd.f32 %v4949_v6, %v4942_v17 }
0x28af   :  { %v4900_v59 = vmul.f32 0.027777778, %v4894_v49 }
0x28b0   :  { %v4905_v62 = vsub.f32 %v4885_v30, %v4901_v20  ;;  %8152 = vmatprep.mubr.msk.f32.mxu1 %vm459_vm6, %v10344_v24 }
0x28b1   :  { %v4904_v48 = vsub.f32 %v4884_v27, %v4900_v59  ;;  %8153 = vmatmul.mubr.msk.f32.vlgmr.msra.gmra.mrb[50].mxu1 %vm459_vm6, %v10346_v51 }
0x28b2   :  { %v4909_v7 = vmul.f32 %v4905_v62, %v4905_v62 }
0x28b3   :  { %v4908_v21 = vmul.f32 %v4904_v48, %v4904_v48 }
0x28b4   :  { %v4919_v28 = vsel %vm459_vm6, %v4909_v7, 0.0 }
0x28b5   :  { %4920 = vadd.xlane.f32.xlu1 %v4919_v28  ;;  %v4916_v38 = vsel %vm459_vm6, %v4908_v21, 0.0 }
0x28b6   :  { %4917 = vadd.xlane.f32.xlu0 %v4916_v38 }
0x2942   :  { %v4921_v29 = vpop.xlane.xlu1 %4920 }
0x2943   :  { %v4925_v36 = vmul.f32 0.027777778, %v4921_v29  ;;  %v4918_v52 = vpop.xlane.xlu0 %4917 }
0x2944   :  { %v4924_v2 = vmul.f32 0.027777778, %v4918_v52 }
0x2945   :  { %v4929_v41 = vadd.f32 1e-05, %v4925_v36 }
0x2946   :  { %v4928_v5 = vadd.f32 1e-05, %v4924_v2 }
0x2947   :  { %9161 = vrsqrt.f32 %v4929_v41 }
0x2948   :  { %9163 = vrsqrt.f32 %v4928_v5 }
0x2951   :  { %v9162_v42 = vpop.eup %9161 }
0x2952   :  { %v9164_v35 = vpop.eup %9163  ;;  %v4937_v40 = vmul.f32 %v9162_v42, %v4905_v62 }
0x2953   :  { %v4936_v43 = vmul.f32 %v9164_v35, %v4904_v48 }
0x2954   :  { %v4945_v22 = vmul.f32 %v4941_v57, %v4937_v40 }
0x2955   :  { %v4944_v56 = vmul.f32 %v4941_v57, %v4936_v43 }
0x2956   :  { %v10356_v37 = vadd.f32 %v4949_v6, %v4945_v22 }
0x2957   :  { %v10354_v39 = vadd.f32 %v4949_v6, %v4944_v56 }
0x2959   :  { %8155 = vmatprep.mubr.msk.f32.mxu1 %vm459_vm6, %v10354_v39 }
0x295a   :  { %8156 = vmatmul.mubr.msk.f32.gmra.mrb[52].mxu1 %vm459_vm6, %v10356_v37 }
0x2984   :  { %v8154_v3 = vpop.f32.mrb[50].mxu1 }
0x2985   :  { %v10365_v45 = vadd.f32 %v8154_v3, %v7121_v19  ;;  %v5048_v46 = vpop.f32.mrb[51].mxu1 }
0x2986   :  { %v10367_v32 = vadd.f32 %v7121_v19, %v5048_v46 }
0x2988   :  { %8162 = vmatprep.mubr.msk.f32.mxu1 %vm567_vm8, %v10367_v32  ;;  %v10373_v30 = vpack.i.bf16 %v10365_v45, %v10367_v32 }
0x298a   :  { %8980 = vrot.lane.b32.xlu0 %v10373_v30, %s9214_s19 }
0x29fc   :  { %v8981_v27 = vpop.permute.xlu0 %8980 }
0x29fd   :  { %v8983_v16 = vunpack.i.h.bf16 %v8981_v27  ;;  %v8982_v53 = vunpack.i.l.bf16 %v8981_v27 }
0x29ff   :  { %v8714_v54 = vpack.c.bf16 %v8983_v16, %v8982_v53 }
0x2a01   :  { %8716 = vmatprep.subr.msk.bf16.mxu1 %vm9461_vm9, %v8714_v54 }
0x2a02   :  { %8719 = vmatpush3.bf16.xpose.msk.msra.mxu1 %vm9461_vm9, %v8714_v54 }
0x2a09   :  { %8163 = vmatmul.mubr.msk.f32.vlgmr.msra.gmra.mrb[54].mxu1 %vm567_vm8, %v10365_v45 }
0x2a2d   :  { %v8157_v26 = vpop.f32.mrb[52].mxu1 }
0x2a2e   :  { %v10383_v23 = vadd.f32 %v8157_v26, %v7121_v19  ;;  %v5058_v9 = vpop.f32.mrb[53].mxu1 }
0x2a2f   :  { %v5059_v10 = vadd.f32 %v7121_v19, %v5058_v9 }
0x2a31   :  { %v10386_v25 = vpack.i.bf16 %v10383_v23, %v5059_v10 }
0x2a33   :  { %8990 = vrot.lane.b32.xlu0 %v10386_v25, %s9214_s19 }
0x2aa5   :  { %v8991_v59 = vpop.permute.xlu0 %8990 }
0x2aa6   :  { %v8993_v48 = vunpack.i.h.bf16 %v8991_v59  ;;  %v8992_v7 = vunpack.i.l.bf16 %v8991_v59 }
0x2aa8   :  { %v8724_v29 = vpack.c.bf16 %v8993_v48, %v8992_v7 }
0x2adc   :  { %v8164_v8 = vpop.f32.mrb[54].mxu1 }
0x2add   :  { %v5147_v0 = vpop.f32.mrb[55].mxu1  ;;  %v5157_v58 = vmul.f32 0.23570226, %v8164_v8 }
0x2ade   :  { %v5156_v55 = vmul.f32 0.23570226, %v5147_v0 }
0x2adf   :  { %v5161_v47 = vsel %vm74_vm0, %v5157_v58, -inf }
0x2ae0   :  { %v5158_v44 = vsel %vm74_vm0, %v5156_v55, -inf }
0x2ae1   :  { %5159 = vmax.xlane.f32.xlu1 %v5158_v44  ;;  %v7140_v44 = vld [vmem:[%s10792_s5 + $0x98] sm:$0xff] }
0x2ae5   :  { %5162 = vmax.xlane.f32.xlu1 %v5161_v47 }
0x2b6e   :  { %v5160_v60 = vpop.xlane.xlu1 %5159 }
0x2b6f   :  { %v5164_v57 = vsub.f32 %v5156_v55, %v5160_v60 }
0x2b71   :  { %v5166_v1 = vmul.f32 1.442695, %v5164_v57 }
0x2b72   :  { %v5163_v61 = vpop.xlane.xlu1 %5162 }
0x2b73   :  { %v5165_v63 = vsub.f32 %v5157_v58, %v5163_v61  ;;  %v7139_v58 = vld [vmem:[%s10792_s5 + $0x90] sm:$0xff] }
0x2b75   :  { %v5168_v50 = vmul.f32 1.442695, %v5165_v63 }
0x2b77   :  { %9165 = vpow2.f32 %v5168_v50 }
0x2b78   :  { %9167 = vpow2.f32 %v5166_v1 }
0x2b81   :  { %v9166_v6 = vpop.eup %9165 }
0x2b82   :  { %v5173_v15 = vsel %vm74_vm0, %v9166_v6, 0.0  ;;  %v9168_v17 = vpop.eup %9167 }
0x2b83   :  { %5174 = vadd.xlane.f32.xlu1 %v5173_v15  ;;  %v5170_v18 = vsel %vm74_vm0, %v9168_v17, 0.0 }
0x2b87   :  { %5171 = vadd.xlane.f32.xlu1 %v5170_v18 }
0x2b98   :  { %8985 = vrot.lane.b32.xlu1 %v10373_v30, %s9217_s22 }
0x2c10   :  { %v5175_v20 = vpop.xlane.xlu1 %5174 }
0x2c11   :  { %9169 = vrcp.f32 %v5175_v20 }
0x2c14   :  { %v5172_v49 = vpop.xlane.xlu1 %5171 }
0x2c15   :  { %9171 = vrcp.f32 %v5172_v49 }
0x2c18   :  { %v8986_v62 = vpop.permute.xlu1 %8985 }
0x2c19   :  { %v8988_v21 = vunpack.i.h.bf16 %v8986_v62  ;;  %v8987_v28 = vunpack.i.l.bf16 %v8986_v62 }
0x2c1b   :  { %v8720_v38 = vpack.c.bf16 %v8988_v21, %v8987_v28  ;;  %v9170_v36 = vpop.eup %9169 }
0x2c1c   :  { %v5179_v41 = vmul.f32 %v9170_v36, %v9166_v6  ;;  %v7141_v6 = vld [vmem:[%s10792_s5 + $0xa0] sm:$0x3] }
0x2c1d   :  { %8721 = vmatprep.subr.bf16.mxu1 %v8720_v38 }
0x2c1e   :  { %8723 = vmatpush3.bf16.msra.mxu1 %v8720_v38 }
0x2c1f   :  { %v9172_v52 = vpop.eup %9171  ;;  %8726 = vmatprep.subr.msk.bf16.mxu1 %vm9461_vm9, %v8724_v29 }
0x2c20   :  { %v5178_v2 = vmul.f32 %v9172_v52, %v9168_v17 }
0x2c22   :  { %8169 = vmatprep.mubr.msk.f32.mxu1 %vm74_vm0, %v5178_v2 }
0x2c23   :  { %8170 = vmatmul.mubr.msk.f32.vlgmr.msra.gmra.mrb[56].mxu1 %vm74_vm0, %v5179_v41 }
0x2c24   :  { %8176 = vmatprep.mubr.msk.f32.mxu1 %vm567_vm8, %v5059_v10 }
0x2c27   :  { %8729 = vmatpush3.bf16.xpose.msk.msra.mxu1 %vm9461_vm9, %v8724_v29 }
0x2c2e   :  { %8177 = vmatmul.mubr.msk.f32.vlgmr.msra.gmra.mrb[58].mxu1 %vm567_vm8, %v10383_v23 }
0x2cf6   :  { %v8171_v5 = vpop.f32.mrb[56].mxu1 }
0x2cf7   :  { %v5258_v42 = vpop.f32.mrb[57].mxu1 }
0x2d01   :  { %v8178_v35 = vpop.f32.mrb[58].mxu1 }
0x2d02   :  { %v5357_v40 = vmul.f32 0.23570226, %v8178_v35  ;;  %v5347_v43 = vpop.f32.mrb[59].mxu1 }
0x2d03   :  { %v5356_v22 = vmul.f32 0.23570226, %v5347_v43 }
0x2d04   :  { %v5361_v56 = vsel %vm74_vm0, %v5357_v40, -inf }
0x2d05   :  { %5362 = vmax.xlane.f32.xlu1 %v5361_v56  ;;  %v5358_v19 = vsel %vm74_vm0, %v5356_v22, -inf }
0x2d06   :  { %5359 = vmax.xlane.f32.xlu0 %v5358_v19 }
0x2d16   :  { %9000 = vrot.lane.b32.xlu1 %v10373_v30, %s9215_s20 }
0x2d1a   :  { %5579 = vrot.lane.b32.xlu1 %v10367_v32, %s9216_s21 }
0x2d1e   :  { %5781 = vrot.lane.b32.xlu1 %v5059_v10, %s9216_s21 }
0x2d92   :  { %v5363_v3 = vpop.xlane.xlu1 %5362 }
0x2d93   :  { %v5365_v46 = vsub.f32 %v5357_v40, %v5363_v3  ;;  %v5360_v27 = vpop.xlane.xlu0 %5359 }
0x2d94   :  { %v5364_v16 = vsub.f32 %v5356_v22, %v5360_v27 }
0x2d95   :  { %v5368_v53 = vmul.f32 1.442695, %v5365_v46 }
0x2d96   :  { %v5366_v54 = vmul.f32 1.442695, %v5364_v16  ;;  %v9001_v63 = vpop.permute.xlu1 %9000 }
0x2d97   :  { %9173 = vpow2.f32 %v5368_v53  ;;  %v9003_v15 = vunpack.i.h.bf16 %v9001_v63  ;;  %v9002_v17 = vunpack.i.l.bf16 %v9001_v63 }
0x2d98   :  { %9175 = vpow2.f32 %v5366_v54 }
0x2d99   :  { %v8738_v18 = vpack.c.bf16 %v9003_v15, %v9002_v17 }
0x2d9a   :  { %v5580_v7 = vpop.permute.xlu1 %5579 }
0x2d9e   :  { %v5782_v29 = vpop.permute.xlu1 %5781 }
0x2da1   :  { %v9174_v26 = vpop.eup %9173 }
0x2da2   :  { %v5373_v9 = vsel %vm74_vm0, %v9174_v26, 0.0  ;;  %v9176_v8 = vpop.eup %9175 }
0x2da3   :  { %5374 = vadd.xlane.f32.xlu0 %v5373_v9  ;;  %v5370_v0 = vsel %vm74_vm0, %v9176_v8, 0.0 }
0x2da7   :  { %5371 = vadd.xlane.f32.xlu0 %v5370_v0 }
0x2dbd   :  { %8995 = vrot.lane.b32.xlu0 %v10386_v25, %s9217_s22 }
0x2dc1   :  { %9005 = vrot.lane.b32.xlu0 %v10386_v25, %s9215_s20 }
0x2dc5   :  { %5581 = vrot.lane.b32.xlu0 %v10365_v45, %s9216_s21  ;;  %v8734_v45 = vpack.c.bf16 %v7140_v44, %v7139_v58 }
0x2dc9   :  { %5783 = vrot.lane.b32.xlu0 %v10383_v23, %s9216_s21 }
0x2e30   :  { %v5375_v32 = vpop.xlane.xlu0 %5374 }
0x2e31   :  { %9177 = vrcp.f32 %v5375_v32 }
0x2e34   :  { %v5372_v10 = vpop.xlane.xlu0 %5371 }
0x2e35   :  { %9179 = vrcp.f32 %v5372_v10 }
0x2e38   :  { %v8996_v55 = vpop.permute.xlu0 %8995 }
0x2e39   :  { %v8998_v47 = vunpack.i.h.bf16 %v8996_v55  ;;  %v8997_v60 = vunpack.i.l.bf16 %v8996_v55 }
0x2e3b   :  { %v8730_v57 = vpack.c.bf16 %v8998_v47, %v8997_v60  ;;  %v9178_v61 = vpop.eup %9177 }
0x2e3c   :  { %v5379_v50 = vmul.f32 %v9178_v61, %v9174_v26  ;;  %v9006_v20 = vpop.permute.xlu0 %9005 }
0x2e3d   :  { %8731 = vmatprep.subr.bf16.mxu0 %v8730_v57  ;;  %v9008_v49 = vunpack.i.h.bf16 %v9006_v20  ;;  %v9007_v59 = vunpack.i.l.bf16 %v9006_v20 }
0x2e3e   :  { %8733 = vmatpush3.bf16.msra.mxu0 %v8730_v57 }
0x2e3f   :  { %v9180_v23 = vpop.eup %9179  ;;  %8735 = vmatprep.subr.bf16.mxu0 %v8734_v45  ;;  %v8748_v62 = vpack.c.bf16 %v9008_v49, %v9007_v59 }
0x2e40   :  { %v5378_v1 = vmul.f32 %v9180_v23, %v9176_v8  ;;  %v5582_v28 = vpop.permute.xlu0 %5581 }
0x2e42   :  { %8183 = vmatprep.mubr.msk.f32.mxu0 %vm74_vm0, %v5378_v1 }
0x2e43   :  { %8184 = vmatmul.mubr.msk.f32.vlgmr.msra.gmra.mrb[54].mxu0 %vm74_vm0, %v5379_v50 }
0x2e44   :  { %8737 = vmatpush3.bf16.msra.mxu0 %v8734_v45  ;;  %8192 = vmatprep.mubr.msk.f32.mxu0 %vm567_vm8, %v5258_v42  ;;  %v5784_v52 = vpop.permute.xlu0 %5783 }
0x2e45   :  { %8190 = vmatprep.subr.msk.mxu0 %vm977_vm10, %v7141_v6 }
0x2e48   :  { %8191 = vmatpush3.msk.msra.mxu0 %vm977_vm10, %v7141_v6 }
0x2e49   :  { %8193 = vmatmul.mubr.msk.f32.vlgmr.msra.gmra.mrb[56].mxu0 %vm567_vm8, %v8171_v5  ;;  %8740 = vmatprep.subr.msk.bf16.mxu0 %vm9461_vm9, %v8738_v18 }
0x2e4f   :  { %8743 = vmatpush3.bf16.xpose.msk.msra.mxu0 %vm9461_vm9, %v8738_v18 }
0x2e50   :  { %8750 = vmatprep.subr.msk.bf16.mxu0 %vm9461_vm9, %v8748_v62 }
0x2f16   :  { %v8185_v48 = vpop.f32.mrb[54].mxu0 }
0x2f17   :  { %v5458_v21 = vpop.f32.mrb[55].mxu0 }
0x2f18   :  { %8195 = vmatprep.mubr.msk.f32.mxu0 %vm567_vm8, %v5458_v21 }
0x2f19   :  { %8196 = vmatmul.mubr.msk.f32.gmra.mrb[58].mxu0 %vm567_vm8, %v8185_v48 }
0x2f1a   :  { %8202 = vmatprep.mubr.msk.f32.mxu0 %vm567_vm8, %v5580_v7 }
0x2f1c   :  { %v10446_v38 = vpop.f32.mrb[56].mxu0 }
0x2f1d   :  { %v10448_v36 = vpop.f32.mrb[57].mxu0  ;;  %8203 = vmatmul.mubr.msk.f32.vlgmr.msra.gmra.mrb[60].mxu0 %vm567_vm8, %v5582_v28  ;;  %v7159_v28 = vld [vmem:[%s10792_s5 + $0xa8] sm:$0xff] }
0x2f1e   :  { %8753 = vmatpush3.bf16.xpose.msk.msra.mxu0 %vm9461_vm9, %v8748_v62  ;;  %8216 = vmatprep.mubr.msk.f32.mxu0 %vm567_vm8, %v5782_v29  ;;  %v7160_v29 = vld [vmem:[%s10792_s5 + $0xb0] sm:$0xff] }
0x2f25   :  { %8217 = vmatmul.mubr.msk.f32.vlgmr.msra.gmra.mrb[62].mxu0 %vm567_vm8, %v5784_v52 }
0x2fec   :  { %v10455_v2 = vpop.f32.mrb[58].mxu0 }
0x2fed   :  { %v10457_v41 = vpop.f32.mrb[59].mxu0 }
0x2ff0   :  { %v8204_v5 = vpop.f32.mrb[60].mxu0 }
0x2ff1   :  { %v5671_v42 = vmul.f32 0.23570226, %v8204_v5  ;;  %v5661_v35 = vpop.f32.mrb[61].mxu0 }
0x2ff2   :  { %v5670_v40 = vmul.f32 0.23570226, %v5661_v35  ;;  %v8758_v35 = vpack.c.bf16 %v7160_v29, %v7159_v28  ;;  %v7169_v29 = vld [vmem:[%s10794_s7 + $0x88] sm:$0xff] }
0x2ff3   :  { %v5675_v43 = vsel %vm74_vm0, %v5671_v42, -inf }
0x2ff4   :  { %5676 = vmax.xlane.f32.xlu0 %v5675_v43  ;;  %v5672_v22 = vsel %vm74_vm0, %v5670_v40, -inf }
0x2ff5   :  { %5673 = vmax.xlane.f32.xlu1 %v5672_v22 }
0x2ff8   :  { %v8218_v4 = vpop.f32.mrb[62].mxu0 }
0x2ff9   :  { %v5873_v56 = vmul.f32 0.23570226, %v8218_v4  ;;  %v5863_v19 = vpop.f32.mrb[63].mxu0  ;;  %v7161_v4 = vld [vmem:[%s10792_s5 + $0xb8] sm:$0x3] }
0x2ffa   :  { %v5872_v3 = vmul.f32 0.23570226, %v5863_v19 }
0x2ffb   :  { %v5877_v46 = vsel %vm74_vm0, %v5873_v56, -inf }
0x2ffc   :  { %5878 = vmax.xlane.f32.xlu1 %v5877_v46  ;;  %v5874_v27 = vsel %vm74_vm0, %v5872_v3, -inf }
0x2ffd   :  { %5875 = vmax.xlane.f32.xlu0 %v5874_v27  ;;  %v10493_v27 = vld [vmem:[%s10793_s6 + $0x18] sm:$0x3f] }
0x3081   :  { %v5677_v16 = vpop.xlane.xlu0 %5676 }
0x3082   :  { %v5679_v53 = vsub.f32 %v5671_v42, %v5677_v16  ;;  %v5674_v54 = vpop.xlane.xlu1 %5673  ;;  %v5574_v16 = vrot.slane %v10493_v27, %v9571_v11 }
0x3083   :  { %v5678_v26 = vsub.f32 %v5670_v40, %v5674_v54 }
0x3084   :  { %v5682_v9 = vmul.f32 1.442695, %v5679_v53  ;;  %v5576_v53 = vadd.f32 %v10446_v38, %v5574_v16  ;;  %v5575_v54 = vadd.f32 %v5574_v16, %v10448_v36 }
0x3085   :  { %v5680_v8 = vmul.f32 1.442695, %v5678_v26 }
0x3086   :  { %9181 = vpow2.f32 %v5682_v9 }
0x3087   :  { %9183 = vpow2.f32 %v5680_v8 }
0x3089   :  { %v5879_v0 = vpop.xlane.xlu1 %5878 }
0x308a   :  { %v5881_v32 = vsub.f32 %v5873_v56, %v5879_v0  ;;  %v5876_v10 = vpop.xlane.xlu0 %5875 }
0x308b   :  { %v5880_v55 = vsub.f32 %v5872_v3, %v5876_v10 }
0x308c   :  { %v5884_v58 = vmul.f32 1.442695, %v5881_v32  ;;  %v5578_v32 = vadd.f32 %v10455_v2, %v5574_v16 }
0x308d   :  { %v5882_v44 = vmul.f32 1.442695, %v5880_v55  ;;  %v5577_v55 = vadd.f32 %v5574_v16, %v10457_v41  ;;  %v7184_v16 = vld [vmem:[%s10795_s9 + $0x1b0] sm:$0xff] }
0x308e   :  { %9185 = vpow2.f32 %v5884_v58 }
0x308f   :  { %9187 = vpow2.f32 %v5882_v44 }
0x3090   :  { %v9182_v47 = vpop.eup %9181 }
0x3091   :  { %v9184_v60 = vpop.eup %9183  ;;  %v5687_v57 = vsel %vm74_vm0, %v9182_v47, 0.0 }
0x3092   :  { %5688 = vadd.xlane.f32.xlu1 %v5687_v57  ;;  %v5684_v45 = vsel %vm74_vm0, %v9184_v60, 0.0 }
0x3093   :  { %5685 = vadd.xlane.f32.xlu0 %v5684_v45 }
0x3098   :  { %v9186_v61 = vpop.eup %9185 }
0x3099   :  { %v9188_v23 = vpop.eup %9187  ;;  %v5889_v63 = vsel %vm74_vm0, %v9186_v61, 0.0 }
0x309a   :  { %5890 = vadd.xlane.f32.xlu1 %v5889_v63  ;;  %v5886_v1 = vsel %vm74_vm0, %v9188_v23, 0.0 }
0x309b   :  { %5887 = vadd.xlane.f32.xlu0 %v5886_v1 }
0x30ab   :  { %9015 = vrot.lane.b32.xlu1 %v10386_v25, %s9218_s27 }
0x30b1   :  { %9010 = vrot.lane.b32.xlu0 %v10373_v30, %s9218_s27 }
0x311f   :  { %v5689_v6 = vpop.xlane.xlu1 %5688 }
0x3120   :  { %v5686_v50 = vpop.xlane.xlu0 %5685 }
0x3121   :  { %9189 = vrcp.f32 %v5686_v50 }
0x3122   :  { %9191 = vrcp.f32 %v5689_v6 }
0x3127   :  { %v5891_v15 = vpop.xlane.xlu1 %5890 }
0x3128   :  { %v5888_v17 = vpop.xlane.xlu0 %5887 }
0x3129   :  { %9193 = vrcp.f32 %v5888_v17 }
0x312a   :  { %9195 = vrcp.f32 %v5891_v15 }
0x312b   :  { %v9190_v18 = vpop.eup %9189  ;;  %v9016_v20 = vpop.permute.xlu1 %9015 }
0x312c   :  { %v9011_v49 = vpop.permute.xlu0 %9010  ;;  %v5692_v59 = vmul.f32 %v9190_v18, %v9184_v60  ;;  %v9018_v62 = vunpack.i.h.bf16 %v9016_v20  ;;  %v9017_v48 = vunpack.i.l.bf16 %v9016_v20  ;;  %v9192_v30 = vpop.eup %9191 }
0x312d   :  { %v9013_v7 = vunpack.i.h.bf16 %v9011_v49  ;;  %v9012_v21 = vunpack.i.l.bf16 %v9011_v49  ;;  %v5693_v42 = vmul.f32 %v9192_v30, %v9182_v47  ;;  %v7168_v30 = vld [vmem:[%s10794_s7 + $0x80] sm:$0xff] }
0x312e   :  { %8209 = vmatprep.mubr.msk.f32.mxu1 %vm74_vm0, %v5692_v59  ;;  %v8754_v52 = vpack.c.bf16 %v9018_v62, %v9017_v48 }
0x312f   :  { %v8744_v25 = vpack.c.bf16 %v9013_v7, %v9012_v21 }
0x3131   :  { %8745 = vmatprep.subr.bf16.mxu1 %v8744_v25 }
0x3132   :  { %8747 = vmatpush3.bf16.msra.mxu1 %v8744_v25  ;;  %v7167_v25 = vld [vmem:[%s10794_s7 + $0x78] sm:$0xff] }
0x3133   :  { %v9194_v5 = vpop.eup %9193  ;;  %8755 = vmatprep.subr.bf16.mxu1 %v8754_v52  ;;  %v8762_v28 = vpack.c.bf16 %v7168_v30, %v7167_v25 }
0x3134   :  { %v9196_v40 = vpop.eup %9195  ;;  %v5894_v43 = vmul.f32 %v9194_v5, %v9188_v23 }
0x3135   :  { %8210 = vmatmul.mubr.msk.f32.vlgmr.msra.gmra.mrb[60].mxu1 %vm74_vm0, %v5693_v42  ;;  %v5895_v22 = vmul.f32 %v9196_v40, %v9186_v61  ;;  %8763 = vmatprep.subr.bf16.mxu0 %v8762_v28  ;;  %v7171_v42 = vld [vmem:[%s10794_s7 + $0x98] sm:$0xf]  ;;  %v7179_v40 = vld [vmem:[%s10795_s9 + $0x188] sm:$0xff] }
0x3136   :  { %8757 = vmatpush3.bf16.msra.mxu1 %v8754_v52  ;;  %8223 = vmatprep.mubr.msk.f32.mxu1 %vm74_vm0, %v5894_v43  ;;  %v7170_v52 = vld [vmem:[%s10794_s7 + $0x90] sm:$0xff] }
0x3137   :  { %8759 = vmatprep.subr.bf16.mxu1 %v8758_v35  ;;  %8765 = vmatpush3.bf16.msra.mxu0 %v8762_v28  ;;  %v8766_v5 = vpack.c.bf16 %v7170_v52, %v7169_v29  ;;  %v7180_v43 = vld [vmem:[%s10795_s9 + $0x190] sm:$0xff]  ;;  %v7172_v28 = vld [vmem:[%s10796_s8 + $0x3] ss:$0 sm:$0xff] }
0x3139   :  { %8224 = vmatmul.mubr.msk.f32.vlgmr.msra.gmra.mrb[62].mxu1 %vm74_vm0, %v5895_v22  ;;  %8767 = vmatprep.subr.bf16.mxu0 %v8766_v5 }
0x313a   :  { %8761 = vmatpush3.bf16.msra.mxu1 %v8758_v35  ;;  %v7178_v35 = vld [vmem:[%s10795_s9 + $0x180] sm:$0xff] }
0x313b   :  { %8230 = vmatprep.subr.msk.mxu1 %vm977_vm10, %v7161_v4  ;;  %8769 = vmatpush3.bf16.msra.mxu0 %v8766_v5  ;;  %v8770_v22 = vpack.c.bf16 %v7179_v40, %v7178_v35 }
0x313c   :  { %8246 = vmatprep.subr.msk.mxu0 %vm472_vm7, %v7171_v42 }
0x313e   :  { %8231 = vmatpush3.msk.msra.mxu1 %vm977_vm10, %v7161_v4  ;;  %v7181_v4 = vld [vmem:[%s10795_s9 + $0x198] sm:$0xff] }
0x313f   :  { %8247 = vmatpush3.msk.msra.mxu0 %vm472_vm7, %v7171_v42  ;;  %8771 = vmatprep.subr.bf16.mxu1 %v8770_v22 }
0x3208   :  { %v8211_v56 = vpop.f32.mrb[60].mxu1 }
0x3209   :  { %v5772_v19 = vpop.f32.mrb[61].mxu1 }
0x320a   :  { %8232 = vmatprep.mubr.msk.f32.mxu1 %vm567_vm8, %v5772_v19  ;;  %v7182_v19 = vld [vmem:[%s10795_s9 + $0x1a0] sm:$0xff] }
0x320b   :  { %8233 = vmatmul.mubr.msk.f32.vlgmr.msra.gmra.mrb[64].mxu1 %vm567_vm8, %v8211_v56  ;;  %v8774_v56 = vpack.c.bf16 %v7181_v4, %v7180_v43 }
0x320c   :  { %v8225_v3 = vpop.f32.mrb[62].mxu1  ;;  %8773 = vmatpush3.bf16.msra.mxu1 %v8770_v22 }
0x320d   :  { %v5974_v46 = vpop.f32.mrb[63].mxu1  ;;  %8775 = vmatprep.subr.bf16.mxu1 %v8774_v56 }
0x320e   :  { %8235 = vmatprep.mubr.msk.f32.mxu1 %vm567_vm8, %v5974_v46 }
0x320f   :  { %8236 = vmatmul.mubr.msk.f32.gmra.mrb[66].mxu1 %vm567_vm8, %v8225_v3  ;;  %v7183_v3 = vld [vmem:[%s10795_s9 + $0x1a8] sm:$0xff] }
0x3210   :  { %v8778_v46 = vpack.c.bf16 %v7183_v3, %v7182_v19  ;;  %8777 = vmatpush3.bf16.msra.mxu1 %v8774_v56 }
0x3212   :  { %8779 = vmatprep.subr.bf16.mxu1 %v8778_v46 }
0x3214   :  { %8781 = vmatpush3.bf16.msra.mxu1 %v8778_v46  ;;  %v6298_v46 = vrot.slane %v10493_v27, %v9721_v31 }
0x32de   :  { %v8234_v26 = vpop.f32.mrb[64].mxu1 }
0x32df   :  { %v6088_v9 = vadd.f32 %v8234_v26, %v5576_v53  ;;  %v6068_v8 = vpop.f32.mrb[65].mxu1  ;;  %v7185_v53 = vld [vmem:[%s10795_s9 + $0x1b8] sm:$0xff]  ;;  %v7186_v26 = vld [vmem:[%s10795_s9 + $0x1c0] sm:$0xff] }
0x32e0   :  { %v6087_v0 = vadd.f32 %v6068_v8, %v5575_v54  ;;  %v8782_v54 = vpack.c.bf16 %v7185_v53, %v7184_v16 }
0x32e1   :  { %v6092_v10 = vadd.f32 %v6088_v9, %v10346_v51  ;;  %v7187_v9 = vld [vmem:[%s10795_s9 + $0x1c8] sm:$0xff] }
0x32e2   :  { %v6091_v58 = vadd.f32 %v6087_v0, %v10344_v24  ;;  %v8237_v44 = vpop.f32.mrb[66].mxu1  ;;  %8783 = vmatprep.subr.bf16.mxu1 %v8782_v54  ;;  %v8786_v8 = vpack.c.bf16 %v7187_v9, %v7186_v26  ;;  %v7188_v0 = vld [vmem:[%s10795_s9 + $0x1d0] sm:$0xff] }
0x32e3   :  { %v6090_v47 = vadd.f32 %v8237_v44, %v5578_v32  ;;  %v6078_v60 = vpop.f32.mrb[67].mxu1  ;;  %v6098_v11 = vsel %vm459_vm6, %v6092_v10, 0.0  ;;  %v7189_v32 = vld [vmem:[%s10795_s9 + $0x1d8] sm:$0xff]  ;;  %8785 = vmatpush3.bf16.msra.mxu1 %v8782_v54 }
0x32e4   :  { %v6089_v38 = vadd.f32 %v6078_v60, %v5577_v55  ;;  %6099 = vadd.xlane.f32.xlu0 %v6098_v11  ;;  %v6095_v36 = vsel %vm459_vm6, %v6091_v58, 0.0  ;;  %8787 = vmatprep.subr.bf16.mxu1 %v8786_v8  ;;  %v7190_v55 = vld [vmem:[%s10795_s9 + $0x1e0] sm:$0xff] }
0x32e5   :  { %v6094_v57 = vadd.f32 %v6090_v47, %v10356_v37  ;;  %6096 = vadd.xlane.f32.xlu1 %v6095_v36 }
0x32e6   :  { %v6093_v2 = vadd.f32 %v6089_v38, %v10354_v39 }
0x32e7   :  { %v6104_v51 = vsel %vm459_vm6, %v6094_v57, 0.0  ;;  %8789 = vmatpush3.bf16.msra.mxu1 %v8786_v8 }
0x32e8   :  { %v6101_v41 = vsel %vm459_vm6, %v6093_v2, 0.0 }
0x32e9   :  { %6105 = vadd.xlane.f32.xlu1 %v6104_v51  ;;  %6102 = vadd.xlane.f32.xlu0 %v6101_v41 }
0x3371   :  { %v6100_v24 = vpop.xlane.xlu0 %6099 }
0x3372   :  { %v6108_v45 = vmul.f32 0.027777778, %v6100_v24  ;;  %v6097_v61 = vpop.xlane.xlu1 %6096 }
0x3373   :  { %v6107_v23 = vmul.f32 0.027777778, %v6097_v61 }
0x3374   :  { %v10509_v63 = vsub.f32 %v6092_v10, %v6108_v45  ;;  %v8790_v10 = vpack.c.bf16 %v7189_v32, %v7188_v0 }
0x3375   :  { %v10511_v1 = vsub.f32 %v6091_v58, %v6107_v23  ;;  %v7191_v58 = vld [vmem:[%s10795_s9 + $0x1e8] sm:$0xff]  ;;  %v6150_v23 = vrot.slane %v10493_v27, %v9654_v33 }
0x3376   :  { %v6106_v50 = vpop.xlane.xlu1 %6105  ;;  %v6103_v6 = vpop.xlane.xlu0 %6102  ;;  %v6116_v37 = vmul.f32 %v10509_v63, %v10509_v63  ;;  %8791 = vmatprep.subr.bf16.mxu1 %v8790_v10  ;;  %v8794_v44 = vpack.c.bf16 %v7191_v58, %v7190_v55 }
0x3377   :  { %v6110_v39 = vmul.f32 0.027777778, %v6106_v50  ;;  %v6109_v15 = vmul.f32 0.027777778, %v6103_v6  ;;  %v6115_v17 = vmul.f32 %v10511_v1, %v10511_v1  ;;  %8793 = vmatpush3.bf16.msra.mxu1 %v8790_v10 }
0x3378   :  { %v6122_v18 = vsel %vm459_vm6, %v6116_v37, 0.0  ;;  %8795 = vmatprep.subr.bf16.mxu1 %v8794_v44 }
0x3379   :  { %v10518_v20 = vsub.f32 %v6094_v57, %v6110_v39  ;;  %v10520_v49 = vsub.f32 %v6093_v2, %v6109_v15  ;;  %6123 = vadd.xlane.f32.xlu1 %v6122_v18  ;;  %v6119_v59 = vsel %vm459_vm6, %v6115_v17, 0.0  ;;  %v6158_v15 = vrot.slane %v10493_v27, %v9657_v34  ;;  %v7192_v34 = vld [vmem:[%s10795_s9 + $0x1f0] sm:$0xff] }
0x337a   :  { %6120 = vadd.xlane.f32.xlu0 %v6119_v59 }
0x337b   :  { %v6118_v62 = vmul.f32 %v10518_v20, %v10518_v20  ;;  %v6117_v48 = vmul.f32 %v10520_v49, %v10520_v49  ;;  %8797 = vmatpush3.bf16.msra.mxu1 %v8794_v44 }
0x337d   :  { %v6128_v7 = vsel %vm459_vm6, %v6118_v62, 0.0  ;;  %v6125_v21 = vsel %vm459_vm6, %v6117_v48, 0.0 }
0x337e   :  { %6129 = vadd.xlane.f32.xlu1 %v6128_v7  ;;  %6126 = vadd.xlane.f32.xlu0 %v6125_v21 }
0x3406   :  { %v6124_v47 = vpop.xlane.xlu1 %6123 }
0x3407   :  { %v6132_v60 = vmul.f32 0.027777778, %v6124_v47  ;;  %v6121_v11 = vpop.xlane.xlu0 %6120 }
0x3408   :  { %v6131_v38 = vmul.f32 0.027777778, %v6121_v11 }
0x3409   :  { %v6136_v36 = vadd.f32 1e-05, %v6132_v60 }
0x340a   :  { %v6135_v57 = vadd.f32 1e-05, %v6131_v38 }
0x340b   :  { %9197 = vrsqrt.f32 %v6136_v36  ;;  %v6130_v2 = vpop.xlane.xlu1 %6129  ;;  %v6127_v51 = vpop.xlane.xlu0 %6126 }
0x340c   :  { %9199 = vrsqrt.f32 %v6135_v57  ;;  %v6134_v41 = vmul.f32 0.027777778, %v6130_v2  ;;  %v6133_v24 = vmul.f32 0.027777778, %v6127_v51 }
0x340e   :  { %v6138_v45 = vadd.f32 1e-05, %v6134_v41  ;;  %v6137_v61 = vadd.f32 1e-05, %v6133_v24 }
0x3410   :  { %9201 = vrsqrt.f32 %v6138_v45 }
0x3411   :  { %9203 = vrsqrt.f32 %v6137_v61 }
0x3415   :  { %v9198_v50 = vpop.eup %9197 }
0x3416   :  { %v9200_v6 = vpop.eup %9199  ;;  %v6144_v37 = vmul.f32 %v9198_v50, %v10509_v63 }
0x3417   :  { %v6143_v39 = vmul.f32 %v9200_v6, %v10511_v1 }
0x3418   :  { %v6152_v17 = vmul.f32 %v6150_v23, %v6144_v37 }
0x3419   :  { %v6151_v18 = vmul.f32 %v6150_v23, %v6143_v39 }
0x341a   :  { %v9202_v59 = vpop.eup %9201  ;;  %v6160_v21 = vadd.f32 %v6158_v15, %v6152_v17 }
0x341b   :  { %v9204_v62 = vpop.eup %9203  ;;  %v6159_v48 = vadd.f32 %v6158_v15, %v6151_v18  ;;  %v6146_v7 = vmul.f32 %v9202_v59, %v10518_v20  ;;  %v7193_v20 = vld [vmem:[%s10795_s9 + $0x1f8] sm:$0xff] }
0x341c   :  { %v6145_v25 = vmul.f32 %v9204_v62, %v10520_v49  ;;  %v8798_v49 = vpack.c.bf16 %v7193_v20, %v7192_v34 }
0x341d   :  { %8248 = vmatprep.mubr.msk.f32.mxu0 %vm459_vm6, %v6159_v48  ;;  %v6154_v33 = vmul.f32 %v6150_v23, %v6146_v7  ;;  %v6456_v7 = vld [vmem:[%s10797_s10] sm:$0xff] }
0x341e   :  { %8249 = vmatmul.mubr.msk.f32.vlgmr.msra.gmra.mrb[64].mxu0 %vm459_vm6, %v6160_v21  ;;  %v6153_v63 = vmul.f32 %v6150_v23, %v6145_v25  ;;  %8799 = vmatprep.subr.bf16.mxu1 %v8798_v49 }
0x341f   :  { %v6162_v1 = vadd.f32 %v6158_v15, %v6154_v33  ;;  %8801 = vmatpush3.bf16.msra.mxu1 %v8798_v49  ;;  %v6458_v33 = vld [vmem:[%s10797_s10 + $0x10] sm:$0xff] }
0x3420   :  { %v6161_v30 = vadd.f32 %v6158_v15, %v6153_v63  ;;  %v6459_v63 = vld [vmem:[%s10797_s10 + $0x18] sm:$0xff] }
0x3422   :  { %8251 = vmatprep.mubr.msk.f32.mxu0 %vm459_vm6, %v6161_v30 }
0x3423   :  { %8252 = vmatmul.mubr.msk.f32.gmra.mrb[66].mxu0 %vm459_vm6, %v6162_v1 }
0x34f1   :  { %v8250_v29 = vpop.f32.mrb[64].mxu0 }
0x34f2   :  { %v6261_v52 = vadd.f32 %v8250_v29, %v7172_v28  ;;  %v6255_v5 = vpop.f32.mrb[65].mxu0 }
0x34f3   :  { %v6256_v42 = vadd.f32 %v7172_v28, %v6255_v5 }
0x34f4   :  { %v6275_v40 = vmax.f32 %v6261_v52, 0.0 }
0x34f5   :  { %v6274_v35 = vmax.f32 %v6256_v42, 0.0 }
0x34f6   :  { %v8253_v43 = vpop.f32.mrb[66].mxu0 }
0x34f7   :  { %v6271_v22 = vadd.f32 %v8253_v43, %v7172_v28  ;;  %v6265_v4 = vpop.f32.mrb[67].mxu0  ;;  %8286 = vmatprep.mubr.f32.mxu1 %v6274_v35 }
0x34f8   :  { %v6266_v56 = vadd.f32 %v7172_v28, %v6265_v4  ;;  %8287 = vmatmul.mubr.f32.vlgmr.msra.gmra.mrb[68].mxu1 %v6275_v40  ;;  %v6443_v4 = vrot.slane %v10493_v27, %v9755_v12 }
0x34f9   :  { %v6277_v3 = vmax.f32 %v6271_v22, 0.0 }
0x34fa   :  { %v6276_v19 = vmax.f32 %v6266_v56, 0.0 }
0x34fc   :  { %8289 = vmatprep.mubr.f32.mxu1 %v6276_v19 }
0x34fd   :  { %8290 = vmatmul.mubr.f32.gmra.mrb[70].mxu1 %v6277_v3 }
0x34fe   :  { %8337 = vmatprep.mubr.msk.f32.mxu1 %vm9220_vm11, %v9213_v14 }
0x35cb   :  { %v8288_v16 = vpop.f32.mrb[68].mxu1 }
0x35cc   :  { %v6371_v53 = vadd.f32 %v8288_v16, %v6298_v46  ;;  %v6365_v54 = vpop.f32.mrb[69].mxu1  ;;  %v6451_v16 = vrot.slane %v10493_v27, %v9758_v13  ;;  %v9219_v13 = vmov 0.0|0.0   ;;  %v9221_v27 = vmov 0  }
0x35cd   :  { %v6366_v26 = vadd.f32 %v6365_v54, %v6298_v46  ;;  %8814 = vmatprep.subr.bf16.mxu1 %v9219_v13  ;;  %9020 = vset.pattern.permute.xlu1 %v9221_v27 }
0x35ce   :  { %v6385_v9 = vadd.f32 %v6371_v53, %v6160_v21  ;;  %v6457_v21 = vld [vmem:[%s10797_s10 + $0x8] sm:$0xff]  ;;  %9019 = vset.pattern.permute.xlu0 %v9221_v27 }
0x35cf   :  { %v6384_v8 = vadd.f32 %v6366_v26, %v6159_v48  ;;  %v8802_v25 = vpack.c.bf16 %v6457_v21, %v6456_v7  ;;  %v6574_v7 = vld [vmem:[%s10800_s12 + $0x10] sm:$0xff]  ;;  %v6575_v21 = vld [vmem:[%s10800_s12 + $0x18] sm:$0xff] }
0x35d0   :  { %v8291_v0 = vpop.f32.mrb[70].mxu1  ;;  %v6391_v32 = vsel %vm459_vm6, %v6385_v9, 0.0 }
0x35d1   :  { %v6381_v10 = vadd.f32 %v8291_v0, %v6298_v46  ;;  %v6375_v55 = vpop.f32.mrb[71].mxu1  ;;  %6392 = vadd.xlane.f32.xlu1 %v6391_v32  ;;  %v6388_v58 = vsel %vm459_vm6, %v6384_v8, 0.0  ;;  %8803 = vmatprep.subr.bf16.mxu0 %v8802_v25 }
0x35d2   :  { %v6376_v44 = vadd.f32 %v6375_v55, %v6298_v46  ;;  %6389 = vadd.xlane.f32.xlu0 %v6388_v58  ;;  %8805 = vmatpush3.bf16.msra.mxu0 %v8802_v25  ;;  %v6576_v25 = vld [vmem:[%s10800_s12 + $0x20] sm:$0xff] }
0x35d3   :  { %v6387_v47 = vadd.f32 %v6381_v10, %v6162_v1  ;;  %v8806_v1 = vpack.c.bf16 %v6459_v63, %v6458_v33  ;;  %v6577_v33 = vld [vmem:[%s10800_s12 + $0x28] sm:$0xff]  ;;  %v6578_v63 = vld [vmem:[%s10800_s12 + $0x30] sm:$0x7] }
0x35d4   :  { %v6386_v60 = vadd.f32 %v6376_v44, %v6161_v30  ;;  %v6460_v30 = vld [vmem:[%s10797_s10 + $0x20] sm:$0xf] }
0x35d5   :  { %v6397_v31 = vsel %vm459_vm6, %v6387_v47, 0.0  ;;  %8807 = vmatprep.subr.bf16.mxu0 %v8806_v1 }
0x35d6   :  { %6398 = vadd.xlane.f32.xlu1 %v6397_v31  ;;  %v6394_v11 = vsel %vm459_vm6, %v6386_v60, 0.0  ;;  %8809 = vmatpush3.bf16.msra.mxu0 %v8806_v1  ;;  %v6581_v31 = vld [vmem:[%s10798_s13 + $0x10] sm:$0xff] }
0x35d7   :  { %6395 = vadd.xlane.f32.xlu0 %v6394_v11  ;;  %8300 = vmatprep.subr.msk.mxu0 %vm472_vm7, %v6460_v30  ;;  %v6582_v11 = vld [vmem:[%s10798_s13 + $0x18] sm:$0xff] }
0x35da   :  { %8301 = vmatpush3.msk.msra.mxu0 %vm472_vm7, %v6460_v30 }
0x35db   :  { %8810 = vmatprep.subr.bf16.mxu0 %v9219_v13 }
0x365e   :  { %v6393_v38 = vpop.xlane.xlu1 %6392 }
0x365f   :  { %v6401_v36 = vmul.f32 0.027777778, %v6393_v38  ;;  %v6390_v57 = vpop.xlane.xlu0 %6389  ;;  %v6583_v38 = vld [vmem:[%s10798_s13 + $0x20] sm:$0xff] }
0x3660   :  { %v6400_v2 = vmul.f32 0.027777778, %v6390_v57  ;;  %v6585_v57 = vld [vmem:[%s10798_s13 + $0x30] sm:$0x7] }
0x3661   :  { %v6405_v51 = vsub.f32 %v6385_v9, %v6401_v36  ;;  %v6584_v36 = vld [vmem:[%s10798_s13 + $0x28] sm:$0xff] }
0x3662   :  { %v6404_v41 = vsub.f32 %v6384_v8, %v6400_v2  ;;  %v7194_v2 = vld [vmem:[%s10799_s11] ss:$0 sm:$0xff] }
0x3663   :  { %v6399_v24 = vpop.xlane.xlu1 %6398  ;;  %v6409_v45 = vmul.f32 %v6405_v51, %v6405_v51 }
0x3664   :  { %v6403_v61 = vmul.f32 0.027777778, %v6399_v24  ;;  %v6396_v23 = vpop.xlane.xlu0 %6395  ;;  %v6408_v50 = vmul.f32 %v6404_v41, %v6404_v41 }
0x3665   :  { %v6402_v6 = vmul.f32 0.027777778, %v6396_v23  ;;  %v6415_v37 = vsel %vm459_vm6, %v6409_v45, 0.0 }
0x3666   :  { %v6407_v39 = vsub.f32 %v6387_v47, %v6403_v61  ;;  %6416 = vadd.xlane.f32.xlu1 %v6415_v37  ;;  %v6412_v15 = vsel %vm459_vm6, %v6408_v50, 0.0  ;;  %v6580_v47 = vld [vmem:[%s10798_s13 + $0x8] sm:$0xff] }
0x3667   :  { %v6406_v17 = vsub.f32 %v6386_v60, %v6402_v6  ;;  %6413 = vadd.xlane.f32.xlu0 %v6412_v15  ;;  %v6579_v60 = vld [vmem:[%s10798_s13] sm:$0xff] }
0x3668   :  { %v6411_v18 = vmul.f32 %v6407_v39, %v6407_v39 }
0x3669   :  { %v6410_v59 = vmul.f32 %v6406_v17, %v6406_v17 }
0x366a   :  { %v6421_v62 = vsel %vm459_vm6, %v6411_v18, 0.0 }
0x366b   :  { %6422 = vadd.xlane.f32.xlu1 %v6421_v62  ;;  %v6418_v48 = vsel %vm459_vm6, %v6410_v59, 0.0  ;;  %v6572_v62 = vld [vmem:[%s10800_s12] sm:$0xff] }
0x366c   :  { %6419 = vadd.xlane.f32.xlu0 %v6418_v48  ;;  %v6573_v48 = vld [vmem:[%s10800_s12 + $0x8] sm:$0xff] }
0x367c   :  { %6593 = vperm.xlu1 %9020, %v6580_v47  }
0x3680   :  { %6598 = vperm.xlu1 %9020, %v6581_v31  }
0x3682   :  { %6588 = vperm.xlu0 %9019, %v6579_v60  }
0x3684   :  { %6603 = vperm.xlu1 %9020, %v6582_v11  }
0x3688   :  { %6608 = vperm.xlu1 %9020, %v6583_v38  }
0x368c   :  { %6613 = vperm.xlu1 %9020, %v6584_v36  }
0x3690   :  { %6618 = vperm.xlu1 %9020, %v6585_v57  }
0x36f3   :  { %v6417_v34 = vpop.xlane.xlu1 %6416 }
0x36f4   :  { %v6425_v20 = vmul.f32 0.027777778, %v6417_v34  ;;  %v6414_v49 = vpop.xlane.xlu0 %6413 }
0x36f5   :  { %v6424_v28 = vmul.f32 0.027777778, %v6414_v49 }
0x36f6   :  { %v6429_v29 = vadd.f32 1e-05, %v6425_v20 }
0x36f7   :  { %v6428_v52 = vadd.f32 1e-05, %v6424_v28 }
0x36f8   :  { %9205 = vrsqrt.f32 %v6429_v29  ;;  %v6423_v5 = vpop.xlane.xlu1 %6422 }
0x36f9   :  { %9207 = vrsqrt.f32 %v6428_v52  ;;  %v6427_v42 = vmul.f32 0.027777778, %v6423_v5  ;;  %v6420_v35 = vpop.xlane.xlu0 %6419 }
0x36fa   :  { %v6426_v40 = vmul.f32 0.027777778, %v6420_v35 }
0x36fb   :  { %v6431_v43 = vadd.f32 1e-05, %v6427_v42 }
0x36fc   :  { %v6430_v22 = vadd.f32 1e-05, %v6426_v40  ;;  %v6594_v1 = vpop.permute.xlu1 %6593 }
0x36fd   :  { %9209 = vrsqrt.f32 %v6431_v43 }
0x36fe   :  { %9211 = vrsqrt.f32 %v6430_v22 }
0x3700   :  { %v6599_v34 = vpop.permute.xlu1 %6598 }
0x3701   :  { %v6589_v30 = vpop.permute.xlu0 %6588 }
0x3702   :  { %v9206_v56 = vpop.eup %9205 }
0x3703   :  { %v9208_v19 = vpop.eup %9207  ;;  %v6437_v3 = vmul.f32 %v9206_v56, %v6405_v51 }
0x3704   :  { %v6436_v46 = vmul.f32 %v9208_v19, %v6404_v41  ;;  %v6604_v35 = vpop.permute.xlu1 %6603 }
0x3705   :  { %v6445_v53 = vmul.f32 %v6443_v4, %v6437_v3 }
0x3706   :  { %v6444_v54 = vmul.f32 %v6443_v4, %v6436_v46 }
0x3707   :  { %v9210_v26 = vpop.eup %9209  ;;  %v6453_v32 = vadd.f32 %v6451_v16, %v6445_v53 }
0x3708   :  { %v9212_v9 = vpop.eup %9211  ;;  %v6452_v8 = vadd.f32 %v6451_v16, %v6444_v54  ;;  %v6439_v0 = vmul.f32 %v9210_v26, %v6407_v39  ;;  %v6609_v46 = vpop.permute.xlu1 %6608 }
0x3709   :  { %v6438_v10 = vmul.f32 %v9212_v9, %v6406_v17 }
0x370a   :  { %8302 = vmatprep.mubr.msk.f32.mxu0 %vm459_vm6, %v6452_v8  ;;  %v6447_v55 = vmul.f32 %v6443_v4, %v6439_v0 }
0x370b   :  { %8303 = vmatmul.mubr.msk.f32.vlgmr.msra.gmra.mrb[68].mxu0 %vm459_vm6, %v6453_v32  ;;  %v6446_v12 = vmul.f32 %v6443_v4, %v6438_v10 }
0x370c   :  { %v6455_v44 = vadd.f32 %v6451_v16, %v6447_v55 }
0x370d   :  { %v6454_v58 = vadd.f32 %v6451_v16, %v6446_v12  ;;  %v6614_v12 = vpop.permute.xlu1 %6613 }
0x370f   :  { %8305 = vmatprep.mubr.msk.f32.mxu0 %vm459_vm6, %v6454_v58 }
0x3710   :  { %8306 = vmatmul.mubr.msk.f32.gmra.mrb[70].mxu0 %vm459_vm6, %v6455_v44 }
0x3711   :  { %8312 = vmatprep.mubr.msk.f32.mxu0 %vm9220_vm11, %v9213_v14  ;;  %v6619_v38 = vpop.permute.xlu1 %6618 }
0x37de   :  { %v8304_v51 = vpop.f32.mrb[68].mxu0 }
0x37df   :  { %v6555_v41 = vadd.f32 %v8304_v51, %v7194_v2  ;;  %v6549_v24 = vpop.f32.mrb[69].mxu0 }
0x37e0   :  { %v6550_v45 = vadd.f32 %v7194_v2, %v6549_v24 }
0x37e1   :  { %v6569_v61 = vmax.f32 %v6555_v41, 0.0 }
0x37e2   :  { %v6568_v23 = vmax.f32 %v6550_v45, 0.0 }
0x37e3   :  { %v8307_v50 = vpop.f32.mrb[70].mxu0 }
0x37e4   :  { %v8811_v6 = vpack.c.bf16 %v6569_v61, %v6568_v23  ;;  %v6565_v37 = vadd.f32 %v8307_v50, %v7194_v2  ;;  %v6559_v39 = vpop.f32.mrb[71].mxu0 }
0x37e5   :  { %v6560_v15 = vadd.f32 %v7194_v2, %v6559_v39 }
0x37e6   :  { %v6571_v17 = vmax.f32 %v6565_v37, 0.0  ;;  %8813 = vmatpush3.bf16.xpose.msk.msra.mxu0 %vm8812_vm13, %v8811_v6 }
0x37e7   :  { %v6570_v18 = vmax.f32 %v6560_v15, 0.0 }
0x37e9   :  { %v8815_v59 = vpack.c.bf16 %v6571_v17, %v6570_v18 }
0x37eb   :  { %8817 = vmatpush3.bf16.xpose.msk.msra.mxu1 %vm8812_vm13, %v8815_v59 }
0x37ed   :  { %8313 = vmatmul.mubr.msk.f32.vlgmr.msra.gmra.mrb[72].mxu0 %vm6621_vm12, %v6572_v62 }
0x37ee   :  { %8315 = vmatprep.mubr.msk.f32.mxu0 %vm9220_vm11, %v9213_v14 }
0x37f1   :  { %8316 = vmatmul.mubr.msk.f32.gmra.mrb[74].mxu0 %vm6621_vm12, %v6573_v48 }
0x37f2   :  { %8338 = vmatmul.mubr.msk.f32.vlgmr.msra.gmra.mrb[72].mxu1 %vm6621_vm12, %v6572_v62  ;;  %8318 = vmatprep.mubr.msk.f32.mxu0 %vm9220_vm11, %v9213_v14 }
0x37f3   :  { %8340 = vmatprep.mubr.msk.f32.mxu1 %vm9220_vm11, %v9213_v14 }
0x37f5   :  { %8319 = vmatmul.mubr.msk.f32.gmra.mrb[76].mxu0 %vm6621_vm12, %v6574_v7 }
0x37f6   :  { %8341 = vmatmul.mubr.msk.f32.gmra.mrb[74].mxu1 %vm6621_vm12, %v6573_v48  ;;  %8321 = vmatprep.mubr.msk.f32.mxu0 %vm9220_vm11, %v9213_v14 }
0x37f7   :  { %8343 = vmatprep.mubr.msk.f32.mxu1 %vm9220_vm11, %v9213_v14 }
0x37f9   :  { %8322 = vmatmul.mubr.msk.f32.gmra.mrb[78].mxu0 %vm6621_vm12, %v6575_v21 }
0x37fa   :  { %8344 = vmatmul.mubr.msk.f32.gmra.mrb[76].mxu1 %vm6621_vm12, %v6574_v7  ;;  %8324 = vmatprep.mubr.msk.f32.mxu0 %vm9220_vm11, %v9213_v14 }
0x37fb   :  { %8346 = vmatprep.mubr.msk.f32.mxu1 %vm9220_vm11, %v9213_v14 }
0x37fd   :  { %8325 = vmatmul.mubr.msk.f32.gmra.mrb[80].mxu0 %vm6621_vm12, %v6576_v25 }
0x37fe   :  { %8347 = vmatmul.mubr.msk.f32.gmra.mrb[78].mxu1 %vm6621_vm12, %v6575_v21  ;;  %8327 = vmatprep.mubr.msk.f32.mxu0 %vm9220_vm11, %v9213_v14 }
0x37ff   :  { %8349 = vmatprep.mubr.msk.f32.mxu1 %vm9220_vm11, %v9213_v14 }
0x3801   :  { %8328 = vmatmul.mubr.msk.f32.gmra.mrb[82].mxu0 %vm6621_vm12, %v6577_v33 }
0x3802   :  { %8350 = vmatmul.mubr.msk.f32.gmra.mrb[80].mxu1 %vm6621_vm12, %v6576_v25  ;;  %8330 = vmatprep.mubr.msk.f32.mxu0 %vm9220_vm11, %v9213_v14 }
0x3803   :  { %8352 = vmatprep.mubr.msk.f32.mxu1 %vm9220_vm11, %v9213_v14 }
0x3805   :  { %8331 = vmatmul.mubr.msk.f32.gmra.mrb[84].mxu0 %vm6621_vm12, %v6578_v63 }
0x3806   :  { %8353 = vmatmul.mubr.msk.f32.gmra.mrb[82].mxu1 %vm6621_vm12, %v6577_v33 }
0x3807   :  { %8355 = vmatprep.mubr.msk.f32.mxu1 %vm9220_vm11, %v9213_v14 }
0x380a   :  { %8356 = vmatmul.mubr.msk.f32.gmra.mrb[84].mxu1 %vm6621_vm12, %v6578_v63 }
0x38c0   :  { %v6715_v20 = vpop.f32.mrb[72].mxu0 }
0x38c1   :  { %v8314_v49 = vpop.f32.mrb[73].mxu0  ;;  %v6716_v28 = vadd.f32 %v6715_v20, %v6589_v30 }
0x38c3   :  { %6749 = vst.msk [vmem:[%s10801_s14] sm:$0xff] %vm74_vm0, %v6716_v28 }
0x38c4   :  { %v6720_v29 = vpop.f32.mrb[74].mxu0 }
0x38c5   :  { %v6829_v52 = vpop.f32.mrb[72].mxu1  ;;  %v6721_v5 = vadd.f32 %v6720_v29, %v6594_v1  ;;  %v8317_v42 = vpop.f32.mrb[75].mxu0 }
0x38c6   :  { %v8339_v40 = vpop.f32.mrb[73].mxu1  ;;  %v6830_v14 = vadd.f32 %v6829_v52, %v6589_v30 }
0x38c7   :  { %6750 = vst.msk [vmem:[%s10801_s14 + $0x8] sm:$0xff] %vm74_vm0, %v6721_v5 }
0x38c8   :  { %7218 = vst.msk [vmem:[%s10801_s14 + $0x38] sm:$0xff] %vm74_vm0, %v6830_v14  ;;  %v6725_v43 = vpop.f32.mrb[76].mxu0 }
0x38c9   :  { %v6726_v22 = vadd.f32 %v6725_v43, %v6599_v34  ;;  %v6834_v4 = vpop.f32.mrb[74].mxu1  ;;  %v8320_v56 = vpop.f32.mrb[77].mxu0 }
0x38ca   :  { %v6835_v19 = vadd.f32 %v6834_v4, %v6594_v1  ;;  %v8342_v3 = vpop.f32.mrb[75].mxu1 }
0x38cb   :  { %6751 = vst.msk [vmem:[%s10801_s14 + $0x10] sm:$0xff] %vm74_vm0, %v6726_v22 }
0x38cc   :  { %7219 = vst.msk [vmem:[%s10801_s14 + $0x40] sm:$0xff] %vm74_vm0, %v6835_v19  ;;  %v6730_v16 = vpop.f32.mrb[78].mxu0 }
0x38cd   :  { %v6731_v53 = vadd.f32 %v6730_v16, %v6604_v35  ;;  %v6839_v54 = vpop.f32.mrb[76].mxu1  ;;  %v8323_v26 = vpop.f32.mrb[79].mxu0 }
0x38ce   :  { %v6840_v9 = vadd.f32 %v6839_v54, %v6599_v34  ;;  %v8345_v8 = vpop.f32.mrb[77].mxu1 }
0x38cf   :  { %6752 = vst.msk [vmem:[%s10801_s14 + $0x18] sm:$0xff] %vm74_vm0, %v6731_v53 }
0x38d0   :  { %7220 = vst.msk [vmem:[%s10801_s14 + $0x48] sm:$0xff] %vm74_vm0, %v6840_v9  ;;  %v6735_v0 = vpop.f32.mrb[80].mxu0 }
0x38d1   :  { %v6736_v32 = vadd.f32 %v6735_v0, %v6609_v46  ;;  %v6844_v10 = vpop.f32.mrb[78].mxu1  ;;  %v8326_v55 = vpop.f32.mrb[81].mxu0 }
0x38d2   :  { %v6845_v58 = vadd.f32 %v6844_v10, %v6604_v35  ;;  %v8348_v44 = vpop.f32.mrb[79].mxu1 }
0x38d3   :  { %6753 = vst.msk [vmem:[%s10801_s14 + $0x20] sm:$0xff] %vm74_vm0, %v6736_v32 }
0x38d4   :  { %7221 = vst.msk [vmem:[%s10801_s14 + $0x50] sm:$0xff] %vm74_vm0, %v6845_v58  ;;  %v6740_v13 = vpop.f32.mrb[82].mxu0 }
0x38d5   :  { %v6741_v27 = vadd.f32 %v6740_v13, %v6614_v12  ;;  %v6849_v47 = vpop.f32.mrb[80].mxu1  ;;  %v8329_v60 = vpop.f32.mrb[83].mxu0 }
0x38d6   :  { %v6850_v31 = vadd.f32 %v6849_v47, %v6609_v46  ;;  %v8351_v11 = vpop.f32.mrb[81].mxu1 }
0x38d7   :  { %6754 = vst.msk [vmem:[%s10801_s14 + $0x28] sm:$0xff] %vm74_vm0, %v6741_v27 }
0x38d8   :  { %7222 = vst.msk [vmem:[%s10801_s14 + $0x58] sm:$0xff] %vm74_vm0, %v6850_v31  ;;  %v6745_v36 = vpop.f32.mrb[84].mxu0 }
0x38d9   :  { %v6746_v57 = vadd.f32 %v6745_v36, %v6619_v38  ;;  %v6854_v2 = vpop.f32.mrb[82].mxu1  ;;  %v8332_v51 = vpop.f32.mrb[85].mxu0 }
0x38da   :  { %v6855_v41 = vadd.f32 %v6854_v2, %v6614_v12  ;;  %v8354_v24 = vpop.f32.mrb[83].mxu1 }
0x38db   :  { %6756 = vst.msk [vmem:[%s10801_s14 + $0x30] sm:$0x7] %vm6755_vm14, %v6746_v57 }
0x38dc   :  { %7223 = vst.msk [vmem:[%s10801_s14 + $0x60] sm:$0xff] %vm74_vm0, %v6855_v41 }
0x38dd   :  { %v6859_v45 = vpop.f32.mrb[84].mxu1 }
0x38de   :  { %v6860_v61 = vadd.f32 %v6859_v45, %v6619_v38  ;;  %v8357_v23 = vpop.f32.mrb[85].mxu1 }
0x38e0   :  { %7224 = vst.msk [vmem:[%s10801_s14 + $0x68] sm:$0x7] %vm6755_vm14, %v6860_v61 }

</bundles_post_ra>
